<compile_context>
chip_gen: v6e
topology: v6e:2x2x1
jax: 0.10.0
libtpu: 0.0.40
codegen_flags: <defaults>
</compile_context>

<pallas_src>
import numpy as np

import jax
import jax.numpy as jnp
from jax.experimental import pallas as pl
from jax.experimental.pallas import tpu as pltpu


_BN_EPS = 1e-5
_M_PAD = 96          # 81 board cells padded to a sublane/lane friendly size
# 3x3 tap offsets (dy, dx) in row-major order, expressed as flat-cell offsets.
_TAP_OFFSETS = (-10, -9, -8, -1, 0, 1, 8, 9, 10)


# ----------------------------------------------------------------------------
# Fused forward kernel (one pallas_call; one batch block per grid step)
# ----------------------------------------------------------------------------
def _build_kernel(num_action_real):
    inv_na = 1.0 / float(num_action_real)

    def kernel(x_ref, mask_ref, c1w_ref, c1b_ref, rw_ref, rb_ref,
               hw_ref, hb_ref, sel_ref,
               v2w1_ref, v2b1_ref, v2w2_ref, v2b2_ref,
               a2w1_ref, a2b1_ref, a2w2_ref, a2b2_ref,
               q_ref, v_ref, a_ref):
        f32, bf16 = jnp.float32, jnp.bfloat16
        m_cols = sel_ref.shape[1]            # M = B_BLK * 96 (board cells on lanes)

        def conv3x3(x, w_bf, bias_col):
            # x: (C, M) f32.  Each tap = lane roll (XLU) + 0/1 edge mask (VPU);
            # the 9 shifted copies are stacked on sublanes (C is a multiple of
            # 8 -> aligned concat) so the conv is ONE bf16 MXU matmul with
            # K = 9*C.  Rolls wrap across image/padding boundaries only at
            # positions the mask zeroes, so zero "same" padding comes for free.
            pieces = []
            for k, off in enumerate(_TAP_OFFSETS):
                shift = (-off) % m_cols
                xk = x if shift == 0 else pltpu.roll(x, shift=shift, axis=1)
                pieces.append(xk * mask_ref[k])
            xs = jnp.concatenate(pieces, axis=0).astype(bf16)          # (9C, M)
            return jnp.dot(w_bf, xs, preferred_element_type=f32) + bias_col

        # ----- stem: conv1 + folded BN + ReLU --------------------------------
        act = jnp.maximum(conv3x3(x_ref[0], c1w_ref[...], c1b_ref[...]), 0.0)

        # ----- residual tower (fully VMEM-resident) --------------------------
        num_layers = rw_ref.shape[0]                       # 2 * num_residuals
        # TODO(synk): for much deeper towers switch this static Python loop to
        # lax.fori_loop(..., unroll=2) to bound vreg live ranges.
        for r in range(num_layers // 2):
            l1, l2 = 2 * r, 2 * r + 1
            h = jnp.maximum(conv3x3(act, rw_ref[l1], rb_ref[l1]), 0.0)
            h = conv3x3(h, rw_ref[l2], rb_ref[l2]) + act
            act = jnp.maximum(h, 0.0)

        # ----- fused 1x1 value/advantage head convs (folded BN + ReLU) -------
        # row 0 = value map, rows 1:3 = advantage maps; shape (3, M).
        hm = jnp.maximum(
            jnp.dot(hw_ref[...], act, preferred_element_type=f32) + hb_ref[...],
            0.0)

        sel = sel_ref[...]                                  # (B_BLK, M) 0/1
        # ----- value FC head: per-image flatten folded into sel * map, then
        #       the 81->256 Linear is an MXU dot against batch-tiled weights.
        hv = jnp.dot(sel * hm[0:1, :], v2w1_ref[...],
                     preferred_element_type=f32) + v2b1_ref[...]      # (B, 256)
        hv = jnp.maximum(hv, 0.0)
        v_out = jnp.tanh(
            jnp.dot(hv, v2w2_ref[...], preferred_element_type=f32)
            + v2b2_ref[...])                                          # (B, 1)

        # ----- advantage FC head (two channels -> two tiled weight tables) ---
        ha = (jnp.dot(sel * hm[1:2, :], a2w1_ref[0], preferred_element_type=f32)
              + jnp.dot(sel * hm[2:3, :], a2w1_ref[1], preferred_element_type=f32)
              + a2b1_ref[...])
        ha = jnp.maximum(ha, 0.0)
        a_out = jnp.dot(ha, a2w2_ref[...],
                        preferred_element_type=f32) + a2b2_ref[...]   # (B, NApad)

        # ----- dueling combine (padded action columns are exactly zero) ------
        a_mean = jnp.sum(a_out, axis=1, keepdims=True) * inv_na
        q_ref[...] = v_out + (a_out - a_mean)
        v_ref[...] = v_out
        a_ref[...] = a_out

    return kernel


# ----------------------------------------------------------------------------
# Wrapper: one pallas_call, batch blocks mapped to a parallel grid axis
# ----------------------------------------------------------------------------
def fused_forward(prep, state, *, block_b=8):
    b, cin = state.shape[0], state.shape[1]
    assert state.shape[2:] == (9, 9), "Model hard-codes a 9x9 board (view(-1, 81))"
    cin_pad = prep["c1_w"].shape[1] // 9
    na = prep["a2_w2"].shape[1]
    na_pad = -(-na // 128) * 128

    if b <= block_b:
        b_blk = b                     # single block, full-extent output blocks
    else:
        assert block_b % 8 == 0, "block_b must be a multiple of 8 when splitting"
        b_blk = block_b
    n_blocks = -(-b // b_blk)
    b_pad = n_blocks * b_blk
    m = b_blk * _M_PAD

    # One-time layout glue (wrapper side): NCHW is already channel-major per
    # image, so the PyTorch .view flatten is a reshape.  Board cells go on the
    # lane axis (81 -> 96), channels are padded to a multiple of 8, and b_blk
    # images are stacked along the lane/matmul-N dimension (M = b_blk*96).
    x = state.astype(jnp.float32).reshape(b, cin, 81)
    x = jnp.pad(x, ((0, b_pad - b), (0, cin_pad - cin), (0, _M_PAD - 81)))
    x = x.reshape(n_blocks, b_blk, cin_pad, _M_PAD)
    x = jnp.transpose(x, (0, 2, 1, 3)).reshape(n_blocks, cin_pad, m)

    # Block-size-dependent constants (built once per traced shape).
    masks = jnp.tile(prep["mask"], (1, 1, b_blk))                    # (9, 1, M)
    sel = jnp.asarray(np.kron(np.eye(b_blk, dtype=np.float32),
                              np.ones((1, _M_PAD), np.float32)))     # (b_blk, M)
    v2w1_t = jnp.tile(prep["v2_w1"], (b_blk, 1))                     # (M, 256)
    a2w1_t = jnp.tile(prep["a2_w1"], (1, b_blk, 1))                  # (2, M, 256)
    a2w2_p = jnp.pad(prep["a2_w2"], ((0, 0), (0, na_pad - na)))      # (256, NApad)
    a2b2_p = jnp.pad(prep["a2_b2"], ((0, 0), (0, na_pad - na)))      # (1, NApad)

    weights = [masks, prep["c1_w"], prep["c1_b"], prep["res_w"], prep["res_b"],
               prep["head_w"], prep["head_b"], sel,
               v2w1_t, prep["v2_b1"], prep["v2_w2"], prep["v2_b2"],
               a2w1_t, prep["a2_b1"], a2w2_p, a2b2_p]

    def rep(arr):  # replicated (whole-array, VMEM-resident) operand
        zeros = (0,) * arr.ndim
        return pl.BlockSpec(arr.shape, lambda i, _z=zeros: _z)

    in_specs = [pl.BlockSpec((1, cin_pad, m), lambda i: (i, 0, 0))]
    in_specs += [rep(w) for w in weights]

    out_shape = (
        jax.ShapeDtypeStruct((b_pad, na_pad), jnp.float32),
        jax.ShapeDtypeStruct((b_pad, 1), jnp.float32),
        jax.ShapeDtypeStruct((b_pad, na_pad), jnp.float32),
    )
    out_specs = (
        pl.BlockSpec((b_blk, na_pad), lambda i: (i, 0)),
        pl.BlockSpec((b_blk, 1), lambda i: (i, 0)),
        pl.BlockSpec((b_blk, na_pad), lambda i: (i, 0)),
    )

    q, v, a = pl.pallas_call(
        _build_kernel(na),
        grid=(n_blocks,),
        in_specs=in_specs,
        out_specs=out_specs,
        out_shape=out_shape,
        compiler_params=pltpu.CompilerParams(
            dimension_semantics=("parallel",),      # batch blocks across TCs (v7x)
            vmem_limit_bytes=48 * 1024 * 1024),
    )(x, *weights)

    return q[:b, :na], v[:b], a[:b, :na]


# ----------------------------------------------------------------------------
# Parameter init (deterministic, synthetic) and kernel-side preparation
# ----------------------------------------------------------------------------
def init_params(key, in_channel, hid_channel, num_residuals, num_action):
    keys = iter(jax.random.split(key, 8 + 2 * num_residuals))

    def conv_params(k, taps, cin, cout):
        kw, kb, kg, kbt, km, kv = jax.random.split(k, 6)
        fan_in = taps * cin
        w_shape = (taps, cin, cout) if taps > 1 else (cin, cout)
        return {
            "w": jax.random.normal(kw, w_shape, jnp.float32) / np.sqrt(fan_in),
            "b": 0.01 * jax.random.normal(kb, (cout,), jnp.float32),
            "gamma": 1.0 + 0.1 * jax.random.normal(kg, (cout,), jnp.float32),
            "beta": 0.1 * jax.random.normal(kbt, (cout,), jnp.float32),
            "mean": 0.1 * jax.random.normal(km, (cout,), jnp.float32),
            "var": jax.random.uniform(kv, (cout,), jnp.float32, minval=0.5, maxval=1.5),
        }

    def linear_params(k, fin, fout):
        kw, kb = jax.random.split(k)
        return (jax.random.normal(kw, (fin, fout), jnp.float32) / np.sqrt(fin),
                0.01 * jax.random.normal(kb, (fout,), jnp.float32))

    return {
        "conv1": conv_params(next(keys), 9, in_channel, hid_channel),
        "residuals": [
            {"c1": conv_params(next(keys), 9, hid_channel, hid_channel),
             "c2": conv_params(next(keys), 9, hid_channel, hid_channel)}
            for _ in range(num_residuals)
        ],
        "v1": conv_params(next(keys), 1, hid_channel, 1),
        "a1": conv_params(next(keys), 1, hid_channel, 2),
        "v2_l1": linear_params(next(keys), 81, 256),
        "v2_l2": linear_params(next(keys), 256, 1),
        "a2_l1": linear_params(next(keys), 162, 256),
        "a2_l2": linear_params(next(keys), 256, num_action),
    }


def _fold_bn(p):
    """Fold inference-mode BatchNorm into the conv weight / bias (bias flat)."""
    scale = p["gamma"] / jnp.sqrt(p["var"] + _BN_EPS)
    return p["w"] * scale, p["beta"] + (p["b"] - p["mean"]) * scale


def _build_tap_masks():
    """(9, 1, 96) 0/1 masks: tap k is valid at cell p iff its neighbor is on-board."""
    m = np.zeros((9, 1, _M_PAD), np.float32)
    k = 0
    for dy in (-1, 0, 1):
        for dx in (-1, 0, 1):
            for p in range(81):
                i, j = divmod(p, 9)
                if 0 <= i + dy < 9 and 0 <= j + dx < 9:
                    m[k, 0, p] = 1.0
            k += 1
    return jnp.asarray(m)


def prepare_params(raw):
    """Fold BN, transpose to channel-major bf16 conv weights, pre-pad FC heads."""
    hid = raw["conv1"]["w"].shape[2]
    assert hid % 8 == 0, "hid_channel must be a multiple of 8 for the fused kernel"

    def t_conv3(w):  # (9, cin, cout) -> (cout, 9*cin_pad), tap-major columns
        taps, cin, cout = w.shape
        cin_pad = -(-cin // 8) * 8
        w = jnp.pad(w, ((0, 0), (0, cin_pad - cin), (0, 0)))
        return jnp.transpose(w, (2, 0, 1)).reshape(cout, taps * cin_pad)

    c1w, c1b = _fold_bn(raw["conv1"])
    rws, rbs = [], []
    for blk in raw["residuals"]:
        for name in ("c1", "c2"):
            w, bvec = _fold_bn(blk[name])
            rws.append(t_conv3(w))
            rbs.append(bvec.reshape(-1, 1))
    v1w, v1b = _fold_bn(raw["v1"])                 # (H, 1), (1,)
    a1w, a1b = _fold_bn(raw["a1"])                 # (H, 2), (2,)

    wv1, bv1 = raw["v2_l1"]
    wv2, bv2 = raw["v2_l2"]
    wa1, ba1 = raw["a2_l1"]
    wa2, ba2 = raw["a2_l2"]
    fc = wv1.shape[1]

    # FC-1 weights absorb the PyTorch NCHW .view flatten; rows >= 81 are zero so
    # the padded board rows (and anything the masks let through there) never leak.
    v2_w1 = jnp.zeros((_M_PAD, fc), jnp.float32).at[:81].set(wv1)
    a2_w1 = jnp.zeros((2, _M_PAD, fc), jnp.float32)
    a2_w1 = a2_w1.at[0, :81].set(wa1[:81]).at[1, :81].set(wa1[81:162])

    return {
        "mask": _build_tap_masks(),
        "c1_w": t_conv3(c1w).astype(jnp.bfloat16),
        "c1_b": c1b.reshape(-1, 1),
        "res_w": jnp.stack(rws).astype(jnp.bfloat16),      # (L, H, 9H)
        "res_b": jnp.stack(rbs),                           # (L, H, 1)
        "head_w": jnp.concatenate([v1w, a1w], axis=1).T,   # (3, H): [v, a0, a1]
        "head_b": jnp.concatenate([v1b, a1b]).reshape(3, 1),
        "v2_w1": v2_w1, "v2_b1": bv1.reshape(1, -1),
        "v2_w2": wv2, "v2_b2": bv2.reshape(1, -1),
        "a2_w1": a2_w1, "a2_b1": ba1.reshape(1, -1),
        "a2_w2": wa2, "a2_b2": ba2.reshape(1, -1),
    }


# ----------------------------------------------------------------------------
# Pure-JAX/XLA reference (mirrors Model.forward) for a correctness self-check
# ----------------------------------------------------------------------------
def reference_forward(raw, state):
    hp = jax.lax.Precision.HIGHEST
    x = jnp.transpose(state.astype(jnp.float32), (0, 2, 3, 1))        # NHWC

    def bn(y, p):
        return (y - p["mean"]) * (p["gamma"] / jnp.sqrt(p["var"] + _BN_EPS)) + p["beta"]

    def conv3(xin, p):
        w = p["w"].reshape(3, 3, p["w"].shape[1], p["w"].shape[2])
        y = jax.lax.conv_general_dilated(
            xin, w, window_strides=(1, 1), padding="SAME",
            dimension_numbers=("NHWC", "HWIO", "NHWC"), precision=hp)
        return y + p["b"]

    def conv1(xin, p):
        return jnp.einsum("bhwc,cd->bhwd", xin, p["w"], precision=hp) + p["b"]

    y = jnp.maximum(bn(conv3(x, raw["conv1"]), raw["conv1"]), 0.0)
    for blk in raw["residuals"]:
        h = jnp.maximum(bn(conv3(y, blk["c1"]), blk["c1"]), 0.0)
        y = jnp.maximum(bn(conv3(h, blk["c2"]), blk["c2"]) + y, 0.0)

    v = jnp.maximum(bn(conv1(y, raw["v1"]), raw["v1"]), 0.0)          # (B,9,9,1)
    a = jnp.maximum(bn(conv1(y, raw["a1"]), raw["a1"]), 0.0)          # (B,9,9,2)
    b = state.shape[0]
    v_flat = jnp.transpose(v, (0, 3, 1, 2)).reshape(b, 81)            # PyTorch view order
    a_flat = jnp.transpose(a, (0, 3, 1, 2)).reshape(b, 162)

    w1, b1 = raw["v2_l1"]; w2, b2 = raw["v2_l2"]
    v_out = jnp.tanh(jnp.maximum(v_flat @ w1 + b1, 0.0) @ w2 + b2)
    w1, b1 = raw["a2_l1"]; w2, b2 = raw["a2_l2"]
    a_out = jnp.maximum(a_flat @ w1 + b1, 0.0) @ w2 + b2
    q = v_out + (a_out - jnp.mean(a_out, axis=1, keepdims=True))
    return q, v_out, a_out


# ----------------------------------------------------------------------------
if __name__ == "__main__":
    B = 2
    IN_CHANNEL = 4
    HID_CHANNEL = 32
    NUM_RESIDUALS = 2
    NUM_ACTION = 82          # 9x9 board -> 81 moves + pass
    H = W = 9                # forward hard-codes 9x9 spatial (view(-1, 81))

    key = jax.random.PRNGKey(0)
    k_param, k_input = jax.random.split(key)
    raw_params = init_params(k_param, IN_CHANNEL, HID_CHANNEL, NUM_RESIDUALS, NUM_ACTION)
    prep_params = prepare_params(raw_params)
    state = jax.random.normal(k_input, (B, IN_CHANNEL, H, W), jnp.float32)

    forward = jax.jit(fused_forward)
    q, v, a = jax.block_until_ready(forward(prep_params, state))

    assert q.shape == (B, NUM_ACTION)
    assert v.shape == (B, 1)
    assert a.shape == (B, NUM_ACTION)

    # Correctness self-check vs. an independent XLA implementation
    # (bf16 conv weights/activations in the kernel -> loose tolerance).
    q_r, v_r, a_r = reference_forward(raw_params, state)
    np.testing.assert_allclose(np.asarray(q), np.asarray(q_r), rtol=5e-2, atol=5e-2)
    np.testing.assert_allclose(np.asarray(v), np.asarray(v_r), rtol=5e-2, atol=5e-2)
    np.testing.assert_allclose(np.asarray(a), np.asarray(a_r), rtol=5e-2, atol=5e-2)

    # Exercise the multi-block path (batch padding + >1 grid step).
    state2 = jax.random.normal(jax.random.PRNGKey(1), (10, IN_CHANNEL, H, W), jnp.float32)
    fwd2 = jax.jit(lambda p, s: fused_forward(p, s, block_b=8))
    q2, v2, a2 = jax.block_until_ready(fwd2(prep_params, state2))
    q2_r, v2_r, a2_r = reference_forward(raw_params, state2)
    np.testing.assert_allclose(np.asarray(q2), np.asarray(q2_r), rtol=5e-2, atol=5e-2)
    np.testing.assert_allclose(np.asarray(v2), np.asarray(v2_r), rtol=5e-2, atol=5e-2)
    np.testing.assert_allclose(np.asarray(a2), np.asarray(a2_r), rtol=5e-2, atol=5e-2)

    print("KERNEL_OK")
</pallas_src>

<mosaic_0001>
module attributes {stable_mosaic.version = 11 : i64} {
  func.func @kernel(%arg0: i32, %arg1: memref<1x8x192xf32, #tpu.memory_space<vmem>>, %arg2: memref<9x1x192xf32, #tpu.memory_space<vmem>>, %arg3: memref<32x72xbf16, #tpu.memory_space<vmem>>, %arg4: memref<32x1xf32, #tpu.memory_space<vmem>>, %arg5: memref<4x32x288xbf16, #tpu.memory_space<vmem>>, %arg6: memref<4x32x1xf32, #tpu.memory_space<vmem>>, %arg7: memref<3x32xf32, #tpu.memory_space<vmem>>, %arg8: memref<3x1xf32, #tpu.memory_space<vmem>>, %arg9: memref<2x192xf32, #tpu.memory_space<vmem>>, %arg10: memref<192x256xf32, #tpu.memory_space<vmem>>, %arg11: memref<1x256xf32, #tpu.memory_space<vmem>>, %arg12: memref<256x1xf32, #tpu.memory_space<vmem>>, %arg13: memref<1x1xf32, #tpu.memory_space<vmem>>, %arg14: memref<2x192x256xf32, #tpu.memory_space<vmem>>, %arg15: memref<1x256xf32, #tpu.memory_space<vmem>>, %arg16: memref<256x128xf32, #tpu.memory_space<vmem>>, %arg17: memref<1x128xf32, #tpu.memory_space<vmem>>, %arg18: memref<2x128xf32, #tpu.memory_space<vmem>>, %arg19: memref<2x1xf32, #tpu.memory_space<vmem>>, %arg20: memref<2x128xf32, #tpu.memory_space<vmem>>) attributes {dimension_semantics = [#tpu.dimension_semantics<parallel>], iteration_bounds = array<i64: 1>, scalar_prefetch = 0 : i64, scratch_operands = 0 : i64, tpu.core_type = #tpu.core_type<tc>, window_params = [{transform_indices = @transform_0, window_bounds = array<i64: 1, 8, 192>}, {pipeline_mode = #tpu.pipeline_mode<synchronous>, transform_indices = @transform_1, window_bounds = array<i64: 9, 1, 192>}, {pipeline_mode = #tpu.pipeline_mode<synchronous>, transform_indices = @transform_2, window_bounds = array<i64: 32, 72>}, {pipeline_mode = #tpu.pipeline_mode<synchronous>, transform_indices = @transform_3, window_bounds = array<i64: 32, 1>}, {pipeline_mode = #tpu.pipeline_mode<synchronous>, transform_indices = @transform_4, window_bounds = array<i64: 4, 32, 288>}, {pipeline_mode = #tpu.pipeline_mode<synchronous>, transform_indices = @transform_5, window_bounds = array<i64: 4, 32, 1>}, {pipeline_mode = #tpu.pipeline_mode<synchronous>, transform_indices = @transform_6, window_bounds = array<i64: 3, 32>}, {pipeline_mode = #tpu.pipeline_mode<synchronous>, transform_indices = @transform_7, window_bounds = array<i64: 3, 1>}, {pipeline_mode = #tpu.pipeline_mode<synchronous>, transform_indices = @transform_8, window_bounds = array<i64: 2, 192>}, {pipeline_mode = #tpu.pipeline_mode<synchronous>, transform_indices = @transform_9, window_bounds = array<i64: 192, 256>}, {pipeline_mode = #tpu.pipeline_mode<synchronous>, transform_indices = @transform_10, window_bounds = array<i64: 1, 256>}, {pipeline_mode = #tpu.pipeline_mode<synchronous>, transform_indices = @transform_11, window_bounds = array<i64: 256, 1>}, {pipeline_mode = #tpu.pipeline_mode<synchronous>, transform_indices = @transform_12, window_bounds = array<i64: 1, 1>}, {pipeline_mode = #tpu.pipeline_mode<synchronous>, transform_indices = @transform_13, window_bounds = array<i64: 2, 192, 256>}, {pipeline_mode = #tpu.pipeline_mode<synchronous>, transform_indices = @transform_14, window_bounds = array<i64: 1, 256>}, {pipeline_mode = #tpu.pipeline_mode<synchronous>, transform_indices = @transform_15, window_bounds = array<i64: 256, 128>}, {pipeline_mode = #tpu.pipeline_mode<synchronous>, transform_indices = @transform_16, window_bounds = array<i64: 1, 128>}, {transform_indices = @transform_17, window_bounds = array<i64: 2, 128>}, {transform_indices = @transform_18, window_bounds = array<i64: 2, 1>}, {transform_indices = @transform_19, window_bounds = array<i64: 2, 128>}]} {
    %c0 = arith.constant 0 : index
    %c0_0 = arith.constant 0 : index
    %c0_1 = arith.constant 0 : index
    %0 = vector.load %arg1[%c0, %c0_0, %c0_1] : memref<1x8x192xf32, #tpu.memory_space<vmem>>, vector<1x8x192xf32>
    %1 = vector.shape_cast %0 : vector<1x8x192xf32> to vector<8x192xf32>
    %c0_2 = arith.constant 0 : index
    %c0_3 = arith.constant 0 : index
    %2 = vector.load %arg3[%c0_2, %c0_3] : memref<32x72xbf16, #tpu.memory_space<vmem>>, vector<32x72xbf16>
    %c0_4 = arith.constant 0 : index
    %c0_5 = arith.constant 0 : index
    %3 = vector.load %arg4[%c0_4, %c0_5] : memref<32x1xf32, #tpu.memory_space<vmem>>, vector<32x1xf32>
    %c10_i32 = arith.constant 10 : i32
    %4 = tpu.dynamic_rotate %1 by %c10_i32 dim 1 : vector<8x192xf32>, i32 -> vector<8x192xf32>
    %c0_6 = arith.constant 0 : index
    %c0_7 = arith.constant 0 : index
    %c0_8 = arith.constant 0 : index
    %5 = vector.load %arg2[%c0_6, %c0_7, %c0_8] : memref<9x1x192xf32, #tpu.memory_space<vmem>>, vector<1x1x192xf32>
    %6 = vector.shape_cast %5 : vector<1x1x192xf32> to vector<1x192xf32>
    %7 = vector.broadcast %6 : vector<1x192xf32> to vector<8x192xf32>
    %8 = arith.mulf %4, %7 : vector<8x192xf32>
    %c9_i32 = arith.constant 9 : i32
    %9 = tpu.dynamic_rotate %1 by %c9_i32 dim 1 : vector<8x192xf32>, i32 -> vector<8x192xf32>
    %c1 = arith.constant 1 : index
    %c0_9 = arith.constant 0 : index
    %c0_10 = arith.constant 0 : index
    %10 = vector.load %arg2[%c1, %c0_9, %c0_10] : memref<9x1x192xf32, #tpu.memory_space<vmem>>, vector<1x1x192xf32>
    %11 = vector.shape_cast %10 : vector<1x1x192xf32> to vector<1x192xf32>
    %12 = vector.broadcast %11 : vector<1x192xf32> to vector<8x192xf32>
    %13 = arith.mulf %9, %12 : vector<8x192xf32>
    %c8_i32 = arith.constant 8 : i32
    %14 = tpu.dynamic_rotate %1 by %c8_i32 dim 1 : vector<8x192xf32>, i32 -> vector<8x192xf32>
    %c2 = arith.constant 2 : index
    %c0_11 = arith.constant 0 : index
    %c0_12 = arith.constant 0 : index
    %15 = vector.load %arg2[%c2, %c0_11, %c0_12] : memref<9x1x192xf32, #tpu.memory_space<vmem>>, vector<1x1x192xf32>
    %16 = vector.shape_cast %15 : vector<1x1x192xf32> to vector<1x192xf32>
    %17 = vector.broadcast %16 : vector<1x192xf32> to vector<8x192xf32>
    %18 = arith.mulf %14, %17 : vector<8x192xf32>
    %c1_i32 = arith.constant 1 : i32
    %19 = tpu.dynamic_rotate %1 by %c1_i32 dim 1 : vector<8x192xf32>, i32 -> vector<8x192xf32>
    %c3 = arith.constant 3 : index
    %c0_13 = arith.constant 0 : index
    %c0_14 = arith.constant 0 : index
    %20 = vector.load %arg2[%c3, %c0_13, %c0_14] : memref<9x1x192xf32, #tpu.memory_space<vmem>>, vector<1x1x192xf32>
    %21 = vector.shape_cast %20 : vector<1x1x192xf32> to vector<1x192xf32>
    %22 = vector.broadcast %21 : vector<1x192xf32> to vector<8x192xf32>
    %23 = arith.mulf %19, %22 : vector<8x192xf32>
    %c4 = arith.constant 4 : index
    %c0_15 = arith.constant 0 : index
    %c0_16 = arith.constant 0 : index
    %24 = vector.load %arg2[%c4, %c0_15, %c0_16] : memref<9x1x192xf32, #tpu.memory_space<vmem>>, vector<1x1x192xf32>
    %25 = vector.shape_cast %24 : vector<1x1x192xf32> to vector<1x192xf32>
    %26 = vector.broadcast %25 : vector<1x192xf32> to vector<8x192xf32>
    %27 = arith.mulf %1, %26 : vector<8x192xf32>
    %c191_i32 = arith.constant 191 : i32
    %28 = tpu.dynamic_rotate %1 by %c191_i32 dim 1 : vector<8x192xf32>, i32 -> vector<8x192xf32>
    %c5 = arith.constant 5 : index
    %c0_17 = arith.constant 0 : index
    %c0_18 = arith.constant 0 : index
    %29 = vector.load %arg2[%c5, %c0_17, %c0_18] : memref<9x1x192xf32, #tpu.memory_space<vmem>>, vector<1x1x192xf32>
    %30 = vector.shape_cast %29 : vector<1x1x192xf32> to vector<1x192xf32>
    %31 = vector.broadcast %30 : vector<1x192xf32> to vector<8x192xf32>
    %32 = arith.mulf %28, %31 : vector<8x192xf32>
    %c184_i32 = arith.constant 184 : i32
    %33 = tpu.dynamic_rotate %1 by %c184_i32 dim 1 : vector<8x192xf32>, i32 -> vector<8x192xf32>
    %c6 = arith.constant 6 : index
    %c0_19 = arith.constant 0 : index
    %c0_20 = arith.constant 0 : index
    %34 = vector.load %arg2[%c6, %c0_19, %c0_20] : memref<9x1x192xf32, #tpu.memory_space<vmem>>, vector<1x1x192xf32>
    %35 = vector.shape_cast %34 : vector<1x1x192xf32> to vector<1x192xf32>
    %36 = vector.broadcast %35 : vector<1x192xf32> to vector<8x192xf32>
    %37 = arith.mulf %33, %36 : vector<8x192xf32>
    %c183_i32 = arith.constant 183 : i32
    %38 = tpu.dynamic_rotate %1 by %c183_i32 dim 1 : vector<8x192xf32>, i32 -> vector<8x192xf32>
    %c7 = arith.constant 7 : index
    %c0_21 = arith.constant 0 : index
    %c0_22 = arith.constant 0 : index
    %39 = vector.load %arg2[%c7, %c0_21, %c0_22] : memref<9x1x192xf32, #tpu.memory_space<vmem>>, vector<1x1x192xf32>
    %40 = vector.shape_cast %39 : vector<1x1x192xf32> to vector<1x192xf32>
    %41 = vector.broadcast %40 : vector<1x192xf32> to vector<8x192xf32>
    %42 = arith.mulf %38, %41 : vector<8x192xf32>
    %c182_i32 = arith.constant 182 : i32
    %43 = tpu.dynamic_rotate %1 by %c182_i32 dim 1 : vector<8x192xf32>, i32 -> vector<8x192xf32>
    %c8 = arith.constant 8 : index
    %c0_23 = arith.constant 0 : index
    %c0_24 = arith.constant 0 : index
    %44 = vector.load %arg2[%c8, %c0_23, %c0_24] : memref<9x1x192xf32, #tpu.memory_space<vmem>>, vector<1x1x192xf32>
    %45 = vector.shape_cast %44 : vector<1x1x192xf32> to vector<1x192xf32>
    %46 = vector.broadcast %45 : vector<1x192xf32> to vector<8x192xf32>
    %47 = arith.mulf %43, %46 : vector<8x192xf32>
    %48 = tpu.concatenate %8, %13, %18, %23, %27, %32, %37, %42, %47 in 0 : vector<8x192xf32>, vector<8x192xf32>, vector<8x192xf32>, vector<8x192xf32>, vector<8x192xf32>, vector<8x192xf32>, vector<8x192xf32>, vector<8x192xf32>, vector<8x192xf32> -> vector<72x192xf32>
    %49 = arith.truncf %48 : vector<72x192xf32> to vector<72x192xbf16>
    %cst = arith.constant dense<0.000000e+00> : vector<32x192xf32>
    %50 = tpu.matmul %2, %49, %cst {dimension_numbers = #tpu.dot_dimension_numbers<[1], [0], [0], [1], [0, 0, 1, 1], [], []>} : vector<32x72xbf16>, vector<72x192xbf16>, vector<32x192xf32> -> vector<32x192xf32>
    %51 = vector.broadcast %3 : vector<32x1xf32> to vector<32x192xf32>
    %52 = arith.addf %50, %51 : vector<32x192xf32>
    %cst_25 = arith.constant 0.000000e+00 : f32
    %53 = vector.broadcast %cst_25 : f32 to vector<32x192xf32>
    %54 = arith.maximumf %52, %53 : vector<32x192xf32>
    %c0_26 = arith.constant 0 : index
    %c0_27 = arith.constant 0 : index
    %c0_28 = arith.constant 0 : index
    %55 = vector.load %arg5[%c0_26, %c0_27, %c0_28] : memref<4x32x288xbf16, #tpu.memory_space<vmem>>, vector<1x32x288xbf16>
    %56 = vector.shape_cast %55 : vector<1x32x288xbf16> to vector<32x288xbf16>
    %c0_29 = arith.constant 0 : index
    %c0_30 = arith.constant 0 : index
    %c0_31 = arith.constant 0 : index
    %57 = vector.load %arg6[%c0_29, %c0_30, %c0_31] : memref<4x32x1xf32, #tpu.memory_space<vmem>>, vector<1x32x1xf32>
    %58 = vector.shape_cast %57 : vector<1x32x1xf32> to vector<32x1xf32>
    %c10_i32_32 = arith.constant 10 : i32
    %59 = tpu.dynamic_rotate %54 by %c10_i32_32 dim 1 : vector<32x192xf32>, i32 -> vector<32x192xf32>
    %c0_33 = arith.constant 0 : index
    %c0_34 = arith.constant 0 : index
    %c0_35 = arith.constant 0 : index
    %60 = vector.load %arg2[%c0_33, %c0_34, %c0_35] : memref<9x1x192xf32, #tpu.memory_space<vmem>>, vector<1x1x192xf32>
    %61 = vector.shape_cast %60 : vector<1x1x192xf32> to vector<1x192xf32>
    %62 = vector.broadcast %61 : vector<1x192xf32> to vector<32x192xf32>
    %63 = arith.mulf %59, %62 : vector<32x192xf32>
    %c9_i32_36 = arith.constant 9 : i32
    %64 = tpu.dynamic_rotate %54 by %c9_i32_36 dim 1 : vector<32x192xf32>, i32 -> vector<32x192xf32>
    %c1_37 = arith.constant 1 : index
    %c0_38 = arith.constant 0 : index
    %c0_39 = arith.constant 0 : index
    %65 = vector.load %arg2[%c1_37, %c0_38, %c0_39] : memref<9x1x192xf32, #tpu.memory_space<vmem>>, vector<1x1x192xf32>
    %66 = vector.shape_cast %65 : vector<1x1x192xf32> to vector<1x192xf32>
    %67 = vector.broadcast %66 : vector<1x192xf32> to vector<32x192xf32>
    %68 = arith.mulf %64, %67 : vector<32x192xf32>
    %c8_i32_40 = arith.constant 8 : i32
    %69 = tpu.dynamic_rotate %54 by %c8_i32_40 dim 1 : vector<32x192xf32>, i32 -> vector<32x192xf32>
    %c2_41 = arith.constant 2 : index
    %c0_42 = arith.constant 0 : index
    %c0_43 = arith.constant 0 : index
    %70 = vector.load %arg2[%c2_41, %c0_42, %c0_43] : memref<9x1x192xf32, #tpu.memory_space<vmem>>, vector<1x1x192xf32>
    %71 = vector.shape_cast %70 : vector<1x1x192xf32> to vector<1x192xf32>
    %72 = vector.broadcast %71 : vector<1x192xf32> to vector<32x192xf32>
    %73 = arith.mulf %69, %72 : vector<32x192xf32>
    %c1_i32_44 = arith.constant 1 : i32
    %74 = tpu.dynamic_rotate %54 by %c1_i32_44 dim 1 : vector<32x192xf32>, i32 -> vector<32x192xf32>
    %c3_45 = arith.constant 3 : index
    %c0_46 = arith.constant 0 : index
    %c0_47 = arith.constant 0 : index
    %75 = vector.load %arg2[%c3_45, %c0_46, %c0_47] : memref<9x1x192xf32, #tpu.memory_space<vmem>>, vector<1x1x192xf32>
    %76 = vector.shape_cast %75 : vector<1x1x192xf32> to vector<1x192xf32>
    %77 = vector.broadcast %76 : vector<1x192xf32> to vector<32x192xf32>
    %78 = arith.mulf %74, %77 : vector<32x192xf32>
    %c4_48 = arith.constant 4 : index
    %c0_49 = arith.constant 0 : index
    %c0_50 = arith.constant 0 : index
    %79 = vector.load %arg2[%c4_48, %c0_49, %c0_50] : memref<9x1x192xf32, #tpu.memory_space<vmem>>, vector<1x1x192xf32>
    %80 = vector.shape_cast %79 : vector<1x1x192xf32> to vector<1x192xf32>
    %81 = vector.broadcast %80 : vector<1x192xf32> to vector<32x192xf32>
    %82 = arith.mulf %54, %81 : vector<32x192xf32>
    %c191_i32_51 = arith.constant 191 : i32
    %83 = tpu.dynamic_rotate %54 by %c191_i32_51 dim 1 : vector<32x192xf32>, i32 -> vector<32x192xf32>
    %c5_52 = arith.constant 5 : index
    %c0_53 = arith.constant 0 : index
    %c0_54 = arith.constant 0 : index
    %84 = vector.load %arg2[%c5_52, %c0_53, %c0_54] : memref<9x1x192xf32, #tpu.memory_space<vmem>>, vector<1x1x192xf32>
    %85 = vector.shape_cast %84 : vector<1x1x192xf32> to vector<1x192xf32>
    %86 = vector.broadcast %85 : vector<1x192xf32> to vector<32x192xf32>
    %87 = arith.mulf %83, %86 : vector<32x192xf32>
    %c184_i32_55 = arith.constant 184 : i32
    %88 = tpu.dynamic_rotate %54 by %c184_i32_55 dim 1 : vector<32x192xf32>, i32 -> vector<32x192xf32>
    %c6_56 = arith.constant 6 : index
    %c0_57 = arith.constant 0 : index
    %c0_58 = arith.constant 0 : index
    %89 = vector.load %arg2[%c6_56, %c0_57, %c0_58] : memref<9x1x192xf32, #tpu.memory_space<vmem>>, vector<1x1x192xf32>
    %90 = vector.shape_cast %89 : vector<1x1x192xf32> to vector<1x192xf32>
    %91 = vector.broadcast %90 : vector<1x192xf32> to vector<32x192xf32>
    %92 = arith.mulf %88, %91 : vector<32x192xf32>
    %c183_i32_59 = arith.constant 183 : i32
    %93 = tpu.dynamic_rotate %54 by %c183_i32_59 dim 1 : vector<32x192xf32>, i32 -> vector<32x192xf32>
    %c7_60 = arith.constant 7 : index
    %c0_61 = arith.constant 0 : index
    %c0_62 = arith.constant 0 : index
    %94 = vector.load %arg2[%c7_60, %c0_61, %c0_62] : memref<9x1x192xf32, #tpu.memory_space<vmem>>, vector<1x1x192xf32>
    %95 = vector.shape_cast %94 : vector<1x1x192xf32> to vector<1x192xf32>
    %96 = vector.broadcast %95 : vector<1x192xf32> to vector<32x192xf32>
    %97 = arith.mulf %93, %96 : vector<32x192xf32>
    %c182_i32_63 = arith.constant 182 : i32
    %98 = tpu.dynamic_rotate %54 by %c182_i32_63 dim 1 : vector<32x192xf32>, i32 -> vector<32x192xf32>
    %c8_64 = arith.constant 8 : index
    %c0_65 = arith.constant 0 : index
    %c0_66 = arith.constant 0 : index
    %99 = vector.load %arg2[%c8_64, %c0_65, %c0_66] : memref<9x1x192xf32, #tpu.memory_space<vmem>>, vector<1x1x192xf32>
    %100 = vector.shape_cast %99 : vector<1x1x192xf32> to vector<1x192xf32>
    %101 = vector.broadcast %100 : vector<1x192xf32> to vector<32x192xf32>
    %102 = arith.mulf %98, %101 : vector<32x192xf32>
    %103 = tpu.concatenate %63, %68, %73, %78, %82, %87, %92, %97, %102 in 0 : vector<32x192xf32>, vector<32x192xf32>, vector<32x192xf32>, vector<32x192xf32>, vector<32x192xf32>, vector<32x192xf32>, vector<32x192xf32>, vector<32x192xf32>, vector<32x192xf32> -> vector<288x192xf32>
    %104 = arith.truncf %103 : vector<288x192xf32> to vector<288x192xbf16>
    %cst_67 = arith.constant dense<0.000000e+00> : vector<32x192xf32>
    %105 = tpu.matmul %56, %104, %cst_67 {dimension_numbers = #tpu.dot_dimension_numbers<[1], [0], [0], [1], [0, 0, 1, 1], [], []>} : vector<32x288xbf16>, vector<288x192xbf16>, vector<32x192xf32> -> vector<32x192xf32>
    %106 = vector.broadcast %58 : vector<32x1xf32> to vector<32x192xf32>
    %107 = arith.addf %105, %106 : vector<32x192xf32>
    %cst_68 = arith.constant 0.000000e+00 : f32
    %108 = vector.broadcast %cst_68 : f32 to vector<32x192xf32>
    %109 = arith.maximumf %107, %108 : vector<32x192xf32>
    %c1_69 = arith.constant 1 : index
    %c0_70 = arith.constant 0 : index
    %c0_71 = arith.constant 0 : index
    %110 = vector.load %arg5[%c1_69, %c0_70, %c0_71] : memref<4x32x288xbf16, #tpu.memory_space<vmem>>, vector<1x32x288xbf16>
    %111 = vector.shape_cast %110 : vector<1x32x288xbf16> to vector<32x288xbf16>
    %c1_72 = arith.constant 1 : index
    %c0_73 = arith.constant 0 : index
    %c0_74 = arith.constant 0 : index
    %112 = vector.load %arg6[%c1_72, %c0_73, %c0_74] : memref<4x32x1xf32, #tpu.memory_space<vmem>>, vector<1x32x1xf32>
    %113 = vector.shape_cast %112 : vector<1x32x1xf32> to vector<32x1xf32>
    %c10_i32_75 = arith.constant 10 : i32
    %114 = tpu.dynamic_rotate %109 by %c10_i32_75 dim 1 : vector<32x192xf32>, i32 -> vector<32x192xf32>
    %c0_76 = arith.constant 0 : index
    %c0_77 = arith.constant 0 : index
    %c0_78 = arith.constant 0 : index
    %115 = vector.load %arg2[%c0_76, %c0_77, %c0_78] : memref<9x1x192xf32, #tpu.memory_space<vmem>>, vector<1x1x192xf32>
    %116 = vector.shape_cast %115 : vector<1x1x192xf32> to vector<1x192xf32>
    %117 = vector.broadcast %116 : vector<1x192xf32> to vector<32x192xf32>
    %118 = arith.mulf %114, %117 : vector<32x192xf32>
    %c9_i32_79 = arith.constant 9 : i32
    %119 = tpu.dynamic_rotate %109 by %c9_i32_79 dim 1 : vector<32x192xf32>, i32 -> vector<32x192xf32>
    %c1_80 = arith.constant 1 : index
    %c0_81 = arith.constant 0 : index
    %c0_82 = arith.constant 0 : index
    %120 = vector.load %arg2[%c1_80, %c0_81, %c0_82] : memref<9x1x192xf32, #tpu.memory_space<vmem>>, vector<1x1x192xf32>
    %121 = vector.shape_cast %120 : vector<1x1x192xf32> to vector<1x192xf32>
    %122 = vector.broadcast %121 : vector<1x192xf32> to vector<32x192xf32>
    %123 = arith.mulf %119, %122 : vector<32x192xf32>
    %c8_i32_83 = arith.constant 8 : i32
    %124 = tpu.dynamic_rotate %109 by %c8_i32_83 dim 1 : vector<32x192xf32>, i32 -> vector<32x192xf32>
    %c2_84 = arith.constant 2 : index
    %c0_85 = arith.constant 0 : index
    %c0_86 = arith.constant 0 : index
    %125 = vector.load %arg2[%c2_84, %c0_85, %c0_86] : memref<9x1x192xf32, #tpu.memory_space<vmem>>, vector<1x1x192xf32>
    %126 = vector.shape_cast %125 : vector<1x1x192xf32> to vector<1x192xf32>
    %127 = vector.broadcast %126 : vector<1x192xf32> to vector<32x192xf32>
    %128 = arith.mulf %124, %127 : vector<32x192xf32>
    %c1_i32_87 = arith.constant 1 : i32
    %129 = tpu.dynamic_rotate %109 by %c1_i32_87 dim 1 : vector<32x192xf32>, i32 -> vector<32x192xf32>
    %c3_88 = arith.constant 3 : index
    %c0_89 = arith.constant 0 : index
    %c0_90 = arith.constant 0 : index
    %130 = vector.load %arg2[%c3_88, %c0_89, %c0_90] : memref<9x1x192xf32, #tpu.memory_space<vmem>>, vector<1x1x192xf32>
    %131 = vector.shape_cast %130 : vector<1x1x192xf32> to vector<1x192xf32>
    %132 = vector.broadcast %131 : vector<1x192xf32> to vector<32x192xf32>
    %133 = arith.mulf %129, %132 : vector<32x192xf32>
    %c4_91 = arith.constant 4 : index
    %c0_92 = arith.constant 0 : index
    %c0_93 = arith.constant 0 : index
    %134 = vector.load %arg2[%c4_91, %c0_92, %c0_93] : memref<9x1x192xf32, #tpu.memory_space<vmem>>, vector<1x1x192xf32>
    %135 = vector.shape_cast %134 : vector<1x1x192xf32> to vector<1x192xf32>
    %136 = vector.broadcast %135 : vector<1x192xf32> to vector<32x192xf32>
    %137 = arith.mulf %109, %136 : vector<32x192xf32>
    %c191_i32_94 = arith.constant 191 : i32
    %138 = tpu.dynamic_rotate %109 by %c191_i32_94 dim 1 : vector<32x192xf32>, i32 -> vector<32x192xf32>
    %c5_95 = arith.constant 5 : index
    %c0_96 = arith.constant 0 : index
    %c0_97 = arith.constant 0 : index
    %139 = vector.load %arg2[%c5_95, %c0_96, %c0_97] : memref<9x1x192xf32, #tpu.memory_space<vmem>>, vector<1x1x192xf32>
    %140 = vector.shape_cast %139 : vector<1x1x192xf32> to vector<1x192xf32>
    %141 = vector.broadcast %140 : vector<1x192xf32> to vector<32x192xf32>
    %142 = arith.mulf %138, %141 : vector<32x192xf32>
    %c184_i32_98 = arith.constant 184 : i32
    %143 = tpu.dynamic_rotate %109 by %c184_i32_98 dim 1 : vector<32x192xf32>, i32 -> vector<32x192xf32>
    %c6_99 = arith.constant 6 : index
    %c0_100 = arith.constant 0 : index
    %c0_101 = arith.constant 0 : index
    %144 = vector.load %arg2[%c6_99, %c0_100, %c0_101] : memref<9x1x192xf32, #tpu.memory_space<vmem>>, vector<1x1x192xf32>
    %145 = vector.shape_cast %144 : vector<1x1x192xf32> to vector<1x192xf32>
    %146 = vector.broadcast %145 : vector<1x192xf32> to vector<32x192xf32>
    %147 = arith.mulf %143, %146 : vector<32x192xf32>
    %c183_i32_102 = arith.constant 183 : i32
    %148 = tpu.dynamic_rotate %109 by %c183_i32_102 dim 1 : vector<32x192xf32>, i32 -> vector<32x192xf32>
    %c7_103 = arith.constant 7 : index
    %c0_104 = arith.constant 0 : index
    %c0_105 = arith.constant 0 : index
    %149 = vector.load %arg2[%c7_103, %c0_104, %c0_105] : memref<9x1x192xf32, #tpu.memory_space<vmem>>, vector<1x1x192xf32>
    %150 = vector.shape_cast %149 : vector<1x1x192xf32> to vector<1x192xf32>
    %151 = vector.broadcast %150 : vector<1x192xf32> to vector<32x192xf32>
    %152 = arith.mulf %148, %151 : vector<32x192xf32>
    %c182_i32_106 = arith.constant 182 : i32
    %153 = tpu.dynamic_rotate %109 by %c182_i32_106 dim 1 : vector<32x192xf32>, i32 -> vector<32x192xf32>
    %c8_107 = arith.constant 8 : index
    %c0_108 = arith.constant 0 : index
    %c0_109 = arith.constant 0 : index
    %154 = vector.load %arg2[%c8_107, %c0_108, %c0_109] : memref<9x1x192xf32, #tpu.memory_space<vmem>>, vector<1x1x192xf32>
    %155 = vector.shape_cast %154 : vector<1x1x192xf32> to vector<1x192xf32>
    %156 = vector.broadcast %155 : vector<1x192xf32> to vector<32x192xf32>
    %157 = arith.mulf %153, %156 : vector<32x192xf32>
    %158 = tpu.concatenate %118, %123, %128, %133, %137, %142, %147, %152, %157 in 0 : vector<32x192xf32>, vector<32x192xf32>, vector<32x192xf32>, vector<32x192xf32>, vector<32x192xf32>, vector<32x192xf32>, vector<32x192xf32>, vector<32x192xf32>, vector<32x192xf32> -> vector<288x192xf32>
    %159 = arith.truncf %158 : vector<288x192xf32> to vector<288x192xbf16>
    %cst_110 = arith.constant dense<0.000000e+00> : vector<32x192xf32>
    %160 = tpu.matmul %111, %159, %cst_110 {dimension_numbers = #tpu.dot_dimension_numbers<[1], [0], [0], [1], [0, 0, 1, 1], [], []>} : vector<32x288xbf16>, vector<288x192xbf16>, vector<32x192xf32> -> vector<32x192xf32>
    %161 = vector.broadcast %113 : vector<32x1xf32> to vector<32x192xf32>
    %162 = arith.addf %160, %161 : vector<32x192xf32>
    %163 = arith.addf %162, %54 : vector<32x192xf32>
    %cst_111 = arith.constant 0.000000e+00 : f32
    %164 = vector.broadcast %cst_111 : f32 to vector<32x192xf32>
    %165 = arith.maximumf %163, %164 : vector<32x192xf32>
    %c2_112 = arith.constant 2 : index
    %c0_113 = arith.constant 0 : index
    %c0_114 = arith.constant 0 : index
    %166 = vector.load %arg5[%c2_112, %c0_113, %c0_114] : memref<4x32x288xbf16, #tpu.memory_space<vmem>>, vector<1x32x288xbf16>
    %167 = vector.shape_cast %166 : vector<1x32x288xbf16> to vector<32x288xbf16>
    %c2_115 = arith.constant 2 : index
    %c0_116 = arith.constant 0 : index
    %c0_117 = arith.constant 0 : index
    %168 = vector.load %arg6[%c2_115, %c0_116, %c0_117] : memref<4x32x1xf32, #tpu.memory_space<vmem>>, vector<1x32x1xf32>
    %169 = vector.shape_cast %168 : vector<1x32x1xf32> to vector<32x1xf32>
    %c10_i32_118 = arith.constant 10 : i32
    %170 = tpu.dynamic_rotate %165 by %c10_i32_118 dim 1 : vector<32x192xf32>, i32 -> vector<32x192xf32>
    %c0_119 = arith.constant 0 : index
    %c0_120 = arith.constant 0 : index
    %c0_121 = arith.constant 0 : index
    %171 = vector.load %arg2[%c0_119, %c0_120, %c0_121] : memref<9x1x192xf32, #tpu.memory_space<vmem>>, vector<1x1x192xf32>
    %172 = vector.shape_cast %171 : vector<1x1x192xf32> to vector<1x192xf32>
    %173 = vector.broadcast %172 : vector<1x192xf32> to vector<32x192xf32>
    %174 = arith.mulf %170, %173 : vector<32x192xf32>
    %c9_i32_122 = arith.constant 9 : i32
    %175 = tpu.dynamic_rotate %165 by %c9_i32_122 dim 1 : vector<32x192xf32>, i32 -> vector<32x192xf32>
    %c1_123 = arith.constant 1 : index
    %c0_124 = arith.constant 0 : index
    %c0_125 = arith.constant 0 : index
    %176 = vector.load %arg2[%c1_123, %c0_124, %c0_125] : memref<9x1x192xf32, #tpu.memory_space<vmem>>, vector<1x1x192xf32>
    %177 = vector.shape_cast %176 : vector<1x1x192xf32> to vector<1x192xf32>
    %178 = vector.broadcast %177 : vector<1x192xf32> to vector<32x192xf32>
    %179 = arith.mulf %175, %178 : vector<32x192xf32>
    %c8_i32_126 = arith.constant 8 : i32
    %180 = tpu.dynamic_rotate %165 by %c8_i32_126 dim 1 : vector<32x192xf32>, i32 -> vector<32x192xf32>
    %c2_127 = arith.constant 2 : index
    %c0_128 = arith.constant 0 : index
    %c0_129 = arith.constant 0 : index
    %181 = vector.load %arg2[%c2_127, %c0_128, %c0_129] : memref<9x1x192xf32, #tpu.memory_space<vmem>>, vector<1x1x192xf32>
    %182 = vector.shape_cast %181 : vector<1x1x192xf32> to vector<1x192xf32>
    %183 = vector.broadcast %182 : vector<1x192xf32> to vector<32x192xf32>
    %184 = arith.mulf %180, %183 : vector<32x192xf32>
    %c1_i32_130 = arith.constant 1 : i32
    %185 = tpu.dynamic_rotate %165 by %c1_i32_130 dim 1 : vector<32x192xf32>, i32 -> vector<32x192xf32>
    %c3_131 = arith.constant 3 : index
    %c0_132 = arith.constant 0 : index
    %c0_133 = arith.constant 0 : index
    %186 = vector.load %arg2[%c3_131, %c0_132, %c0_133] : memref<9x1x192xf32, #tpu.memory_space<vmem>>, vector<1x1x192xf32>
    %187 = vector.shape_cast %186 : vector<1x1x192xf32> to vector<1x192xf32>
    %188 = vector.broadcast %187 : vector<1x192xf32> to vector<32x192xf32>
    %189 = arith.mulf %185, %188 : vector<32x192xf32>
    %c4_134 = arith.constant 4 : index
    %c0_135 = arith.constant 0 : index
    %c0_136 = arith.constant 0 : index
    %190 = vector.load %arg2[%c4_134, %c0_135, %c0_136] : memref<9x1x192xf32, #tpu.memory_space<vmem>>, vector<1x1x192xf32>
    %191 = vector.shape_cast %190 : vector<1x1x192xf32> to vector<1x192xf32>
    %192 = vector.broadcast %191 : vector<1x192xf32> to vector<32x192xf32>
    %193 = arith.mulf %165, %192 : vector<32x192xf32>
    %c191_i32_137 = arith.constant 191 : i32
    %194 = tpu.dynamic_rotate %165 by %c191_i32_137 dim 1 : vector<32x192xf32>, i32 -> vector<32x192xf32>
    %c5_138 = arith.constant 5 : index
    %c0_139 = arith.constant 0 : index
    %c0_140 = arith.constant 0 : index
    %195 = vector.load %arg2[%c5_138, %c0_139, %c0_140] : memref<9x1x192xf32, #tpu.memory_space<vmem>>, vector<1x1x192xf32>
    %196 = vector.shape_cast %195 : vector<1x1x192xf32> to vector<1x192xf32>
    %197 = vector.broadcast %196 : vector<1x192xf32> to vector<32x192xf32>
    %198 = arith.mulf %194, %197 : vector<32x192xf32>
    %c184_i32_141 = arith.constant 184 : i32
    %199 = tpu.dynamic_rotate %165 by %c184_i32_141 dim 1 : vector<32x192xf32>, i32 -> vector<32x192xf32>
    %c6_142 = arith.constant 6 : index
    %c0_143 = arith.constant 0 : index
    %c0_144 = arith.constant 0 : index
    %200 = vector.load %arg2[%c6_142, %c0_143, %c0_144] : memref<9x1x192xf32, #tpu.memory_space<vmem>>, vector<1x1x192xf32>
    %201 = vector.shape_cast %200 : vector<1x1x192xf32> to vector<1x192xf32>
    %202 = vector.broadcast %201 : vector<1x192xf32> to vector<32x192xf32>
    %203 = arith.mulf %199, %202 : vector<32x192xf32>
    %c183_i32_145 = arith.constant 183 : i32
    %204 = tpu.dynamic_rotate %165 by %c183_i32_145 dim 1 : vector<32x192xf32>, i32 -> vector<32x192xf32>
    %c7_146 = arith.constant 7 : index
    %c0_147 = arith.constant 0 : index
    %c0_148 = arith.constant 0 : index
    %205 = vector.load %arg2[%c7_146, %c0_147, %c0_148] : memref<9x1x192xf32, #tpu.memory_space<vmem>>, vector<1x1x192xf32>
    %206 = vector.shape_cast %205 : vector<1x1x192xf32> to vector<1x192xf32>
    %207 = vector.broadcast %206 : vector<1x192xf32> to vector<32x192xf32>
    %208 = arith.mulf %204, %207 : vector<32x192xf32>
    %c182_i32_149 = arith.constant 182 : i32
    %209 = tpu.dynamic_rotate %165 by %c182_i32_149 dim 1 : vector<32x192xf32>, i32 -> vector<32x192xf32>
    %c8_150 = arith.constant 8 : index
    %c0_151 = arith.constant 0 : index
    %c0_152 = arith.constant 0 : index
    %210 = vector.load %arg2[%c8_150, %c0_151, %c0_152] : memref<9x1x192xf32, #tpu.memory_space<vmem>>, vector<1x1x192xf32>
    %211 = vector.shape_cast %210 : vector<1x1x192xf32> to vector<1x192xf32>
    %212 = vector.broadcast %211 : vector<1x192xf32> to vector<32x192xf32>
    %213 = arith.mulf %209, %212 : vector<32x192xf32>
    %214 = tpu.concatenate %174, %179, %184, %189, %193, %198, %203, %208, %213 in 0 : vector<32x192xf32>, vector<32x192xf32>, vector<32x192xf32>, vector<32x192xf32>, vector<32x192xf32>, vector<32x192xf32>, vector<32x192xf32>, vector<32x192xf32>, vector<32x192xf32> -> vector<288x192xf32>
    %215 = arith.truncf %214 : vector<288x192xf32> to vector<288x192xbf16>
    %cst_153 = arith.constant dense<0.000000e+00> : vector<32x192xf32>
    %216 = tpu.matmul %167, %215, %cst_153 {dimension_numbers = #tpu.dot_dimension_numbers<[1], [0], [0], [1], [0, 0, 1, 1], [], []>} : vector<32x288xbf16>, vector<288x192xbf16>, vector<32x192xf32> -> vector<32x192xf32>
    %217 = vector.broadcast %169 : vector<32x1xf32> to vector<32x192xf32>
    %218 = arith.addf %216, %217 : vector<32x192xf32>
    %cst_154 = arith.constant 0.000000e+00 : f32
    %219 = vector.broadcast %cst_154 : f32 to vector<32x192xf32>
    %220 = arith.maximumf %218, %219 : vector<32x192xf32>
    %c3_155 = arith.constant 3 : index
    %c0_156 = arith.constant 0 : index
    %c0_157 = arith.constant 0 : index
    %221 = vector.load %arg5[%c3_155, %c0_156, %c0_157] : memref<4x32x288xbf16, #tpu.memory_space<vmem>>, vector<1x32x288xbf16>
    %222 = vector.shape_cast %221 : vector<1x32x288xbf16> to vector<32x288xbf16>
    %c3_158 = arith.constant 3 : index
    %c0_159 = arith.constant 0 : index
    %c0_160 = arith.constant 0 : index
    %223 = vector.load %arg6[%c3_158, %c0_159, %c0_160] : memref<4x32x1xf32, #tpu.memory_space<vmem>>, vector<1x32x1xf32>
    %224 = vector.shape_cast %223 : vector<1x32x1xf32> to vector<32x1xf32>
    %c10_i32_161 = arith.constant 10 : i32
    %225 = tpu.dynamic_rotate %220 by %c10_i32_161 dim 1 : vector<32x192xf32>, i32 -> vector<32x192xf32>
    %c0_162 = arith.constant 0 : index
    %c0_163 = arith.constant 0 : index
    %c0_164 = arith.constant 0 : index
    %226 = vector.load %arg2[%c0_162, %c0_163, %c0_164] : memref<9x1x192xf32, #tpu.memory_space<vmem>>, vector<1x1x192xf32>
    %227 = vector.shape_cast %226 : vector<1x1x192xf32> to vector<1x192xf32>
    %228 = vector.broadcast %227 : vector<1x192xf32> to vector<32x192xf32>
    %229 = arith.mulf %225, %228 : vector<32x192xf32>
    %c9_i32_165 = arith.constant 9 : i32
    %230 = tpu.dynamic_rotate %220 by %c9_i32_165 dim 1 : vector<32x192xf32>, i32 -> vector<32x192xf32>
    %c1_166 = arith.constant 1 : index
    %c0_167 = arith.constant 0 : index
    %c0_168 = arith.constant 0 : index
    %231 = vector.load %arg2[%c1_166, %c0_167, %c0_168] : memref<9x1x192xf32, #tpu.memory_space<vmem>>, vector<1x1x192xf32>
    %232 = vector.shape_cast %231 : vector<1x1x192xf32> to vector<1x192xf32>
    %233 = vector.broadcast %232 : vector<1x192xf32> to vector<32x192xf32>
    %234 = arith.mulf %230, %233 : vector<32x192xf32>
    %c8_i32_169 = arith.constant 8 : i32
    %235 = tpu.dynamic_rotate %220 by %c8_i32_169 dim 1 : vector<32x192xf32>, i32 -> vector<32x192xf32>
    %c2_170 = arith.constant 2 : index
    %c0_171 = arith.constant 0 : index
    %c0_172 = arith.constant 0 : index
    %236 = vector.load %arg2[%c2_170, %c0_171, %c0_172] : memref<9x1x192xf32, #tpu.memory_space<vmem>>, vector<1x1x192xf32>
    %237 = vector.shape_cast %236 : vector<1x1x192xf32> to vector<1x192xf32>
    %238 = vector.broadcast %237 : vector<1x192xf32> to vector<32x192xf32>
    %239 = arith.mulf %235, %238 : vector<32x192xf32>
    %c1_i32_173 = arith.constant 1 : i32
    %240 = tpu.dynamic_rotate %220 by %c1_i32_173 dim 1 : vector<32x192xf32>, i32 -> vector<32x192xf32>
    %c3_174 = arith.constant 3 : index
    %c0_175 = arith.constant 0 : index
    %c0_176 = arith.constant 0 : index
    %241 = vector.load %arg2[%c3_174, %c0_175, %c0_176] : memref<9x1x192xf32, #tpu.memory_space<vmem>>, vector<1x1x192xf32>
    %242 = vector.shape_cast %241 : vector<1x1x192xf32> to vector<1x192xf32>
    %243 = vector.broadcast %242 : vector<1x192xf32> to vector<32x192xf32>
    %244 = arith.mulf %240, %243 : vector<32x192xf32>
    %c4_177 = arith.constant 4 : index
    %c0_178 = arith.constant 0 : index
    %c0_179 = arith.constant 0 : index
    %245 = vector.load %arg2[%c4_177, %c0_178, %c0_179] : memref<9x1x192xf32, #tpu.memory_space<vmem>>, vector<1x1x192xf32>
    %246 = vector.shape_cast %245 : vector<1x1x192xf32> to vector<1x192xf32>
    %247 = vector.broadcast %246 : vector<1x192xf32> to vector<32x192xf32>
    %248 = arith.mulf %220, %247 : vector<32x192xf32>
    %c191_i32_180 = arith.constant 191 : i32
    %249 = tpu.dynamic_rotate %220 by %c191_i32_180 dim 1 : vector<32x192xf32>, i32 -> vector<32x192xf32>
    %c5_181 = arith.constant 5 : index
    %c0_182 = arith.constant 0 : index
    %c0_183 = arith.constant 0 : index
    %250 = vector.load %arg2[%c5_181, %c0_182, %c0_183] : memref<9x1x192xf32, #tpu.memory_space<vmem>>, vector<1x1x192xf32>
    %251 = vector.shape_cast %250 : vector<1x1x192xf32> to vector<1x192xf32>
    %252 = vector.broadcast %251 : vector<1x192xf32> to vector<32x192xf32>
    %253 = arith.mulf %249, %252 : vector<32x192xf32>
    %c184_i32_184 = arith.constant 184 : i32
    %254 = tpu.dynamic_rotate %220 by %c184_i32_184 dim 1 : vector<32x192xf32>, i32 -> vector<32x192xf32>
    %c6_185 = arith.constant 6 : index
    %c0_186 = arith.constant 0 : index
    %c0_187 = arith.constant 0 : index
    %255 = vector.load %arg2[%c6_185, %c0_186, %c0_187] : memref<9x1x192xf32, #tpu.memory_space<vmem>>, vector<1x1x192xf32>
    %256 = vector.shape_cast %255 : vector<1x1x192xf32> to vector<1x192xf32>
    %257 = vector.broadcast %256 : vector<1x192xf32> to vector<32x192xf32>
    %258 = arith.mulf %254, %257 : vector<32x192xf32>
    %c183_i32_188 = arith.constant 183 : i32
    %259 = tpu.dynamic_rotate %220 by %c183_i32_188 dim 1 : vector<32x192xf32>, i32 -> vector<32x192xf32>
    %c7_189 = arith.constant 7 : index
    %c0_190 = arith.constant 0 : index
    %c0_191 = arith.constant 0 : index
    %260 = vector.load %arg2[%c7_189, %c0_190, %c0_191] : memref<9x1x192xf32, #tpu.memory_space<vmem>>, vector<1x1x192xf32>
    %261 = vector.shape_cast %260 : vector<1x1x192xf32> to vector<1x192xf32>
    %262 = vector.broadcast %261 : vector<1x192xf32> to vector<32x192xf32>
    %263 = arith.mulf %259, %262 : vector<32x192xf32>
    %c182_i32_192 = arith.constant 182 : i32
    %264 = tpu.dynamic_rotate %220 by %c182_i32_192 dim 1 : vector<32x192xf32>, i32 -> vector<32x192xf32>
    %c8_193 = arith.constant 8 : index
    %c0_194 = arith.constant 0 : index
    %c0_195 = arith.constant 0 : index
    %265 = vector.load %arg2[%c8_193, %c0_194, %c0_195] : memref<9x1x192xf32, #tpu.memory_space<vmem>>, vector<1x1x192xf32>
    %266 = vector.shape_cast %265 : vector<1x1x192xf32> to vector<1x192xf32>
    %267 = vector.broadcast %266 : vector<1x192xf32> to vector<32x192xf32>
    %268 = arith.mulf %264, %267 : vector<32x192xf32>
    %269 = tpu.concatenate %229, %234, %239, %244, %248, %253, %258, %263, %268 in 0 : vector<32x192xf32>, vector<32x192xf32>, vector<32x192xf32>, vector<32x192xf32>, vector<32x192xf32>, vector<32x192xf32>, vector<32x192xf32>, vector<32x192xf32>, vector<32x192xf32> -> vector<288x192xf32>
    %270 = arith.truncf %269 : vector<288x192xf32> to vector<288x192xbf16>
    %cst_196 = arith.constant dense<0.000000e+00> : vector<32x192xf32>
    %271 = tpu.matmul %222, %270, %cst_196 {dimension_numbers = #tpu.dot_dimension_numbers<[1], [0], [0], [1], [0, 0, 1, 1], [], []>} : vector<32x288xbf16>, vector<288x192xbf16>, vector<32x192xf32> -> vector<32x192xf32>
    %272 = vector.broadcast %224 : vector<32x1xf32> to vector<32x192xf32>
    %273 = arith.addf %271, %272 : vector<32x192xf32>
    %274 = arith.addf %273, %165 : vector<32x192xf32>
    %cst_197 = arith.constant 0.000000e+00 : f32
    %275 = vector.broadcast %cst_197 : f32 to vector<32x192xf32>
    %276 = arith.maximumf %274, %275 : vector<32x192xf32>
    %c0_198 = arith.constant 0 : index
    %c0_199 = arith.constant 0 : index
    %277 = vector.load %arg7[%c0_198, %c0_199] : memref<3x32xf32, #tpu.memory_space<vmem>>, vector<3x32xf32>
    %cst_200 = arith.constant dense<0.000000e+00> : vector<3x192xf32>
    %278 = tpu.matmul %277, %276, %cst_200 {dimension_numbers = #tpu.dot_dimension_numbers<[1], [0], [0], [1], [0, 0, 1, 1], [], []>} : vector<3x32xf32>, vector<32x192xf32>, vector<3x192xf32> -> vector<3x192xf32>
    %c0_201 = arith.constant 0 : index
    %c0_202 = arith.constant 0 : index
    %279 = vector.load %arg8[%c0_201, %c0_202] : memref<3x1xf32, #tpu.memory_space<vmem>>, vector<3x1xf32>
    %280 = vector.broadcast %279 : vector<3x1xf32> to vector<3x192xf32>
    %281 = arith.addf %278, %280 : vector<3x192xf32>
    %cst_203 = arith.constant 0.000000e+00 : f32
    %282 = vector.broadcast %cst_203 : f32 to vector<3x192xf32>
    %283 = arith.maximumf %281, %282 : vector<3x192xf32>
    %c0_204 = arith.constant 0 : index
    %c0_205 = arith.constant 0 : index
    %284 = vector.load %arg9[%c0_204, %c0_205] : memref<2x192xf32, #tpu.memory_space<vmem>>, vector<2x192xf32>
    %285 = vector.extract_strided_slice %283 {offsets = [0, 0], sizes = [1, 192], strides = [1, 1]} : vector<3x192xf32> to vector<1x192xf32>
    %286 = vector.broadcast %285 : vector<1x192xf32> to vector<2x192xf32>
    %287 = arith.mulf %284, %286 : vector<2x192xf32>
    %c0_206 = arith.constant 0 : index
    %c0_207 = arith.constant 0 : index
    %288 = vector.load %arg10[%c0_206, %c0_207] : memref<192x256xf32, #tpu.memory_space<vmem>>, vector<192x256xf32>
    %cst_208 = arith.constant dense<0.000000e+00> : vector<2x256xf32>
    %289 = tpu.matmul %287, %288, %cst_208 {dimension_numbers = #tpu.dot_dimension_numbers<[1], [0], [0], [1], [0, 0, 1, 1], [], []>} : vector<2x192xf32>, vector<192x256xf32>, vector<2x256xf32> -> vector<2x256xf32>
    %c0_209 = arith.constant 0 : index
    %c0_210 = arith.constant 0 : index
    %290 = vector.load %arg11[%c0_209, %c0_210] : memref<1x256xf32, #tpu.memory_space<vmem>>, vector<1x256xf32>
    %291 = vector.broadcast %290 : vector<1x256xf32> to vector<2x256xf32>
    %292 = arith.addf %289, %291 : vector<2x256xf32>
    %cst_211 = arith.constant 0.000000e+00 : f32
    %293 = vector.broadcast %cst_211 : f32 to vector<2x256xf32>
    %294 = arith.maximumf %292, %293 : vector<2x256xf32>
    %c0_212 = arith.constant 0 : index
    %c0_213 = arith.constant 0 : index
    %295 = vector.load %arg12[%c0_212, %c0_213] : memref<256x1xf32, #tpu.memory_space<vmem>>, vector<256x1xf32>
    %cst_214 = arith.constant dense<0.000000e+00> : vector<2x1xf32>
    %296 = tpu.matmul %294, %295, %cst_214 {dimension_numbers = #tpu.dot_dimension_numbers<[1], [0], [0], [1], [0, 0, 1, 1], [], []>} : vector<2x256xf32>, vector<256x1xf32>, vector<2x1xf32> -> vector<2x1xf32>
    %c0_215 = arith.constant 0 : index
    %c0_216 = arith.constant 0 : index
    %297 = vector.load %arg13[%c0_215, %c0_216] : memref<1x1xf32, #tpu.memory_space<vmem>>, vector<1x1xf32>
    %298 = vector.broadcast %297 : vector<1x1xf32> to vector<2x1xf32>
    %299 = arith.addf %296, %298 : vector<2x1xf32>
    %300 = math.tanh %299 : vector<2x1xf32>
    %301 = vector.extract_strided_slice %283 {offsets = [1, 0], sizes = [1, 192], strides = [1, 1]} : vector<3x192xf32> to vector<1x192xf32>
    %302 = vector.broadcast %301 : vector<1x192xf32> to vector<2x192xf32>
    %303 = arith.mulf %284, %302 : vector<2x192xf32>
    %c0_217 = arith.constant 0 : index
    %c0_218 = arith.constant 0 : index
    %c0_219 = arith.constant 0 : index
    %304 = vector.load %arg14[%c0_217, %c0_218, %c0_219] : memref<2x192x256xf32, #tpu.memory_space<vmem>>, vector<1x192x256xf32>
    %305 = vector.shape_cast %304 : vector<1x192x256xf32> to vector<192x256xf32>
    %cst_220 = arith.constant dense<0.000000e+00> : vector<2x256xf32>
    %306 = tpu.matmul %303, %305, %cst_220 {dimension_numbers = #tpu.dot_dimension_numbers<[1], [0], [0], [1], [0, 0, 1, 1], [], []>} : vector<2x192xf32>, vector<192x256xf32>, vector<2x256xf32> -> vector<2x256xf32>
    %307 = vector.extract_strided_slice %283 {offsets = [2, 0], sizes = [1, 192], strides = [1, 1]} : vector<3x192xf32> to vector<1x192xf32>
    %308 = vector.broadcast %307 : vector<1x192xf32> to vector<2x192xf32>
    %309 = arith.mulf %284, %308 : vector<2x192xf32>
    %c1_221 = arith.constant 1 : index
    %c0_222 = arith.constant 0 : index
    %c0_223 = arith.constant 0 : index
    %310 = vector.load %arg14[%c1_221, %c0_222, %c0_223] : memref<2x192x256xf32, #tpu.memory_space<vmem>>, vector<1x192x256xf32>
    %311 = vector.shape_cast %310 : vector<1x192x256xf32> to vector<192x256xf32>
    %cst_224 = arith.constant dense<0.000000e+00> : vector<2x256xf32>
    %312 = tpu.matmul %309, %311, %cst_224 {dimension_numbers = #tpu.dot_dimension_numbers<[1], [0], [0], [1], [0, 0, 1, 1], [], []>} : vector<2x192xf32>, vector<192x256xf32>, vector<2x256xf32> -> vector<2x256xf32>
    %313 = arith.addf %306, %312 : vector<2x256xf32>
    %c0_225 = arith.constant 0 : index
    %c0_226 = arith.constant 0 : index
    %314 = vector.load %arg15[%c0_225, %c0_226] : memref<1x256xf32, #tpu.memory_space<vmem>>, vector<1x256xf32>
    %315 = vector.broadcast %314 : vector<1x256xf32> to vector<2x256xf32>
    %316 = arith.addf %313, %315 : vector<2x256xf32>
    %cst_227 = arith.constant 0.000000e+00 : f32
    %317 = vector.broadcast %cst_227 : f32 to vector<2x256xf32>
    %318 = arith.maximumf %316, %317 : vector<2x256xf32>
    %c0_228 = arith.constant 0 : index
    %c0_229 = arith.constant 0 : index
    %319 = vector.load %arg16[%c0_228, %c0_229] : memref<256x128xf32, #tpu.memory_space<vmem>>, vector<256x128xf32>
    %cst_230 = arith.constant dense<0.000000e+00> : vector<2x128xf32>
    %320 = tpu.matmul %318, %319, %cst_230 {dimension_numbers = #tpu.dot_dimension_numbers<[1], [0], [0], [1], [0, 0, 1, 1], [], []>} : vector<2x256xf32>, vector<256x128xf32>, vector<2x128xf32> -> vector<2x128xf32>
    %c0_231 = arith.constant 0 : index
    %c0_232 = arith.constant 0 : index
    %321 = vector.load %arg17[%c0_231, %c0_232] : memref<1x128xf32, #tpu.memory_space<vmem>>, vector<1x128xf32>
    %322 = vector.broadcast %321 : vector<1x128xf32> to vector<2x128xf32>
    %323 = arith.addf %320, %322 : vector<2x128xf32>
    %cst_233 = arith.constant dense<0.000000e+00> : vector<2xf32>
    %324 = vector.multi_reduction <add>, %323, %cst_233 [1] : vector<2x128xf32> to vector<2xf32>
    %325 = vector.shape_cast %324 : vector<2xf32> to vector<2x1xf32>
    %cst_234 = arith.constant 0.0121951215 : f32
    %326 = vector.broadcast %cst_234 : f32 to vector<2x1xf32>
    %327 = arith.mulf %325, %326 : vector<2x1xf32>
    %328 = vector.broadcast %327 : vector<2x1xf32> to vector<2x128xf32>
    %329 = arith.subf %323, %328 : vector<2x128xf32>
    %330 = vector.broadcast %300 : vector<2x1xf32> to vector<2x128xf32>
    %331 = arith.addf %330, %329 : vector<2x128xf32>
    %c0_235 = arith.constant 0 : index
    %c0_236 = arith.constant 0 : index
    %332 = vector.load %arg18[%c0_235, %c0_236] : memref<2x128xf32, #tpu.memory_space<vmem>>, vector<2x128xf32>
    tpu.vector_store %arg18[%c0_235, %c0_236], %331 {strides = array<i32>} : memref<2x128xf32, #tpu.memory_space<vmem>>, vector<2x128xf32>,
    %c0_237 = arith.constant 0 : index
    %c0_238 = arith.constant 0 : index
    %333 = vector.load %arg19[%c0_237, %c0_238] : memref<2x1xf32, #tpu.memory_space<vmem>>, vector<2x1xf32>
    tpu.vector_store %arg19[%c0_237, %c0_238], %300 {strides = array<i32>} : memref<2x1xf32, #tpu.memory_space<vmem>>, vector<2x1xf32>,
    %c0_239 = arith.constant 0 : index
    %c0_240 = arith.constant 0 : index
    %334 = vector.load %arg20[%c0_239, %c0_240] : memref<2x128xf32, #tpu.memory_space<vmem>>, vector<2x128xf32>
    tpu.vector_store %arg20[%c0_239, %c0_240], %323 {strides = array<i32>} : memref<2x128xf32, #tpu.memory_space<vmem>>, vector<2x128xf32>,
    return
  }
  func.func @transform_0(%arg0: i32) -> (i32, i32, i32) {
    %c0_i32 = arith.constant 0 : i32
    %c0_i32_0 = arith.constant 0 : i32
    %c0_i32_1 = arith.constant 0 : i32
    return %arg0, %c0_i32, %c0_i32_0 : i32, i32, i32
  }
  func.func @transform_1(%arg0: i32) -> (i32, i32, i32) {
    %c0_i32 = arith.constant 0 : i32
    %c0_i32_0 = arith.constant 0 : i32
    %c0_i32_1 = arith.constant 0 : i32
    %c0_i32_2 = arith.constant 0 : i32
    return %c0_i32, %c0_i32_0, %c0_i32_1 : i32, i32, i32
  }
  func.func @transform_2(%arg0: i32) -> (i32, i32) {
    %c0_i32 = arith.constant 0 : i32
    %c0_i32_0 = arith.constant 0 : i32
    %c0_i32_1 = arith.constant 0 : i32
    return %c0_i32, %c0_i32_0 : i32, i32
  }
  func.func @transform_3(%arg0: i32) -> (i32, i32) {
    %c0_i32 = arith.constant 0 : i32
    %c0_i32_0 = arith.constant 0 : i32
    %c0_i32_1 = arith.constant 0 : i32
    return %c0_i32, %c0_i32_0 : i32, i32
  }
  func.func @transform_4(%arg0: i32) -> (i32, i32, i32) {
    %c0_i32 = arith.constant 0 : i32
    %c0_i32_0 = arith.constant 0 : i32
    %c0_i32_1 = arith.constant 0 : i32
    %c0_i32_2 = arith.constant 0 : i32
    return %c0_i32, %c0_i32_0, %c0_i32_1 : i32, i32, i32
  }
  func.func @transform_5(%arg0: i32) -> (i32, i32, i32) {
    %c0_i32 = arith.constant 0 : i32
    %c0_i32_0 = arith.constant 0 : i32
    %c0_i32_1 = arith.constant 0 : i32
    %c0_i32_2 = arith.constant 0 : i32
    return %c0_i32, %c0_i32_0, %c0_i32_1 : i32, i32, i32
  }
  func.func @transform_6(%arg0: i32) -> (i32, i32) {
    %c0_i32 = arith.constant 0 : i32
    %c0_i32_0 = arith.constant 0 : i32
    %c0_i32_1 = arith.constant 0 : i32
    return %c0_i32, %c0_i32_0 : i32, i32
  }
  func.func @transform_7(%arg0: i32) -> (i32, i32) {
    %c0_i32 = arith.constant 0 : i32
    %c0_i32_0 = arith.constant 0 : i32
    %c0_i32_1 = arith.constant 0 : i32
    return %c0_i32, %c0_i32_0 : i32, i32
  }
  func.func @transform_8(%arg0: i32) -> (i32, i32) {
    %c0_i32 = arith.constant 0 : i32
    %c0_i32_0 = arith.constant 0 : i32
    %c0_i32_1 = arith.constant 0 : i32
    return %c0_i32, %c0_i32_0 : i32, i32
  }
  func.func @transform_9(%arg0: i32) -> (i32, i32) {
    %c0_i32 = arith.constant 0 : i32
    %c0_i32_0 = arith.constant 0 : i32
    %c0_i32_1 = arith.constant 0 : i32
    return %c0_i32, %c0_i32_0 : i32, i32
  }
  func.func @transform_10(%arg0: i32) -> (i32, i32) {
    %c0_i32 = arith.constant 0 : i32
    %c0_i32_0 = arith.constant 0 : i32
    %c0_i32_1 = arith.constant 0 : i32
    return %c0_i32, %c0_i32_0 : i32, i32
  }
  func.func @transform_11(%arg0: i32) -> (i32, i32) {
    %c0_i32 = arith.constant 0 : i32
    %c0_i32_0 = arith.constant 0 : i32
    %c0_i32_1 = arith.constant 0 : i32
    return %c0_i32, %c0_i32_0 : i32, i32
  }
  func.func @transform_12(%arg0: i32) -> (i32, i32) {
    %c0_i32 = arith.constant 0 : i32
    %c0_i32_0 = arith.constant 0 : i32
    %c0_i32_1 = arith.constant 0 : i32
    return %c0_i32, %c0_i32_0 : i32, i32
  }
  func.func @transform_13(%arg0: i32) -> (i32, i32, i32) {
    %c0_i32 = arith.constant 0 : i32
    %c0_i32_0 = arith.constant 0 : i32
    %c0_i32_1 = arith.constant 0 : i32
    %c0_i32_2 = arith.constant 0 : i32
    return %c0_i32, %c0_i32_0, %c0_i32_1 : i32, i32, i32
  }
  func.func @transform_14(%arg0: i32) -> (i32, i32) {
    %c0_i32 = arith.constant 0 : i32
    %c0_i32_0 = arith.constant 0 : i32
    %c0_i32_1 = arith.constant 0 : i32
    return %c0_i32, %c0_i32_0 : i32, i32
  }
  func.func @transform_15(%arg0: i32) -> (i32, i32) {
    %c0_i32 = arith.constant 0 : i32
    %c0_i32_0 = arith.constant 0 : i32
    %c0_i32_1 = arith.constant 0 : i32
    return %c0_i32, %c0_i32_0 : i32, i32
  }
  func.func @transform_16(%arg0: i32) -> (i32, i32) {
    %c0_i32 = arith.constant 0 : i32
    %c0_i32_0 = arith.constant 0 : i32
    %c0_i32_1 = arith.constant 0 : i32
    return %c0_i32, %c0_i32_0 : i32, i32
  }
  func.func @transform_17(%arg0: i32) -> (i32, i32) {
    %c0_i32 = arith.constant 0 : i32
    %c0_i32_0 = arith.constant 0 : i32
    return %arg0, %c0_i32 : i32, i32
  }
  func.func @transform_18(%arg0: i32) -> (i32, i32) {
    %c0_i32 = arith.constant 0 : i32
    %c0_i32_0 = arith.constant 0 : i32
    return %arg0, %c0_i32 : i32, i32
  }
  func.func @transform_19(%arg0: i32) -> (i32, i32) {
    %c0_i32 = arith.constant 0 : i32
    %c0_i32_0 = arith.constant 0 : i32
    return %arg0, %c0_i32 : i32, i32
  }
}

</mosaic_0001>

<bundles_post_ra>
// kernel: fused_forward.1
= control target key start
LH: loop header
LB: loop body
LE: loop exit
PB: predicated region body
PF: predicated region fallthrough
CT: control target
= control target key end

     0   :  { %s8219_s0 = inlined_call_operand.vmem [shape: f32[1,8,192], index: 0, kind: input, shape index: {}]   ;;  %s8220_s1 = inlined_call_operand.vmem [shape: f32[9,1,192], index: 1, kind: input, shape index: {}]   ;;  %s8221_s2 = inlined_call_operand.vmem [shape: bf16[32,72], index: 2, kind: input, shape index: {}]   ;;  %s8222_s3 = inlined_call_operand.vmem [shape: f32[32,1], index: 3, kind: input, shape index: {}]   ;;  %s8223_s4 = inlined_call_operand.vmem [shape: bf16[4,32,288], index: 4, kind: input, shape index: {}]   ;;  %s8224_s5 = inlined_call_operand.vmem [shape: f32[4,32,1], index: 5, kind: input, shape index: {}]   ;;  %s8225_s6 = inlined_call_operand.vmem [shape: f32[3,32], index: 6, kind: input, shape index: {}]   ;;  %s8226_s7 = inlined_call_operand.vmem [shape: f32[3,1], index: 7, kind: input, shape index: {}]   ;;  %s8227_s8 = inlined_call_operand.vmem [shape: f32[2,192], index: 8, kind: input, shape index: {}]   ;;  %s8228_s9 = inlined_call_operand.vmem [shape: f32[192,256], index: 9, kind: input, shape index: {}]   ;;  %s8229_s10 = inlined_call_operand.vmem [shape: f32[1,256], index: 10, kind: input, shape index: {}]   ;;  %s8230_s11 = inlined_call_operand.vmem [shape: f32[256,1], index: 11, kind: input, shape index: {}]   ;;  %s8231_s12 = inlined_call_operand.<no memory space> [shape: f32[1,1], index: 12, kind: input, shape index: {}]   ;;  %s8232_s13 = inlined_call_operand.vmem [shape: f32[2,192,256], index: 13, kind: input, shape index: {}]   ;;  %s8233_s14 = inlined_call_operand.vmem [shape: f32[1,256], index: 14, kind: input, shape index: {}]   ;;  %s8234_s15 = inlined_call_operand.vmem [shape: f32[256,128], index: 15, kind: input, shape index: {}]   ;;  %s8235_s16 = inlined_call_operand.vmem [shape: f32[1,128], index: 16, kind: input, shape index: {}]   ;;  %s8236_s17 = inlined_call_operand.hbm [shape: f32[2,128], index: 17, kind: output, shape index: {0}]   ;;  %s8237_s18 = inlined_call_operand.vmem [shape: f32[2,1], index: 18, kind: output, shape index: {1}]   ;;  %s8238_s19 = inlined_call_operand.hbm [shape: f32[2,128], index: 19, kind: output, shape index: {2}]  }
   0x1   :  { %8339 = sst [smem:[#allocation44_spill]] %s8219_s0  ;;  %v25_v0 = vstv %s8231_s12 }
   0x2   :  { %8340 = sst [smem:[#allocation45_spill]] %s8220_s1  ;;  %26 = vst [vmem:[#allocation2] sm:$0x1] %v25_v0 }
   0x3   :  { %8341 = sst [smem:[#allocation46_spill]] %s8221_s2 }
   0x4   :  { %8342 = sst [smem:[#allocation47_spill]] %s8222_s3 }
   0x5   :  { %27 = vsyncpa [#allocation4], 0  ;;  %s8343_s1 = sld [smem:[#allocation44_spill]]  ;;  %v83_v2 = vlaneseq  ;;  %s5405_s22 = smov 64  }
   0x6   :  { %s8345_s24 = sld [smem:[#allocation45_spill]]  ;;  %s5406_s27 = smov 10  }
   0x7   :  { %v5537_v3 = vshrl.u32 %v83_v2, 7  ;;  %s5407_s0 = smov 8   ;;  %s5408_s21 = smov 9  }
   0x9   :  { %8344 = vst [vmem:[#allocation9_spill] sm:$0xff] %v5537_v3  ;;  %v5543_v5 = vsub.s32 1, %v5537_v3  ;;  %v5546_v6 = vsub.s32 0, %v5537_v3 }
   0xb   :  { %v5533_v1 = vld [vmem:[%s8343_s1] sm:$0xff]  ;;  %8346 = vst [vmem:[#allocation10_spill] sm:$0xff] %v5543_v5  ;;  %8347 = vst [vmem:[#allocation11_spill] sm:$0xff] %v5546_v6 }
   0xc   :  { %75 = vrot.lane.b32.xlu0 %v5533_v1, %s5405_s22  ;;  %v4423_v4 = vld [vmem:[%s8345_s24 + $0x10] sm:$0x3]  ;;  %v4421_v7 = vld [vmem:[%s8345_s24 + $0xc] sm:$0x3]  ;;  %v4422_v10 = vld [vmem:[%s8345_s24 + $0xe] sm:$0x3] }
   0xd   :  { %v252_v8 = vrot.slane %v4423_v4, %v5543_v5  ;;  %v248_v9 = vrot.slane %v4423_v4, %v5546_v6  ;;  %v206_v11 = vrot.slane %v4421_v7, %v5546_v6  ;;  %v210_v12 = vrot.slane %v4421_v7, %v5543_v5  ;;  %v4420_v13 = vld [vmem:[%s8345_s24 + $0xa] sm:$0x3]  ;;  %v4417_v16 = vld [vmem:[%s8345_s24 + $0x4] sm:$0x3] }
   0xe   :  { %v227_v14 = vrot.slane %v4422_v10, %v5546_v6  ;;  %v231_v15 = vrot.slane %v4422_v10, %v5543_v5  ;;  %v185_v17 = vrot.slane %v4420_v13, %v5546_v6  ;;  %v189_v18 = vrot.slane %v4420_v13, %v5543_v5 }
   0xf   :  { %255 = vrot.lane.b32.xlu1 %v252_v8, %s5406_s27 }
  0x10   :  { %253 = vrot.lane.b32.xlu0 %v248_v9, %s5406_s27 }
  0x13   :  { %211 = vrot.lane.b32.xlu1 %v206_v11, %s5407_s0 }
  0x14   :  { %213 = vrot.lane.b32.xlu0 %v210_v12, %s5407_s0 }
  0x17   :  { %232 = vrot.lane.b32.xlu1 %v227_v14, %s5408_s21 }
  0x18   :  { %234 = vrot.lane.b32.xlu0 %v231_v15, %s5408_s21 }
  0x19   :  { %28 = vsyncpa [#allocation6], 0  ;;  %s5409_s2 = smov 1   ;;  %v128_v19 = vrot.slane %v4417_v16, %v5546_v6  ;;  %v132_v20 = vrot.slane %v4417_v16, %v5543_v5  ;;  %v4418_v21 = vld [vmem:[%s8345_s24 + $0x6] sm:$0x3]  ;;  %s5410_s25 = smov 56  }
  0x1a   :  { %v149_v22 = vrot.slane %v4418_v21, %v5546_v6  ;;  %v153_v23 = vrot.slane %v4418_v21, %v5543_v5  ;;  %v4416_v24 = vld [vmem:[%s8345_s24 + $0x2] sm:$0x3]  ;;  %s5411_s27 = smov 63   ;;  %s5412_s28 = smov 55   ;;  %v4419_v26 = vld [vmem:[%s8345_s24 + $0x8] sm:$0x3] }
  0x1b   :  { %190 = vrot.lane.b32.xlu1 %v185_v17, %s5409_s2  ;;  %v107_v25 = vrot.slane %v4416_v24, %v5546_v6  ;;  %v65_v27 = vld [vmem:[%s8343_s1 + $0x8] sm:$0xff]  ;;  %vm74_vm0 = vcmask 1048064   ;;  %v5586_v28 = vrot.slane %v4419_v26, %v5546_v6  ;;  %v5589_v29 = vrot.slane %v4419_v26, %v5543_v5  ;;  %s8247_s1 = smov 54   ;;  %s8243_s21 = smov 44   ;;  %v81_v47 = vld [vmem:[%s8345_s24] sm:$0x3] }
  0x1c   :  { %192 = vrot.lane.b32.xlu0 %v189_v18, %s5409_s2  ;;  %v111_v32 = vrot.slane %v4416_v24, %v5543_v5  ;;  %vm257_vm1 = vcmask 80896   ;;  %vm215_vm2 = vcmask 64512   ;;  %vm236_vm3 = vcmask 72704   ;;  %s8305_s12 = smov 46   ;;  %s8307_s24 = smov 45  }
  0x1d   :  { %v177_v33 = vmul.f32 %v5586_v28, %v5533_v1  ;;  %v178_v34 = vmul.f32 %v5589_v29, %v65_v27  ;;  %vm194_vm4 = vcmask 7168   ;;  %v86_v54 = vrot.slane %v81_v47, %v5546_v6  ;;  %s5418_s3 = smov 119   ;;  %s8311_s26 = smov 126  }
  0x1e   :  { %vm137_vm5 = vcmask 457728   ;;  %vm158_vm6 = vcmask 515072   ;;  %vm116_vm7 = vcmask 449536   ;;  %v90_v18 = vrot.slane %v81_v47, %v5543_v5  ;;  %s8358_s30 = sld [smem:[#allocation47_spill]]  ;;  %s8369_s20 = smov 44  }
  0x1f   :  { %135 = vrot.lane.b32.xlu1 %v132_v20, %s5410_s25  ;;  %v4643_v35 = vpack.i.bf16 %v178_v34, %v177_v33  ;;  %vm338_vm8 = vcmask 359424   ;;  %vm318_vm9 = vcmask 375808   ;;  %vm328_vm10 = vcmask 367616   ;;  %s8370_s2 = smov 74   ;;  %s8396_s0 = smov 53  }
  0x20   :  { %133 = vrot.lane.b32.xlu0 %v128_v19, %s5410_s25  ;;  %s8251_s25 = smov 53   ;;  %vm95_vm11 = vcmask 441344   ;;  %vm308_vm12 = vcmask 433152   ;;  %vm279_vm13 = vcmask 1031168   ;;  %vm289_vm14 = vcmask 973824   ;;  %s8470_s23 = smov 127  }
  0x21   :  { %vm269_vm15 = vcmask 1039360  }
  0x23   :  { %156 = vrot.lane.b32.xlu1 %v153_v23, %s5411_s27 }
  0x24   :  { %154 = vrot.lane.b32.xlu0 %v149_v22, %s5411_s27  ;;  %s8309_s27 = smov 127  }
  0x28   :  { %112 = vrot.lane.b32.xlu0 %v107_v25, %s5412_s28 }
  0x7e   :  { %v76_v30 = vpop.permute.xlu0 %75 }
  0x7f   :  { %v5592_v31 = vsel %vm74_vm0, %v76_v30, %v65_v27 }
  0x80   :  { %78 = vrot.lane.b32.xlu1 %v5592_v31, %s5405_s22 }
  0x81   :  { %v256_v36 = vpop.permute.xlu1 %255 }
  0x82   :  { %v5600_v37 = vpop.permute.xlu0 %253 }
  0x83   :  { %8348 = vst [vmem:[#allocation12_spill] sm:$0xff] %v5600_v37  ;;  %v5603_v38 = vsel %vm257_vm1, %v5600_v37, %v256_v36  ;;  %v261_v39 = vmul.f32 %v5600_v37, %v5533_v1  ;;  %vm433_vm1 = vcmask 1043456  }
  0x84   :  { %114 = vrot.lane.b32.xlu1 %v111_v32, %s5412_s28  ;;  %8349 = vst [vmem:[#allocation13_spill] sm:$0xff] %v5603_v38  ;;  %v262_v40 = vmul.f32 %v5603_v38, %v5592_v31  ;;  %s8245_s28 = smov 74  }
  0x85   :  { %v5610_v41 = vpop.permute.xlu1 %211 }
  0x86   :  { %8350 = vst [vmem:[#allocation14_spill] sm:$0xff] %v5610_v41  ;;  %v214_v42 = vpop.permute.xlu0 %213  ;;  %v4648_v43 = vpack.i.bf16 %v262_v40, %v261_v39  ;;  %v219_v45 = vmul.f32 %v5610_v41, %v5533_v1 }
  0x87   :  { %v5613_v44 = vsel %vm215_vm2, %v5610_v41, %v214_v42  ;;  %vm412_vm2 = vcmask 605184  }
  0x88   :  { %4644 = vrot.lane.b32.xlu1 %v4643_v35, %s8247_s1  ;;  %8351 = vst [vmem:[#allocation15_spill] sm:$0xff] %v5613_v44  ;;  %4649 = vrot.lane.b32.xlu0 %v4648_v43, %s8243_s21  ;;  %v220_v46 = vmul.f32 %v5613_v44, %v5592_v31  ;;  %s8448_s21 = smov 45  }
  0x89   :  { %v5623_v48 = vpop.permute.xlu1 %232 }
  0x8a   :  { %8352 = vst [vmem:[#allocation16_spill] sm:$0xff] %v5623_v48  ;;  %v235_v49 = vpop.permute.xlu0 %234  ;;  %v4653_v50 = vpack.i.bf16 %v220_v46, %v219_v45  ;;  %v240_v52 = vmul.f32 %v5623_v48, %v5533_v1 }
  0x8b   :  { %v5626_v51 = vsel %vm236_vm3, %v5623_v48, %v235_v49  ;;  %vm426_vm3 = vcmask 588800  }
  0x8c   :  { %8353 = vst [vmem:[#allocation17_spill] sm:$0xff] %v5626_v51  ;;  %4654 = vrot.lane.b32.xlu1 %v4653_v50, %s8305_s12  ;;  %v241_v53 = vmul.f32 %v5626_v51, %v5592_v31 }
  0x8d   :  { %v5634_v55 = vpop.permute.xlu1 %190 }
  0x8e   :  { %8354 = vst [vmem:[#allocation18_spill] sm:$0xff] %v5634_v55  ;;  %v193_v56 = vpop.permute.xlu0 %192  ;;  %v4658_v57 = vpack.i.bf16 %v241_v53, %v240_v52  ;;  %v198_v59 = vmul.f32 %v5634_v55, %v5533_v1 }
  0x8f   :  { %v5637_v58 = vsel %vm194_vm4, %v5634_v55, %v193_v56  ;;  %vm1145_vm4 = vcmask 261120  }
  0x90   :  { %8355 = vst [vmem:[#allocation19_spill] sm:$0xff] %v5637_v58  ;;  %4659 = vrot.lane.b32.xlu0 %v4658_v57, %s8307_s24  ;;  %91 = vrot.lane.b32.xlu1 %v86_v54, %s8247_s1  ;;  %v199_v60 = vmul.f32 %v5637_v58, %v5592_v31 }
  0x91   :  { %v136_v62 = vpop.permute.xlu1 %135 }
  0x92   :  { %v4663_v61 = vpack.i.bf16 %v199_v60, %v198_v59  ;;  %v5646_v63 = vpop.permute.xlu0 %133  ;;  %v8249_v60 = vmov 0  }
  0x93   :  { %v5651_v4 = vsel %vm137_vm5, %v5646_v63, %v136_v62  ;;  %v141_v12 = vmul.f32 %v5646_v63, %v5592_v31  ;;  %472 = vmatprep.mubr.bf16.mxu0 %v8249_v60  ;;  %4684 = vset.pattern.permute.xlu1 %v8249_v60  ;;  %vm4381_vm5 = vcmask 1024  }
  0x94   :  { %4664 = vrot.lane.b32.xlu0 %v4663_v61, %s8251_s25 }
  0x95   :  { %v157_v0 = vpop.permute.xlu1 %156  ;;  %4683 = vset.pattern.permute.xlu0 %v8249_v60 }
  0x96   :  { %v5648_v2 = vpop.permute.xlu0 %154 }
  0x97   :  { %v5654_v7 = vsel %vm158_vm6, %v5648_v2, %v157_v0  ;;  %v162_v11 = vmul.f32 %v5648_v2, %v5592_v31  ;;  %vm4368_vm6 = vcmask 1041408  }
  0x9a   :  { %v5667_v13 = vpop.permute.xlu0 %112 }
  0x9b   :  { %v120_v19 = vmul.f32 %v5667_v13, %v5592_v31 }
  0xf2   :  { %v79_v1 = vpop.permute.xlu1 %78 }
  0xf3   :  { %v5657_v8 = vsel %vm74_vm0, %v79_v1, %v76_v30 }
  0xf4   :  { %v142_v9 = vmul.f32 %v5651_v4, %v5657_v8  ;;  %v163_v10 = vmul.f32 %v5654_v7, %v5657_v8 }
  0xf6   :  { %v115_v14 = vpop.permute.xlu1 %114  ;;  %v4673_v15 = vpack.i.bf16 %v163_v10, %v162_v11  ;;  %v4668_v16 = vpack.i.bf16 %v142_v9, %v141_v12 }
  0xf7   :  { %v5670_v17 = vsel %vm116_vm7, %v5667_v13, %v115_v14 }
  0xf8   :  { %4674 = vrot.lane.b32.xlu0 %v4673_v15, %s5418_s3  ;;  %4669 = vrot.lane.b32.xlu1 %v4668_v16, %s8311_s26  ;;  %v121_v20 = vmul.f32 %v5670_v17, %v5657_v8 }
  0xfa   :  { %v4678_v21 = vpack.i.bf16 %v121_v20, %v120_v19  ;;  %v4645_v22 = vpop.permute.xlu1 %4644  ;;  %v4650_v23 = vpop.permute.xlu0 %4649 }
  0xfb   :  { %v4652_v24 = vunpack.i.h.bf16 %v4650_v23  ;;  %v4651_v25 = vunpack.i.l.bf16 %v4650_v23  ;;  %v4647_v36 = vunpack.i.h.bf16 %v4645_v22  ;;  %v4646_v39 = vunpack.i.l.bf16 %v4645_v22 }
  0xfc   :  { %93 = vrot.lane.b32.xlu0 %v90_v18, %s8247_s1  ;;  %4679 = vrot.lane.b32.xlu1 %v4678_v21, %s8309_s27 }
  0xfd   :  { %v350_v26 = vpack.c.bf16 %v4651_v25, %v4651_v25  ;;  %v339_v27 = vsel %vm338_vm8, %v4651_v25, %v4652_v24  ;;  %v299_v53 = vsel %vm95_vm11, %v4646_v39, %v4647_v36 }
  0xfe   :  { %v4655_v30 = vpop.permute.xlu1 %4654  ;;  %v351_v32 = vpack.c.bf16 %v339_v27, %v339_v27 }
  0xff   :  { %v4657_v33 = vunpack.i.h.bf16 %v4655_v30  ;;  %v4656_v34 = vunpack.i.l.bf16 %v4655_v30 }
 0x100   :  { %408 = vrot.lane.b32.xlu0 %v350_v26, %s8245_s28  ;;  %410 = vrot.lane.b32.xlu1 %v351_v32, %s8245_s28  ;;  %v73_v32 = vld [vmem:[%s8358_s30 + $0x18] sm:$0xff] }
 0x101   :  { %v319_v45 = vsel %vm318_vm9, %v4656_v34, %v4657_v33 }
 0x102   :  { %v4660_v35 = vpop.permute.xlu0 %4659  ;;  %v5692_v59 = vpop.permute.xlu1 %91 }
 0x103   :  { %v4662_v40 = vunpack.i.h.bf16 %v4660_v35  ;;  %v4661_v42 = vunpack.i.l.bf16 %v4660_v35  ;;  %8356 = vst [vmem:[#allocation20_spill] sm:$0xff] %v5692_v59  ;;  %v99_v22 = vmul.f32 %v5692_v59, %v5592_v31  ;;  %v71_v35 = vld [vmem:[%s8358_s30 + $0x8] sm:$0xff] }
 0x105   :  { %v348_v43 = vpack.c.bf16 %v4661_v42, %v4656_v34  ;;  %v329_v46 = vsel %vm328_vm10, %v4661_v42, %v4662_v40  ;;  %v70_v34 = vld [vmem:[%s8358_s30] sm:$0xff] }
 0x106   :  { %v4665_v47 = vpop.permute.xlu0 %4664  ;;  %v349_v49 = vpack.c.bf16 %v329_v46, %v319_v45 }
 0x107   :  { %v4667_v50 = vunpack.i.h.bf16 %v4665_v47  ;;  %v4666_v52 = vunpack.i.l.bf16 %v4665_v47  ;;  %404 = vrot.lane.b32.xlu0 %v348_v43, %s8245_s28 }
 0x108   :  { %406 = vrot.lane.b32.xlu1 %v349_v49, %s8245_s28 }
 0x109   :  { %v346_v54 = vpack.c.bf16 %v4666_v52, %v4646_v39  ;;  %v309_v56 = vsel %vm308_vm12, %v4666_v52, %v4667_v50 }
 0x10a   :  { %v347_v57 = vpack.c.bf16 %v309_v56, %v299_v53 }
 0x10b   :  { %400 = vrot.lane.b32.xlu0 %v346_v54, %s8245_s28 }
 0x10c   :  { %402 = vrot.lane.b32.xlu1 %v347_v57, %s8245_s28 }
 0x16a   :  { %v4675_v61 = vpop.permute.xlu0 %4674  ;;  %v4670_v62 = vpop.permute.xlu1 %4669 }
 0x16b   :  { %v4677_v0 = vunpack.i.h.bf16 %v4675_v61  ;;  %v4676_v1 = vunpack.i.l.bf16 %v4675_v61  ;;  %v4672_v9 = vunpack.i.h.bf16 %v4670_v62  ;;  %v4671_v10 = vunpack.i.l.bf16 %v4670_v62 }
 0x16d   :  { %v345_v11 = vpack.c.bf16 %v4677_v0, %v4672_v9  ;;  %v280_v12 = vsel %vm279_vm13, %v4671_v10, %v4672_v9  ;;  %v290_v14 = vsel %vm289_vm14, %v4676_v1, %v4677_v0 }
 0x16e   :  { %v94_v15 = vpop.permute.xlu0 %93  ;;  %v4680_v16 = vpop.permute.xlu1 %4679  ;;  %v344_v18 = vpack.c.bf16 %v290_v14, %v280_v12 }
 0x16f   :  { %v5701_v19 = vsel %vm95_vm11, %v5692_v59, %v94_v15  ;;  %v4682_v20 = vunpack.i.h.bf16 %v4680_v16  ;;  %v4681_v21 = vunpack.i.l.bf16 %v4680_v16  ;;  %398 = vrot.lane.b32.xlu1 %v345_v11, %s8245_s28 }
 0x170   :  { %8357 = vst [vmem:[#allocation21_spill] sm:$0xff] %v5701_v19  ;;  %396 = vrot.lane.b32.xlu0 %v344_v18, %s8245_s28  ;;  %v100_v23 = vmul.f32 %v5701_v19, %v5657_v8  ;;  %v72_v8 = vld [vmem:[%s8358_s30 + $0x10] sm:$0xff]  ;;  %s8368_s30 = smov 54  }
 0x171   :  { %v270_v24 = vsel %vm269_vm15, %v4681_v21, %v4682_v20 }
 0x172   :  { %v342_v25 = vpack.c.bf16 %v270_v24, %v99_v22  ;;  %v343_v26 = vpack.c.bf16 %v4682_v20, %v100_v23  ;;  %v409_v27 = vpop.permute.xlu0 %408  ;;  %v411_v30 = vpop.permute.xlu1 %410 }
 0x173   :  { %4426 = vmatprep.subr.msk.bf16.mxu0 %vm433_vm1, %v411_v30  ;;  %v417_v31 = vsel %vm412_vm2, %v409_v27, %v411_v30 }
 0x174   :  { %392 = vrot.lane.b32.xlu0 %v342_v25, %s8245_s28  ;;  %394 = vrot.lane.b32.xlu1 %v343_v26, %s8245_s28  ;;  %v435_v33 = vsel %vm433_vm1, %v417_v31, 0  ;;  %s8359_s28 = sld [smem:[#allocation46_spill]] }
 0x175   :  { %447 = vmatpush1.bf16.msra.mxu0 %v435_v33 }
 0x178   :  { %369 = vperm.xlu1 %4684, %v73_v32   ;;  %364 = vperm.xlu0 %4683, %v72_v8  }
 0x179   :  { %v405_v36 = vpop.permute.xlu0 %404 }
 0x17a   :  { %v407_v39 = vpop.permute.xlu1 %406  ;;  %v5325_v54 = vld [vmem:[%s8359_s28] sm:$0xff]   ;;  %v5326_v56 = vld [vmem:[%s8359_s28 + $0x8] sm:$0xff]  }
 0x17b   :  { %448 = vmatprep.subr.bf16.mxu0 %v407_v39  ;;  %v416_v40 = vsel %vm412_vm2, %v405_v36, %v407_v39 }
 0x17c   :  { %354 = vperm.xlu1 %4684, %v70_v34   ;;  %359 = vperm.xlu0 %4683, %v71_v35  }
 0x17d   :  { %449 = vmatpush1.bf16.msra.mxu0 %v416_v40  ;;  %v401_v42 = vpop.permute.xlu0 %400 }
 0x17e   :  { %v403_v43 = vpop.permute.xlu1 %402 }
 0x17f   :  { %450 = vmatprep.subr.bf16.mxu0 %v403_v43  ;;  %v415_v45 = vsel %vm412_vm2, %v401_v42, %v403_v43 }
 0x181   :  { %451 = vmatpush1.bf16.msra.mxu0 %v415_v45 }
 0x1e1   :  { %v399_v46 = vpop.permute.xlu1 %398 }
 0x1e2   :  { %v397_v47 = vpop.permute.xlu0 %396  ;;  %452 = vmatprep.subr.bf16.mxu0 %v399_v46 }
 0x1e3   :  { %v414_v49 = vsel %vm412_vm2, %v397_v47, %v399_v46 }
 0x1e4   :  { %453 = vmatpush1.bf16.msra.mxu0 %v414_v49 }
 0x1e6   :  { %v393_v50 = vpop.permute.xlu0 %392  ;;  %v395_v52 = vpop.permute.xlu1 %394 }
 0x1e7   :  { %454 = vmatprep.subr.bf16.mxu0 %v395_v52  ;;  %v413_v53 = vsel %vm412_vm2, %v393_v50, %v395_v52 }
 0x1e8   :  { %455 = vmatpush1.bf16.msra.mxu0 %v413_v53 }
 0x1eb   :  { %4427 = vmatmul.mubr.msk.bf16.vlgmr.msra.gmra.mxu0 %vm426_vm3, %v5325_v54 }
 0x1ec   :  { %482 = vmatprep.mubr.bf16.mxu0 %v8249_v60 }
 0x1f3   :  { %4428 = vmatmul.mubr.msk.bf16.gmra.mxu0 %vm426_vm3, %v5326_v56  ;;  %v370_v61 = vpop.permute.xlu1 %369  ;;  %v365_v1 = vpop.permute.xlu0 %364 }
 0x1f7   :  { %v355_v10 = vpop.permute.xlu1 %354  ;;  %v360_v18 = vpop.permute.xlu0 %359 }
 0x2ab   :  { %v474_v57 = vpop.f32.mrf.mxu0 }
 0x2ac   :  { %v475_v15 = vadd.f32 %v474_v57, %v355_v10 }
 0x2ad   :  { %v476_v62 = vpop.f32.mrf.mxu0 }
 0x2ae   :  { %v5740_v22 = vmax.f32 %v475_v15, 0.0  ;;  %v477_v30 = vadd.f32 %v476_v62, %v355_v10 }
 0x2af   :  { %v478_v0 = vpop.f32.mrf.mxu0 }
 0x2b0   :  { %8361 = vst [vmem:[#allocation23_spill] sm:$0xff] %v5740_v22  ;;  %v479_v23 = vadd.f32 %v478_v0, %v360_v18  ;;  %v5760_v34 = vmax.f32 %v477_v30, 0.0 }
 0x2b1   :  { %v480_v9 = vpop.f32.mrf.mxu0 }
 0x2b2   :  { %v5748_v25 = vmax.f32 %v479_v23, 0.0  ;;  %8365 = vst [vmem:[#allocation27_spill] sm:$0xff] %v5760_v34  ;;  %v481_v35 = vadd.f32 %v480_v9, %v360_v18 }
 0x2b3   :  { %v484_v11 = vpop.f32.mrf.mxu0 }
 0x2b4   :  { %v485_v12 = vadd.f32 %v484_v11, %v365_v1  ;;  %8363 = vst [vmem:[#allocation25_spill] sm:$0xff] %v5748_v25  ;;  %v5776_v45 = vmax.f32 %v481_v35, 0.0 }
 0x2b5   :  { %v486_v14 = vpop.f32.mrf.mxu0 }
 0x2b6   :  { %v5736_v16 = vmax.f32 %v485_v12, 0.0  ;;  %v487_v26 = vadd.f32 %v486_v14, %v365_v1  ;;  %8367 = vst [vmem:[#allocation29_spill] sm:$0xff] %v5776_v45 }
 0x2b7   :  { %v488_v20 = vpop.f32.mrf.mxu0 }
 0x2b8   :  { %8360 = vst [vmem:[#allocation22_spill] sm:$0xff] %v5736_v16  ;;  %v489_v21 = vadd.f32 %v488_v20, %v370_v61  ;;  %519 = vrot.lane.b32.xlu1 %v5736_v16, %s5405_s22  ;;  %v5752_v32 = vmax.f32 %v487_v26, 0.0 }
 0x2b9   :  { %v490_v27 = vpop.f32.mrf.mxu0 }
 0x2ba   :  { %v5742_v24 = vmax.f32 %v489_v21, 0.0  ;;  %8364 = vst [vmem:[#allocation26_spill] sm:$0xff] %v5752_v32  ;;  %v491_v31 = vadd.f32 %v490_v27, %v370_v61 }
 0x2bc   :  { %8362 = vst [vmem:[#allocation24_spill] sm:$0xff] %v5742_v24  ;;  %522 = vrot.lane.b32.xlu0 %v5742_v24, %s5405_s22  ;;  %513 = vrot.lane.b32.xlu1 %v5740_v22, %s5405_s22  ;;  %v5762_v36 = vmax.f32 %v491_v31, 0.0 }
 0x2be   :  { %8366 = vst [vmem:[#allocation28_spill] sm:$0xff] %v5762_v36 }
 0x2c0   :  { %516 = vrot.lane.b32.xlu0 %v5748_v25, %s5405_s22 }
 0x32a   :  { %v520_v8 = vpop.permute.xlu1 %519 }
 0x32b   :  { %v5756_v33 = vsel %vm74_vm0, %v520_v8, %v5752_v32 }
 0x32c   :  { %529 = vrot.lane.b32.xlu1 %v5756_v33, %s5405_s22  ;;  %v5786_v49 = vmul.f32 %v5756_v33, %v5692_v59  ;;  %v565_v0 = vmul.f32 %v5756_v33, %v5648_v2 }
 0x32e   :  { %v523_v39 = vpop.permute.xlu0 %522  ;;  %v514_v40 = vpop.permute.xlu1 %513 }
 0x32f   :  { %v5766_v42 = vsel %vm74_vm0, %v523_v39, %v5762_v36  ;;  %v5770_v43 = vsel %vm74_vm0, %v514_v40, %v5760_v34 }
 0x330   :  { %531 = vrot.lane.b32.xlu0 %v5766_v42, %s5405_s22  ;;  %525 = vrot.lane.b32.xlu1 %v5770_v43, %s5405_s22  ;;  %v5790_v50 = vmul.f32 %v5766_v42, %v5692_v59  ;;  %v5794_v52 = vmul.f32 %v5770_v43, %v5692_v59  ;;  %v567_v20 = vmul.f32 %v5766_v42, %v5648_v2 }
 0x331   :  { %v561_v23 = vmul.f32 %v5770_v43, %v5648_v2 }
 0x332   :  { %v517_v46 = vpop.permute.xlu0 %516  ;;  %v899_v54 = vpack.c.bf16 %v5790_v50, %v5786_v49 }
 0x333   :  { %v5780_v47 = vsel %vm74_vm0, %v517_v46, %v5776_v45 }
 0x334   :  { %527 = vrot.lane.b32.xlu0 %v5780_v47, %s5405_s22  ;;  %v5798_v53 = vmul.f32 %v5780_v47, %v5692_v59 }
 0x39e   :  { %v530_v57 = vpop.permute.xlu1 %529 }
 0x39f   :  { %v535_v61 = vsel %vm74_vm0, %v530_v57, %v520_v8 }
 0x3a0   :  { %v566_v62 = vmul.f32 %v535_v61, %v5654_v7  ;;  %v5811_v14 = vmul.f32 %v535_v61, %v5701_v19  ;;  %v558_v31 = vmul.f32 %v535_v61, %v5651_v4 }
 0x3a2   :  { %v532_v1 = vpop.permute.xlu0 %531  ;;  %v526_v9 = vpop.permute.xlu1 %525  ;;  %v4685_v10 = vpack.i.bf16 %v566_v62, %v565_v0  ;;  %v563_v62 = vmul.f32 %v5780_v47, %v5648_v2  ;;  %v557_v0 = vmul.f32 %v5756_v33, %v5646_v63 }
 0x3a3   :  { %v536_v11 = vsel %vm74_vm0, %v532_v1, %v523_v39  ;;  %v533_v12 = vsel %vm74_vm0, %v526_v9, %v514_v40 }
 0x3a4   :  { %v5814_v15 = vmul.f32 %v536_v11, %v5701_v19  ;;  %v568_v18 = vmul.f32 %v536_v11, %v5654_v7  ;;  %4686 = vrot.lane.b32.xlu1 %v4685_v10, %s5418_s3  ;;  %v562_v21 = vmul.f32 %v533_v12, %v5654_v7  ;;  %v5828_v39 = vmul.f32 %v533_v12, %v5701_v19 }
 0x3a5   :  { %v554_v10 = vmul.f32 %v533_v12, %v5651_v4 }
 0x3a6   :  { %v528_v26 = vpop.permute.xlu0 %527  ;;  %v4695_v27 = vpack.i.bf16 %v568_v18, %v567_v20  ;;  %v900_v30 = vpack.c.bf16 %v5814_v15, %v5811_v14  ;;  %v4690_v35 = vpack.i.bf16 %v562_v21, %v561_v23  ;;  %v4705_v18 = vpack.i.bf16 %v558_v31, %v557_v0 }
 0x3a7   :  { %v534_v8 = vsel %vm74_vm0, %v528_v26, %v517_v46  ;;  %v560_v46 = vmul.f32 %v536_v11, %v5651_v4  ;;  %v559_v20 = vmul.f32 %v5766_v42, %v5646_v63  ;;  %v553_v21 = vmul.f32 %v5770_v43, %v5646_v63 }
 0x3a8   :  { %v5831_v40 = vmul.f32 %v534_v8, %v5701_v19  ;;  %v564_v57 = vmul.f32 %v534_v8, %v5654_v7  ;;  %4696 = vrot.lane.b32.xlu0 %v4695_v27, %s5418_s3  ;;  %4691 = vrot.lane.b32.xlu1 %v4690_v35, %s5418_s3  ;;  %v556_v23 = vmul.f32 %v534_v8, %v5651_v4 }
 0x3a9   :  { %v4715_v26 = vpack.i.bf16 %v560_v46, %v559_v20  ;;  %v550_v27 = vmul.f32 %v535_v61, %v5670_v17  ;;  %v4710_v35 = vpack.i.bf16 %v554_v10, %v553_v21  ;;  %v555_v31 = vmul.f32 %v5780_v47, %v5646_v63 }
 0x3aa   :  { %v4700_v1 = vpack.i.bf16 %v564_v57, %v563_v62  ;;  %v549_v57 = vmul.f32 %v5756_v33, %v5667_v13  ;;  %v552_v62 = vmul.f32 %v536_v11, %v5670_v17  ;;  %v551_v61 = vmul.f32 %v5766_v42, %v5667_v13 }
 0x3ab   :  { %v4720_v0 = vpack.i.bf16 %v556_v23, %v555_v31  ;;  %v545_v46 = vmul.f32 %v5770_v43, %v5667_v13  ;;  %v548_v10 = vmul.f32 %v534_v8, %v5670_v17  ;;  %v598_v11 = vmul.f32 %v5756_v33, %v5626_v51 }
 0x3ac   :  { %4701 = vrot.lane.b32.xlu0 %v4700_v1, %s5418_s3  ;;  %4706 = vrot.lane.b32.xlu1 %v4705_v18, %s8311_s26  ;;  %v546_v1 = vmul.f32 %v533_v12, %v5670_v17  ;;  %v4725_v18 = vpack.i.bf16 %v550_v27, %v549_v57  ;;  %v4735_v20 = vpack.i.bf16 %v552_v62, %v551_v61 }
 0x3ad   :  { %v547_v12 = vmul.f32 %v5780_v47, %v5667_v13  ;;  %v597_v23 = vmul.f32 %v5736_v16, %v5623_v48  ;;  %v600_v27 = vmul.f32 %v5766_v42, %v5626_v51  ;;  %v599_v31 = vmul.f32 %v5742_v24, %v5623_v48 }
 0x3ae   :  { %v4730_v21 = vpack.i.bf16 %v546_v1, %v545_v46  ;;  %v593_v57 = vmul.f32 %v5740_v22, %v5623_v48  ;;  %v595_v61 = vmul.f32 %v5748_v25, %v5623_v48  ;;  %v589_v46 = vmul.f32 %v5736_v16, %v5610_v41 }
 0x3af   :  { %v4745_v8 = vpack.i.bf16 %v598_v11, %v597_v23  ;;  %v4750_v62 = vpack.i.bf16 %v600_v27, %v599_v31  ;;  %v586_v11 = vmul.f32 %v5770_v43, %v5613_v44  ;;  %v585_v23 = vmul.f32 %v5740_v22, %v5610_v41 }
 0x3b0   :  { %4716 = vrot.lane.b32.xlu0 %v4715_v26, %s8311_s26  ;;  %4711 = vrot.lane.b32.xlu1 %v4710_v35, %s8311_s26  ;;  %v4740_v26 = vpack.i.bf16 %v548_v10, %v547_v12  ;;  %v594_v35 = vmul.f32 %v5770_v43, %v5626_v51  ;;  %v591_v12 = vmul.f32 %v5742_v24, %v5610_v41 }
 0x3b1   :  { %v588_v27 = vmul.f32 %v5780_v47, %v5613_v44  ;;  %v587_v31 = vmul.f32 %v5748_v25, %v5610_v41  ;;  %v8372_v15 = vpack.c.bf16 %v5798_v53, %v5794_v52 }
 0x3b2   :  { %v4755_v1 = vpack.i.bf16 %v594_v35, %v593_v57  ;;  %v582_v35 = vmul.f32 %v5756_v33, %v5637_v58  ;;  %v581_v57 = vmul.f32 %v5736_v16, %v5634_v55 }
 0x3b4   :  { %4721 = vrot.lane.b32.xlu0 %v4720_v0, %s8311_s26  ;;  %4726 = vrot.lane.b32.xlu1 %v4725_v18, %s8309_s27  ;;  %v596_v0 = vmul.f32 %v5780_v47, %v5626_v51  ;;  %v590_v18 = vmul.f32 %v5756_v33, %v5613_v44 }
 0x3b6   :  { %v4760_v10 = vpack.i.bf16 %v596_v0, %v595_v61  ;;  %v584_v0 = vmul.f32 %v5766_v42, %v5637_v58  ;;  %v583_v61 = vmul.f32 %v5742_v24, %v5634_v55 }
 0x3b8   :  { %4736 = vrot.lane.b32.xlu0 %v4735_v20, %s8309_s27  ;;  %4731 = vrot.lane.b32.xlu1 %v4730_v21, %s8309_s27  ;;  %v592_v20 = vmul.f32 %v5766_v42, %v5613_v44  ;;  %v4765_v21 = vpack.i.bf16 %v590_v18, %v589_v46  ;;  %v578_v18 = vmul.f32 %v5770_v43, %v5637_v58 }
 0x3b9   :  { %v577_v46 = vmul.f32 %v5740_v22, %v5634_v55 }
 0x3bc   :  { %4741 = vrot.lane.b32.xlu0 %v4740_v26, %s8309_s27  ;;  %4746 = vrot.lane.b32.xlu1 %v4745_v8, %s8307_s24  ;;  %v4770_v26 = vpack.i.bf16 %v592_v20, %v591_v12  ;;  %v4775_v8 = vpack.i.bf16 %v586_v11, %v585_v23  ;;  %v580_v20 = vmul.f32 %v5780_v47, %v5637_v58 }
 0x3bd   :  { %v4795_v11 = vpack.i.bf16 %v578_v18, %v577_v46  ;;  %v579_v12 = vmul.f32 %v5748_v25, %v5634_v55  ;;  %v573_v23 = vmul.f32 %v5736_v16, %v5586_v28  ;;  %v606_v18 = vmul.f32 %v5756_v33, %v5603_v38 }
 0x3be   :  { %v605_v46 = vmul.f32 %v5736_v16, %v5600_v37  ;;  %v607_v33 = vmul.f32 %v5742_v24, %v5600_v37 }
 0x3c0   :  { %4751 = vrot.lane.b32.xlu0 %v4750_v62, %s8307_s24  ;;  %4756 = vrot.lane.b32.xlu1 %v4755_v1, %s8307_s24  ;;  %v4780_v62 = vpack.i.bf16 %v588_v27, %v587_v31  ;;  %v4785_v1 = vpack.i.bf16 %v582_v35, %v581_v57  ;;  %v4800_v27 = vpack.i.bf16 %v580_v20, %v579_v12 }
 0x3c1   :  { %v575_v31 = vmul.f32 %v5742_v24, %v5586_v28  ;;  %v569_v57 = vmul.f32 %v5740_v22, %v5586_v28  ;;  %v608_v20 = vmul.f32 %v5766_v42, %v5603_v38 }
 0x3c4   :  { %4761 = vrot.lane.b32.xlu0 %v4760_v10, %s8307_s24  ;;  %4766 = vrot.lane.b32.xlu1 %v4765_v21, %s8305_s12  ;;  %v4790_v10 = vpack.i.bf16 %v584_v0, %v583_v61  ;;  %v574_v21 = vmul.f32 %v5752_v32, %v5589_v29  ;;  %v571_v61 = vmul.f32 %v5748_v25, %v5586_v28 }
 0x3c6   :  { %v4805_v35 = vpack.i.bf16 %v574_v21, %v573_v23  ;;  %v4825_v21 = vpack.i.bf16 %v606_v18, %v605_v46 }
 0x3c8   :  { %4771 = vrot.lane.b32.xlu0 %v4770_v26, %s8305_s12  ;;  %4776 = vrot.lane.b32.xlu1 %v4775_v8, %s8305_s12  ;;  %v576_v26 = vmul.f32 %v5762_v36, %v5589_v29  ;;  %v570_v8 = vmul.f32 %v5760_v34, %v5589_v29 }
 0x3ca   :  { %v4810_v0 = vpack.i.bf16 %v576_v26, %v575_v31 }
 0x3cc   :  { %4781 = vrot.lane.b32.xlu0 %v4780_v62, %s8305_s12  ;;  %4786 = vrot.lane.b32.xlu1 %v4785_v1, %s8251_s25  ;;  %v572_v62 = vmul.f32 %v5776_v45, %v5589_v29  ;;  %v4815_v1 = vpack.i.bf16 %v570_v8, %v569_v57 }
 0x3d0   :  { %4791 = vrot.lane.b32.xlu0 %v4790_v10, %s8251_s25  ;;  %4796 = vrot.lane.b32.xlu1 %v4795_v11, %s8251_s25  ;;  %v4820_v10 = vpack.i.bf16 %v572_v62, %v571_v61  ;;  %v4830_v11 = vpack.i.bf16 %v608_v20, %v607_v33 }
 0x3d4   :  { %4801 = vrot.lane.b32.xlu0 %v4800_v27, %s8251_s25  ;;  %4806 = vrot.lane.b32.xlu1 %v4805_v35, %s8368_s30  ;;  %s8451_s25 = smov 46  }
 0x3d8   :  { %4811 = vrot.lane.b32.xlu0 %v4810_v0, %s8368_s30  ;;  %4816 = vrot.lane.b32.xlu1 %v4815_v1, %s8368_s30 }
 0x3dc   :  { %4821 = vrot.lane.b32.xlu0 %v4820_v10, %s8368_s30  ;;  %4826 = vrot.lane.b32.xlu1 %v4825_v21, %s8369_s20 }
 0x3e0   :  { %4831 = vrot.lane.b32.xlu0 %v4830_v11, %s8369_s20 }
 0x416   :  { %v4687_v12 = vpop.permute.xlu1 %4686 }
 0x417   :  { %v4689_v1 = vunpack.i.h.bf16 %v4687_v12  ;;  %v4688_v18 = vunpack.i.l.bf16 %v4687_v12 }
 0x41a   :  { %v4697_v23 = vpop.permute.xlu0 %4696  ;;  %v4692_v26 = vpop.permute.xlu1 %4691 }
 0x41b   :  { %v4694_v27 = vunpack.i.h.bf16 %v4692_v26  ;;  %v4693_v8 = vunpack.i.l.bf16 %v4692_v26  ;;  %v4699_v31 = vunpack.i.h.bf16 %v4697_v23  ;;  %v4698_v57 = vunpack.i.l.bf16 %v4697_v23 }
 0x41c   :  { %v707_v23 = vsel %vm289_vm14, %v4688_v18, %v4689_v1 }
 0x41d   :  { %v705_v46 = vsel %vm289_vm14, %v4693_v8, %v4694_v27  ;;  %v708_v11 = vsel %vm289_vm14, %v4698_v57, %v4699_v31  ;;  %v912_v12 = vpack.c.bf16 %v4699_v31, %v4689_v1 }
 0x41e   :  { %v4702_v35 = vpop.permute.xlu0 %4701  ;;  %v4707_v0 = vpop.permute.xlu1 %4706  ;;  %v911_v9 = vpack.c.bf16 %v708_v11, %v707_v23 }
 0x41f   :  { %v4704_v42 = vunpack.i.h.bf16 %v4702_v35  ;;  %v4703_v62 = vunpack.i.l.bf16 %v4702_v35  ;;  %v4708_v57 = vunpack.i.l.bf16 %v4707_v0 }
 0x421   :  { %v910_v61 = vpack.c.bf16 %v4704_v42, %v4694_v27  ;;  %v706_v10 = vsel %vm289_vm14, %v4703_v62, %v4704_v42  ;;  %v4709_v27 = vunpack.i.h.bf16 %v4707_v0 }
 0x422   :  { %v4717_v20 = vpop.permute.xlu0 %4716  ;;  %v909_v21 = vpack.c.bf16 %v706_v10, %v705_v46  ;;  %v4712_v33 = vpop.permute.xlu1 %4711 }
 0x423   :  { %1045 = vrot.lane.b32.xlu0 %v910_v61, %s8370_s2  ;;  %v4719_v26 = vunpack.i.h.bf16 %v4717_v20  ;;  %v4714_v35 = vunpack.i.h.bf16 %v4712_v33  ;;  %v4713_v60 = vunpack.i.l.bf16 %v4712_v33  ;;  %v4718_v8 = vunpack.i.l.bf16 %v4717_v20 }
 0x424   :  { %1043 = vrot.lane.b32.xlu1 %v909_v21, %s8370_s2  ;;  %v671_v20 = vsel %vm279_vm13, %v4708_v57, %v4709_v27 }
 0x425   :  { %v908_v61 = vpack.c.bf16 %v4719_v26, %v4709_v27  ;;  %v669_v10 = vsel %vm279_vm13, %v4713_v60, %v4714_v35  ;;  %v672_v1 = vsel %vm279_vm13, %v4718_v8, %v4719_v26  ;;  %v602_v60 = vmul.f32 %v5770_v43, %v5603_v38 }
 0x426   :  { %v4722_v56 = vpop.permute.xlu0 %4721  ;;  %v4727_v46 = vpop.permute.xlu1 %4726  ;;  %v907_v11 = vpack.c.bf16 %v672_v1, %v671_v20  ;;  %v603_v26 = vmul.f32 %v5748_v25, %v5600_v37 }
 0x427   :  { %v4724_v42 = vunpack.i.h.bf16 %v4722_v56  ;;  %v4723_v62 = vunpack.i.l.bf16 %v4722_v56  ;;  %1049 = vrot.lane.b32.xlu0 %v912_v12, %s8370_s2  ;;  %v4729_v27 = vunpack.i.h.bf16 %v4727_v46 }
 0x428   :  { %1047 = vrot.lane.b32.xlu1 %v911_v9, %s8370_s2  ;;  %v604_v9 = vmul.f32 %v5780_v47, %v5603_v38  ;;  %v4728_v47 = vunpack.i.l.bf16 %v4727_v46 }
 0x429   :  { %v670_v18 = vsel %vm279_vm13, %v4723_v62, %v4724_v42  ;;  %v906_v56 = vpack.c.bf16 %v4724_v42, %v4714_v35  ;;  %v601_v35 = vmul.f32 %v5740_v22, %v5600_v37 }
 0x42a   :  { %v4737_v21 = vpop.permute.xlu0 %4736  ;;  %v905_v33 = vpack.c.bf16 %v670_v18, %v669_v10  ;;  %v4732_v31 = vpop.permute.xlu1 %4731  ;;  %v4840_v8 = vpack.i.bf16 %v604_v9, %v603_v26 }
 0x42b   :  { %1041 = vrot.lane.b32.xlu0 %v908_v61, %s8370_s2  ;;  %v4739_v23 = vunpack.i.h.bf16 %v4737_v21  ;;  %v4738_v12 = vunpack.i.l.bf16 %v4737_v21  ;;  %v4835_v57 = vpack.i.bf16 %v602_v60, %v601_v35  ;;  %v4734_v21 = vunpack.i.h.bf16 %v4732_v31 }
 0x42c   :  { %1035 = vrot.lane.b32.xlu1 %v905_v33, %s8370_s2  ;;  %v4733_v33 = vunpack.i.l.bf16 %v4732_v31 }
 0x42d   :  { %v636_v18 = vsel %vm269_vm15, %v4738_v12, %v4739_v23  ;;  %v904_v1 = vpack.c.bf16 %v4739_v23, %v4729_v27 }
 0x42e   :  { %v4742_v0 = vpop.permute.xlu0 %4741  ;;  %v4747_v62 = vpop.permute.xlu1 %4746  ;;  %v633_v60 = vsel %vm269_vm15, %v4733_v33, %v4734_v21 }
 0x42f   :  { %1037 = vrot.lane.b32.xlu0 %v906_v56, %s8370_s2  ;;  %v4744_v61 = vunpack.i.h.bf16 %v4742_v0  ;;  %v4743_v43 = vunpack.i.l.bf16 %v4742_v0  ;;  %v635_v56 = vsel %vm269_vm15, %v4728_v47, %v4729_v27  ;;  %v4749_v47 = vunpack.i.h.bf16 %v4747_v62 }
 0x430   :  { %1039 = vrot.lane.b32.xlu1 %v907_v11, %s8370_s2  ;;  %v903_v11 = vpack.c.bf16 %v636_v18, %v635_v56 }
 0x431   :  { %v634_v46 = vsel %vm269_vm15, %v4743_v43, %v4744_v61  ;;  %v902_v0 = vpack.c.bf16 %v4744_v61, %v4734_v21 }
 0x432   :  { %v4752_v42 = vpop.permute.xlu0 %4751  ;;  %v4757_v10 = vpop.permute.xlu1 %4756  ;;  %v901_v26 = vpack.c.bf16 %v634_v46, %v633_v60 }
 0x433   :  { %4841 = vrot.lane.b32.xlu0 %v4840_v8, %s8369_s20  ;;  %v4754_v31 = vunpack.i.h.bf16 %v4752_v42  ;;  %v4753_v23 = vunpack.i.l.bf16 %v4752_v42  ;;  %v4748_v8 = vunpack.i.l.bf16 %v4747_v62  ;;  %v8371_v42 = vpack.c.bf16 %v5831_v40, %v5828_v39 }
 0x434   :  { %4836 = vrot.lane.b32.xlu1 %v4835_v57, %s8369_s20  ;;  %v4759_v21 = vunpack.i.h.bf16 %v4757_v10  ;;  %v4758_v14 = vunpack.i.l.bf16 %v4757_v10 }
 0x435   :  { %v852_v43 = vsel %vm328_vm10, %v4753_v23, %v4754_v31  ;;  %v851_v49 = vsel %vm328_vm10, %v4748_v8, %v4749_v47 }
 0x436   :  { %v4762_v20 = vpop.permute.xlu0 %4761  ;;  %v4767_v9 = vpop.permute.xlu1 %4766  ;;  %v849_v39 = vsel %vm328_vm10, %v4758_v14, %v4759_v21 }
 0x437   :  { %1033 = vrot.lane.b32.xlu0 %v904_v1, %s8370_s2  ;;  %v4764_v57 = vunpack.i.h.bf16 %v4762_v20  ;;  %v4763_v61 = vunpack.i.l.bf16 %v4762_v20  ;;  %v927_v1 = vpack.c.bf16 %v4753_v23, %v4748_v8  ;;  %v4769_v40 = vunpack.i.h.bf16 %v4767_v9 }
 0x438   :  { %1031 = vrot.lane.b32.xlu1 %v903_v11, %s8370_s2  ;;  %v4768_v10 = vunpack.i.l.bf16 %v4767_v9 }
 0x439   :  { %v925_v53 = vpack.c.bf16 %v4763_v61, %v4758_v14 }
 0x43a   :  { %v4772_v12 = vpop.permute.xlu0 %4771  ;;  %v4777_v27 = vpop.permute.xlu1 %4776  ;;  %v815_v60 = vsel %vm318_vm9, %v4768_v10, %v4769_v40 }
 0x43b   :  { %1029 = vrot.lane.b32.xlu0 %v902_v0, %s8370_s2  ;;  %v4774_v62 = vunpack.i.h.bf16 %v4772_v12  ;;  %v4773_v33 = vunpack.i.l.bf16 %v4772_v12  ;;  %v4779_v12 = vunpack.i.h.bf16 %v4777_v27 }
 0x43c   :  { %1027 = vrot.lane.b32.xlu1 %v901_v26, %s8370_s2  ;;  %v4778_v26 = vunpack.i.l.bf16 %v4777_v27 }
 0x43d   :  { %v816_v20 = vsel %vm318_vm9, %v4773_v33, %v4774_v62  ;;  %v923_v9 = vpack.c.bf16 %v4773_v33, %v4768_v10 }
 0x43e   :  { %v4782_v35 = vpop.permute.xlu0 %4781  ;;  %v4787_v50 = vpop.permute.xlu1 %4786  ;;  %v924_v31 = vpack.c.bf16 %v816_v20, %v815_v60 }
 0x43f   :  { %1025 = vrot.lane.b32.xlu0 %v900_v30, %s8370_s2  ;;  %v850_v30 = vsel %vm328_vm10, %v4763_v61, %v4764_v57  ;;  %v4784_v11 = vunpack.i.h.bf16 %v4782_v35  ;;  %v4783_v46 = vunpack.i.l.bf16 %v4782_v35  ;;  %v813_v35 = vsel %vm318_vm9, %v4778_v26, %v4779_v12 }
 0x440   :  { %1023 = vrot.lane.b32.xlu1 %v899_v54, %s8370_s2  ;;  %v928_v54 = vpack.c.bf16 %v852_v43, %v851_v49  ;;  %v926_v52 = vpack.c.bf16 %v850_v30, %v849_v39  ;;  %v4789_v61 = vunpack.i.h.bf16 %v4787_v50  ;;  %v4788_v43 = vunpack.i.l.bf16 %v4787_v50 }
 0x441   :  { %v814_v23 = vsel %vm318_vm9, %v4783_v46, %v4784_v11  ;;  %v921_v27 = vpack.c.bf16 %v4783_v46, %v4778_v26  ;;  %v5329_v11 = vld [vmem:[%s8223_s4 + $0x4] ss:$12 sps:$4 sm:$0xff]  }
 0x442   :  { %v4792_v18 = vpop.permute.xlu0 %4791  ;;  %v4797_v0 = vpop.permute.xlu1 %4796  ;;  %v922_v21 = vpack.c.bf16 %v814_v23, %v813_v35  ;;  %1184 = vmatprep.mubr.bf16.mxu1 %v5329_v11 }
 0x443   :  { %1021 = vrot.lane.b32.xlu0 %v8371_v42, %s8370_s2  ;;  %v4794_v47 = vunpack.i.h.bf16 %v4792_v18  ;;  %v4793_v8 = vunpack.i.l.bf16 %v4792_v18  ;;  %v779_v18 = vsel %vm308_vm12, %v4788_v43, %v4789_v61  ;;  %v4798_v30 = vunpack.i.l.bf16 %v4797_v0 }
 0x444   :  { %1019 = vrot.lane.b32.xlu1 %v8372_v15, %s8370_s2 }
 0x445   :  { %v780_v14 = vsel %vm308_vm12, %v4793_v8, %v4794_v47  ;;  %v919_v50 = vpack.c.bf16 %v4793_v8, %v4788_v43 }
 0x446   :  { %v4802_v56 = vpop.permute.xlu0 %4801  ;;  %v4807_v42 = vpop.permute.xlu1 %4806  ;;  %v920_v33 = vpack.c.bf16 %v780_v14, %v779_v18 }
 0x447   :  { %1081 = vrot.lane.b32.xlu0 %v928_v54, %s8370_s2  ;;  %v4804_v15 = vunpack.i.h.bf16 %v4802_v56  ;;  %v4803_v49 = vunpack.i.l.bf16 %v4802_v56  ;;  %v4799_v54 = vunpack.i.h.bf16 %v4797_v0 }
 0x448   :  { %1079 = vrot.lane.b32.xlu1 %v927_v1, %s8370_s2 }
 0x449   :  { %v778_v1 = vsel %vm308_vm12, %v4803_v49, %v4804_v15  ;;  %v777_v56 = vsel %vm308_vm12, %v4798_v30, %v4799_v54  ;;  %v917_v46 = vpack.c.bf16 %v4803_v49, %v4798_v30 }
 0x44a   :  { %v4812_v57 = vpop.permute.xlu0 %4811  ;;  %v4817_v10 = vpop.permute.xlu1 %4816  ;;  %v918_v20 = vpack.c.bf16 %v778_v1, %v777_v56 }
 0x44b   :  { %1077 = vrot.lane.b32.xlu0 %v926_v52, %s8370_s2  ;;  %v4814_v39 = vunpack.i.h.bf16 %v4812_v57  ;;  %v4813_v40 = vunpack.i.l.bf16 %v4812_v57  ;;  %v4809_v52 = vunpack.i.h.bf16 %v4807_v42  ;;  %v4818_v23 = vunpack.i.l.bf16 %v4817_v10 }
 0x44c   :  { %1075 = vrot.lane.b32.xlu1 %v925_v53, %s8370_s2  ;;  %v4808_v53 = vunpack.i.l.bf16 %v4807_v42 }
 0x44d   :  { %v744_v0 = vsel %vm95_vm11, %v4813_v40, %v4814_v39 }
 0x44e   :  { %v4822_v62 = vpop.permute.xlu0 %4821  ;;  %v4827_v47 = vpop.permute.xlu1 %4826  ;;  %v915_v57 = vpack.c.bf16 %v4813_v40, %v4808_v53 }
 0x44f   :  { %1073 = vrot.lane.b32.xlu0 %v924_v31, %s8370_s2  ;;  %v4824_v60 = vunpack.i.h.bf16 %v4822_v62  ;;  %v4823_v12 = vunpack.i.l.bf16 %v4822_v62  ;;  %v743_v31 = vsel %vm95_vm11, %v4808_v53, %v4809_v52 }
 0x450   :  { %1071 = vrot.lane.b32.xlu1 %v923_v9, %s8370_s2  ;;  %v4819_v9 = vunpack.i.h.bf16 %v4817_v10  ;;  %v916_v8 = vpack.c.bf16 %v744_v0, %v743_v31 }
 0x451   :  { %v742_v35 = vsel %vm95_vm11, %v4823_v12, %v4824_v60  ;;  %v913_v15 = vpack.c.bf16 %v4823_v12, %v4818_v23 }
 0x452   :  { %v4832_v26 = vpop.permute.xlu0 %4831  ;;  %v741_v42 = vsel %vm95_vm11, %v4818_v23, %v4819_v9 }
 0x453   :  { %1069 = vrot.lane.b32.xlu0 %v922_v21, %s8370_s2  ;;  %v4834_v61 = vunpack.i.h.bf16 %v4832_v26  ;;  %v4833_v43 = vunpack.i.l.bf16 %v4832_v26  ;;  %v4829_v21 = vunpack.i.h.bf16 %v4827_v47  ;;  %v914_v14 = vpack.c.bf16 %v742_v35, %v741_v42 }
 0x454   :  { %1067 = vrot.lane.b32.xlu1 %v921_v27, %s8370_s2  ;;  %v4828_v27 = vunpack.i.l.bf16 %v4827_v47 }
 0x455   :  { %v888_v49 = vsel %vm338_vm8, %v4833_v43, %v4834_v61 }
 0x456   :  { %v887_v18 = vsel %vm338_vm8, %v4828_v27, %v4829_v21  ;;  %v931_v30 = vpack.c.bf16 %v4833_v43, %v4828_v27  ;;  %v511_v43 = vld [vmem:[%s8224_s5 + $0x10] sm:$0xff]  ;;  %v512_v21 = vld [vmem:[%s8224_s5 + $0x18] sm:$0xff] }
 0x457   :  { %1065 = vrot.lane.b32.xlu0 %v920_v33, %s8370_s2  ;;  %v932_v54 = vpack.c.bf16 %v888_v49, %v887_v18  ;;  %v510_v18 = vld [vmem:[%s8224_s5 + $0x8] sm:$0xff] }
 0x458   :  { %1063 = vrot.lane.b32.xlu1 %v919_v50, %s8370_s2 }
 0x45b   :  { %1061 = vrot.lane.b32.xlu0 %v918_v20, %s8370_s2 }
 0x45c   :  { %1059 = vrot.lane.b32.xlu1 %v917_v46, %s8370_s2 }
 0x45f   :  { %1057 = vrot.lane.b32.xlu0 %v916_v8, %s8370_s2 }
 0x460   :  { %1055 = vrot.lane.b32.xlu1 %v915_v57, %s8370_s2 }
 0x463   :  { %1053 = vrot.lane.b32.xlu0 %v914_v14, %s8370_s2 }
 0x464   :  { %1051 = vrot.lane.b32.xlu1 %v913_v15, %s8370_s2  ;;  %v509_v15 = vld [vmem:[%s8224_s5] sm:$0xff] }
 0x467   :  { %1089 = vrot.lane.b32.xlu0 %v932_v54, %s8370_s2 }
 0x468   :  { %1087 = vrot.lane.b32.xlu1 %v931_v30, %s8370_s2 }
 0x495   :  { %v1046_v62 = vpop.permute.xlu0 %1045 }
 0x496   :  { %v1044_v33 = vpop.permute.xlu1 %1043 }
 0x497   :  { %v1097_v56 = vsel %vm412_vm2, %v1044_v33, %v1046_v62 }
 0x499   :  { %v1050_v50 = vpop.permute.xlu0 %1049 }
 0x49a   :  { %1152 = vmatprep.subr.bf16.mxu1 %v1050_v50  ;;  %v1048_v1 = vpop.permute.xlu1 %1047 }
 0x49b   :  { %v1098_v39 = vsel %vm412_vm2, %v1048_v1, %v1050_v50 }
 0x49c   :  { %1153 = vmatpush1.bf16.msra.mxu1 %v1098_v39 }
 0x49d   :  { %v1042_v40 = vpop.permute.xlu0 %1041  ;;  %1154 = vmatprep.subr.bf16.mxu1 %v1046_v62 }
 0x49e   :  { %v1036_v10 = vpop.permute.xlu1 %1035 }
 0x4a0   :  { %1155 = vmatpush1.bf16.msra.mxu1 %v1097_v56 }
 0x4a1   :  { %v1038_v52 = vpop.permute.xlu0 %1037  ;;  %1156 = vmatprep.subr.bf16.mxu1 %v1042_v40 }
 0x4a2   :  { %v1040_v53 = vpop.permute.xlu1 %1039  ;;  %v1095_v31 = vsel %vm412_vm2, %v1036_v10, %v1038_v52 }
 0x4a3   :  { %v1096_v20 = vsel %vm412_vm2, %v1040_v53, %v1042_v40 }
 0x4a4   :  { %1157 = vmatpush1.bf16.msra.mxu1 %v1096_v20 }
 0x4a5   :  { %v4842_v11 = vpop.permute.xlu0 %4841  ;;  %1158 = vmatprep.subr.bf16.mxu1 %v1038_v52 }
 0x4a6   :  { %v4844_v46 = vunpack.i.h.bf16 %v4842_v11  ;;  %v4843_v0 = vunpack.i.l.bf16 %v4842_v11  ;;  %v4837_v60 = vpop.permute.xlu1 %4836 }
 0x4a7   :  { %v4839_v12 = vunpack.i.h.bf16 %v4837_v60  ;;  %v4838_v26 = vunpack.i.l.bf16 %v4837_v60 }
 0x4a8   :  { %v886_v9 = vsel %vm338_vm8, %v4843_v0, %v4844_v46  ;;  %1159 = vmatpush1.bf16.msra.mxu1 %v1095_v31 }
 0x4a9   :  { %v885_v23 = vsel %vm338_vm8, %v4838_v26, %v4839_v12  ;;  %v929_v47 = vpack.c.bf16 %v4843_v0, %v4838_v26  ;;  %v1034_v8 = vpop.permute.xlu0 %1033 }
 0x4aa   :  { %1160 = vmatprep.subr.bf16.mxu1 %v1034_v8  ;;  %v1032_v57 = vpop.permute.xlu1 %1031  ;;  %v930_v35 = vpack.c.bf16 %v886_v9, %v885_v23 }
 0x4ab   :  { %1083 = vrot.lane.b32.xlu1 %v929_v47, %s8370_s2  ;;  %v1094_v61 = vsel %vm412_vm2, %v1032_v57, %v1034_v8 }
 0x4ac   :  { %1161 = vmatpush1.bf16.msra.mxu1 %v1094_v61  ;;  %1085 = vrot.lane.b32.xlu0 %v930_v35, %s8370_s2 }
 0x4ad   :  { %v1030_v42 = vpop.permute.xlu0 %1029 }
 0x4ae   :  { %1162 = vmatprep.subr.bf16.mxu1 %v1030_v42  ;;  %v1028_v27 = vpop.permute.xlu1 %1027 }
 0x4af   :  { %945 = vperm.xlu1 %4684, %v511_v43   ;;  %v1093_v14 = vsel %vm412_vm2, %v1028_v27, %v1030_v42  ;;  %v5330_v27 = vld [vmem:[%s8223_s4 + $0x1c] ss:$12 sps:$4 sm:$0xff]  }
 0x4b0   :  { %1163 = vmatpush1.bf16.msra.mxu1 %v1093_v14  ;;  %950 = vperm.xlu0 %4683, %v512_v21   ;;  %v5327_v21 = vld [vmem:[%s8223_s4] ss:$12 sps:$4 sm:$0xff]  }
 0x4b1   :  { %v1026_v49 = vpop.permute.xlu0 %1025 }
 0x4b2   :  { %1164 = vmatprep.subr.bf16.mxu1 %v1026_v49  ;;  %v1024_v54 = vpop.permute.xlu1 %1023 }
 0x4b3   :  { %935 = vperm.xlu1 %4684, %v509_v15   ;;  %v1092_v30 = vsel %vm412_vm2, %v1024_v54, %v1026_v49  ;;  %v8373_v54 = vmov 0  }
 0x4b4   :  { %1165 = vmatpush1.bf16.msra.mxu1 %v1092_v30  ;;  %940 = vperm.xlu0 %4683, %v510_v18   ;;  %v5332_v18 = vld [vmem:[%s8223_s4 + $0x18] ss:$12 sps:$4 sm:$0xff]  }
 0x4b5   :  { %v1022_v62 = vpop.permute.xlu0 %1021 }
 0x4b6   :  { %1166 = vmatprep.subr.bf16.mxu1 %v1022_v62  ;;  %v1020_v33 = vpop.permute.xlu1 %1019 }
 0x4b7   :  { %v1091_v50 = vsel %vm412_vm2, %v1020_v33, %v1022_v62 }
 0x4b8   :  { %1167 = vmatpush1.bf16.msra.mxu1 %v1091_v50  ;;  %v5333_v50 = vld [vmem:[%s8223_s4 + $0x8] ss:$12 sps:$4 sm:$0xff]  }
 0x4b9   :  { %v1082_v1 = vpop.permute.xlu0 %1081 }
 0x4ba   :  { %1168 = vmatprep.subr.bf16.mxu1 %v1082_v1  ;;  %v1080_v39 = vpop.permute.xlu1 %1079 }
 0x4bb   :  { %v1106_v40 = vsel %vm412_vm2, %v1080_v39, %v1082_v1  ;;  %v5334_v1 = vld [vmem:[%s8223_s4 + $0x20] ss:$12 sps:$4 sm:$0xff]  }
 0x4bc   :  { %1169 = vmatpush2.bf16.msra.mxu1 %v1106_v40 }
 0x4bd   :  { %v1078_v10 = vpop.permute.xlu0 %1077 }
 0x4be   :  { %1170 = vmatprep.subr.bf16.mxu1 %v1078_v10  ;;  %v1076_v56 = vpop.permute.xlu1 %1075 }
 0x4bf   :  { %v1105_v52 = vsel %vm412_vm2, %v1076_v56, %v1078_v10 }
 0x4c0   :  { %1171 = vmatpush2.bf16.msra.mxu1 %v1105_v52 }
 0x4c1   :  { %v1074_v53 = vpop.permute.xlu0 %1073 }
 0x4c2   :  { %1172 = vmatprep.subr.bf16.mxu1 %v1074_v53  ;;  %v1072_v20 = vpop.permute.xlu1 %1071 }
 0x4c3   :  { %v1104_v11 = vsel %vm412_vm2, %v1072_v20, %v1074_v53 }
 0x4c4   :  { %1173 = vmatpush2.bf16.msra.mxu1 %v1104_v11 }
 0x4c5   :  { %v1070_v46 = vpop.permute.xlu0 %1069 }
 0x4c6   :  { %1174 = vmatprep.subr.bf16.mxu1 %v1070_v46  ;;  %v1068_v0 = vpop.permute.xlu1 %1067 }
 0x4c7   :  { %v1103_v60 = vsel %vm412_vm2, %v1068_v0, %v1070_v46 }
 0x4c8   :  { %1175 = vmatpush2.bf16.msra.mxu1 %v1103_v60 }
 0x4c9   :  { %v1066_v12 = vpop.permute.xlu0 %1065 }
 0x4ca   :  { %1176 = vmatprep.subr.bf16.mxu1 %v1066_v12  ;;  %v1064_v26 = vpop.permute.xlu1 %1063 }
 0x4cb   :  { %v1102_v31 = vsel %vm412_vm2, %v1064_v26, %v1066_v12 }
 0x4cc   :  { %1177 = vmatpush2.bf16.msra.mxu1 %v1102_v31 }
 0x4cd   :  { %v1062_v9 = vpop.permute.xlu0 %1061 }
 0x4ce   :  { %1178 = vmatprep.subr.bf16.mxu1 %v1062_v9  ;;  %v1060_v23 = vpop.permute.xlu1 %1059 }
 0x4cf   :  { %v1101_v47 = vsel %vm412_vm2, %v1060_v23, %v1062_v9 }
 0x4d0   :  { %1179 = vmatpush2.bf16.msra.mxu1 %v1101_v47 }
 0x4d1   :  { %v1058_v8 = vpop.permute.xlu0 %1057 }
 0x4d2   :  { %1180 = vmatprep.subr.bf16.mxu1 %v1058_v8  ;;  %v1056_v57 = vpop.permute.xlu1 %1055 }
 0x4d3   :  { %v1100_v35 = vsel %vm412_vm2, %v1056_v57, %v1058_v8 }
 0x4d4   :  { %1181 = vmatpush2.bf16.msra.mxu1 %v1100_v35 }
 0x4d5   :  { %v1054_v61 = vpop.permute.xlu0 %1053 }
 0x4d6   :  { %1182 = vmatprep.subr.bf16.mxu1 %v1054_v61  ;;  %v1052_v43 = vpop.permute.xlu1 %1051 }
 0x4d7   :  { %v1099_v42 = vsel %vm412_vm2, %v1052_v43, %v1054_v61 }
 0x4d8   :  { %1183 = vmatpush2.bf16.msra.mxu1 %v1099_v42 }
 0x4d9   :  { %v1090_v14 = vpop.permute.xlu0 %1089 }
 0x4da   :  { %1217 = vmatprep.subr.bf16.mxu1 %v1090_v14  ;;  %v1088_v15 = vpop.permute.xlu1 %1087 }
 0x4db   :  { %v1108_v49 = vsel %vm412_vm2, %v1088_v15, %v1090_v14  ;;  %1185 = vmatmul.mubr.bf16.vlgmr.msra.gmra.mxu1 %v5327_v21 }
 0x4dc   :  { %1218 = vmatpush1.bf16.msra.mxu1 %v1108_v49  ;;  %1194 = vmatprep.mubr.bf16.mxu1 %v5330_v27 }
 0x4e3   :  { %1195 = vmatmul.mubr.bf16.gmra.mxu1 %v5332_v18 }
 0x4e4   :  { %1237 = vmatprep.mubr.bf16.mxu1 %v8373_v54 }
 0x51d   :  { %v1084_v30 = vpop.permute.xlu1 %1083 }
 0x51e   :  { %v1086_v62 = vpop.permute.xlu0 %1085 }
 0x51f   :  { %1219 = vmatprep.subr.bf16.mxu1 %v1086_v62  ;;  %v1107_v33 = vsel %vm412_vm2, %v1084_v30, %v1086_v62 }
 0x520   :  { %1220 = vmatpush1.bf16.msra.mxu1 %v1107_v33 }
 0x523   :  { %4435 = vmatmul.mubr.msk.bf16.vlgmr.msra.gmra.mxu1 %vm1145_vm4, %v5333_v50 }
 0x524   :  { %1247 = vmatprep.mubr.bf16.mxu1 %v8373_v54 }
 0x52a   :  { %v946_v20 = vpop.permute.xlu1 %945 }
 0x52b   :  { %4436 = vmatmul.mubr.msk.bf16.gmra.mxu1 %vm1145_vm4, %v5334_v1  ;;  %v951_v46 = vpop.permute.xlu0 %950 }
 0x52c   :  { %2003 = vmatprep.mubr.bf16.mxu1 %v8373_v54 }
 0x52e   :  { %v936_v60 = vpop.permute.xlu1 %935 }
 0x52f   :  { %v941_v23 = vpop.permute.xlu0 %940 }
 0x59b   :  { %v1186_v39 = vpop.f32.mrf.mxu1 }
 0x59c   :  { %v1187_v42 = vadd.f32 %v1186_v39, %v936_v60 }
 0x59d   :  { %v1188_v40 = vpop.f32.mrf.mxu1 }
 0x59e   :  { %v1189_v26 = vadd.f32 %v1188_v40, %v936_v60 }
 0x59f   :  { %v1190_v10 = vpop.f32.mrf.mxu1 }
 0x5a0   :  { %v1191_v33 = vadd.f32 %v1190_v10, %v941_v23 }
 0x5a1   :  { %v1192_v56 = vpop.f32.mrf.mxu1 }
 0x5a2   :  { %v1193_v8 = vadd.f32 %v1192_v56, %v941_v23 }
 0x5a3   :  { %v1196_v52 = vpop.f32.mrf.mxu1 }
 0x5a4   :  { %v1197_v35 = vadd.f32 %v1196_v52, %v946_v20 }
 0x5a5   :  { %v1198_v53 = vpop.f32.mrf.mxu1 }
 0x5a6   :  { %v1199_v21 = vadd.f32 %v1198_v53, %v946_v20 }
 0x5a7   :  { %v1200_v11 = vpop.f32.mrf.mxu1 }
 0x5a8   :  { %v1201_v15 = vadd.f32 %v1200_v11, %v951_v46 }
 0x5a9   :  { %v1202_v0 = vpop.f32.mrf.mxu1 }
 0x5aa   :  { %v1203_v52 = vadd.f32 %v1202_v0, %v951_v46 }
 0x5e3   :  { %v1239_v12 = vpop.f32.mrf.mxu1 }
 0x5e4   :  { %v1240_v49 = vadd.f32 %v1239_v12, %v1187_v42 }
 0x5e5   :  { %v1241_v31 = vpop.f32.mrf.mxu1 }
 0x5e6   :  { %v6105_v9 = vadd.f32 %v1241_v31, %v1189_v26  ;;  %v6115_v1 = vmax.f32 %v1240_v49, 0.0 }
 0x5e7   :  { %v1243_v47 = vpop.f32.mrf.mxu1 }
 0x5e8   :  { %8374 = vst [vmem:[#allocation30_spill] sm:$0xff] %v6105_v9  ;;  %8376 = vst [vmem:[#allocation32_spill] sm:$0xff] %v6115_v1  ;;  %v1244_v40 = vadd.f32 %v1243_v47, %v1191_v33  ;;  %v8253_v60 = vmax.f32 %v6105_v9, 0.0  ;;  %v6141_v26 = vmul.f32 %v6115_v1, %v5623_v48  ;;  %v6145_v46 = vmul.f32 %v6115_v1, %v5610_v41 }
 0x5e9   :  { %v1245_v57 = vpop.f32.mrf.mxu1  ;;  %v6163_v47 = vmul.f32 %v6115_v1, %v5634_v55  ;;  %v6190_v49 = vmul.f32 %v6115_v1, %v5600_v37 }
 0x5ea   :  { %v6107_v61 = vadd.f32 %v1245_v57, %v1193_v8  ;;  %v6123_v39 = vmax.f32 %v1244_v40, 0.0 }
 0x5eb   :  { %v1249_v43 = vpop.f32.mrf.mxu1 }
 0x5ec   :  { %8375 = vst [vmem:[#allocation31_spill] sm:$0xff] %v6107_v61  ;;  %v1250_v27 = vadd.f32 %v1249_v43, %v1197_v35  ;;  %8377 = vst [vmem:[#allocation33_spill] sm:$0xff] %v6123_v39 }
 0x5ed   :  { %v1251_v14 = vpop.f32.mrf.mxu1 }
 0x5ee   :  { %v6109_v18 = vmax.f32 %v1250_v27, 0.0  ;;  %v6111_v30 = vadd.f32 %v1251_v14, %v1199_v21  ;;  %v6182_v14 = vmul.f32 %v6123_v39, %v5623_v48 }
 0x5ef   :  { %v1253_v62 = vpop.f32.mrf.mxu1 }
 0x5f0   :  { %v1254_v50 = vadd.f32 %v1253_v62, %v1201_v15  ;;  %1286 = vrot.lane.b32.xlu1 %v6109_v18, %s5405_s22  ;;  %v8255_v53 = vmax.f32 %v6111_v30, 0.0  ;;  %v6151_v0 = vmul.f32 %v6109_v18, %v5623_v48  ;;  %v6159_v23 = vmul.f32 %v6109_v18, %v5610_v41 }
 0x5f1   :  { %v1255_v10 = vpop.f32.mrf.mxu1  ;;  %v6172_v35 = vmul.f32 %v6109_v18, %v5634_v55  ;;  %v6186_v15 = vmul.f32 %v6123_v39, %v5610_v41 }
 0x5f2   :  { %v6117_v56 = vmax.f32 %v1254_v50, 0.0  ;;  %v6128_v20 = vadd.f32 %v1255_v10, %v1203_v52  ;;  %v6213_v52 = vmul.f32 %v6123_v39, %v5634_v55 }
 0x5f4   :  { %1280 = vrot.lane.b32.xlu1 %v6115_v1, %s5405_s22  ;;  %1289 = vrot.lane.b32.xlu0 %v6117_v56, %s5405_s22  ;;  %v8254_v8 = vmax.f32 %v6128_v20, 0.0  ;;  %8378 = vst [vmem:[#allocation34_spill] sm:$0xff] %v6213_v52  ;;  %v6237_v27 = vmul.f32 %v6117_v56, %v5610_v41  ;;  %v8382_v41 = vmax.f32 %v6107_v61, 0.0  ;;  %v6280_v34 = vmul.f32 %v6117_v56, %v5600_v37 }
 0x5f8   :  { %1283 = vrot.lane.b32.xlu0 %v6123_v39, %s5405_s22 }
 0x662   :  { %v6130_v11 = vpop.permute.xlu1 %1286 }
 0x663   :  { %v6137_v12 = vsel %vm74_vm0, %v6130_v11, %v8255_v53  ;;  %v6225_v53 = vmul.f32 %v6117_v56, %v5623_v48 }
 0x664   :  { %1296 = vrot.lane.b32.xlu1 %v6137_v12, %s5405_s22  ;;  %v6155_v31 = vmul.f32 %v6137_v12, %v5626_v51  ;;  %v6168_v57 = vmul.f32 %v6137_v12, %v5613_v44  ;;  %v6176_v43 = vmul.f32 %v6137_v12, %v5637_v58  ;;  %v6253_v48 = vmul.f32 %v6137_v12, %v5603_v38 }
 0x665   :  { %v6284_v36 = vmul.f32 %v6137_v12, %v5692_v59 }
 0x666   :  { %v1281_v42 = vpop.permute.xlu1 %1280  ;;  %v1290_v21 = vpop.permute.xlu0 %1289  ;;  %8381 = vst [vmem:[#allocation37_spill] sm:$0xff] %v6253_v48 }
 0x667   :  { %v6195_v62 = vsel %vm74_vm0, %v1281_v42, %v8253_v60  ;;  %v6200_v33 = vsel %vm74_vm0, %v1290_v21, %v8254_v8  ;;  %v6217_v60 = vmul.f32 %v6109_v18, %v5600_v37  ;;  %v6221_v8 = vmul.f32 %v6123_v39, %v5600_v37  ;;  %8383 = vst [vmem:[#allocation38_spill] sm:$0xff] %v6284_v36 }
 0x668   :  { %1292 = vrot.lane.b32.xlu1 %v6195_v62, %s5405_s22  ;;  %1298 = vrot.lane.b32.xlu0 %v6200_v33, %s5405_s22  ;;  %v6229_v40 = vmul.f32 %v6200_v33, %v5626_v51  ;;  %v6233_v50 = vmul.f32 %v6195_v62, %v5626_v51  ;;  %v6241_v5 = vmul.f32 %v6195_v62, %v5613_v44 }
 0x669   :  { %8379 = vst [vmem:[#allocation35_spill] sm:$0xff] %v6217_v60  ;;  %8380 = vst [vmem:[#allocation36_spill] sm:$0xff] %v6221_v8  ;;  %v6245_v6 = vmul.f32 %v6200_v33, %v5613_v44  ;;  %v6249_v3 = vmul.f32 %v6195_v62, %v5637_v58  ;;  %v6266_v32 = vmul.f32 %v6200_v33, %v5637_v58 }
 0x66a   :  { %v1284_v10 = vpop.permute.xlu0 %1283  ;;  %v6324_v22 = vmul.f32 %v6200_v33, %v5692_v59  ;;  %v6328_v24 = vmul.f32 %v6195_v62, %v5692_v59  ;;  %v1328_v37 = vmul.f32 %v6195_v62, %v5648_v2 }
 0x66b   :  { %v6258_v45 = vsel %vm74_vm0, %v1284_v10, %v8382_v41  ;;  %v6276_v41 = vmul.f32 %v6117_v56, %v5634_v55  ;;  %v6314_v55 = vmul.f32 %v6195_v62, %v5603_v38 }
 0x66c   :  { %1294 = vrot.lane.b32.xlu0 %v6258_v45, %s5405_s22  ;;  %v6272_v25 = vmul.f32 %v6258_v45, %v5626_v51  ;;  %v6292_v51 = vmul.f32 %v6258_v45, %v5613_v44  ;;  %v6302_v54 = vmul.f32 %v6258_v45, %v5637_v58  ;;  %v6310_v44 = vmul.f32 %v6200_v33, %v5603_v38 }
 0x66d   :  { %v6318_v16 = vmul.f32 %v6258_v45, %v5603_v38  ;;  %8385 = vst [vmem:[#allocation40_spill] sm:$0xff] %v6324_v22  ;;  %8386 = vst [vmem:[#allocation41_spill] sm:$0xff] %v6328_v24  ;;  %v6332_v58 = vmul.f32 %v6258_v45, %v5692_v59  ;;  %v1322_v8 = vmul.f32 %v6258_v45, %v5646_v63 }
 0x66f   :  { %8384 = vst [vmem:[#allocation39_spill] sm:$0xff] %v6318_v16  ;;  %8387 = vst [vmem:[#allocation42_spill] sm:$0xff] %v6332_v58 }
 0x6d6   :  { %v1297_v48 = vpop.permute.xlu1 %1296 }
 0x6d7   :  { %v1302_v39 = vsel %vm74_vm0, %v1297_v48, %v6130_v11  ;;  %v1320_v48 = vmul.f32 %v6195_v62, %v5646_v63 }
 0x6d8   :  { %v6356_v36 = vmul.f32 %v1302_v39, %v5701_v19 }
 0x6da   :  { %v1293_v1 = vpop.permute.xlu1 %1292  ;;  %v1299_v9 = vpop.permute.xlu0 %1298  ;;  %8388 = vst [vmem:[#allocation43_spill] sm:$0xff] %v6356_v36 }
 0x6db   :  { %v1300_v59 = vsel %vm74_vm0, %v1293_v1, %v1281_v42  ;;  %v1303_v52 = vsel %vm74_vm0, %v1299_v9, %v1290_v21 }
 0x6dc   :  { %v1329_v38 = vmul.f32 %v1300_v59, %v5654_v7  ;;  %v6352_v61 = vmul.f32 %v1303_v52, %v5701_v19  ;;  %v1321_v60 = vmul.f32 %v1300_v59, %v5651_v4  ;;  %v6362_v1 = vmul.f32 %v1300_v59, %v5701_v19 }
 0x6dd   :  { %v1313_v16 = vmul.f32 %v1300_v59, %v5670_v17 }
 0x6de   :  { %v1295_v24 = vpop.permute.xlu0 %1294  ;;  %v4845_v58 = vpack.i.bf16 %v1329_v38, %v1328_v37  ;;  %v1330_v37 = vmul.f32 %v6258_v45, %v5648_v2  ;;  %v1333_v38 = vmul.f32 %v1302_v39, %v5654_v7 }
 0x6df   :  { %v1301_v9 = vsel %vm74_vm0, %v1295_v24, %v1284_v10  ;;  %v4850_v10 = vpack.i.bf16 %v1321_v60, %v1320_v48  ;;  %v1335_v24 = vmul.f32 %v1303_v52, %v5654_v7  ;;  %v1312_v48 = vmul.f32 %v6195_v62, %v5667_v13 }
 0x6e0   :  { %v6365_v11 = vmul.f32 %v1301_v9, %v5701_v19  ;;  %v1331_v42 = vmul.f32 %v1301_v9, %v5654_v7  ;;  %4846 = vrot.lane.b32.xlu1 %v4845_v58, %s5418_s3  ;;  %v1323_v21 = vmul.f32 %v1301_v9, %v5651_v4  ;;  %v1332_v58 = vmul.f32 %v6137_v12, %v5648_v2 }
 0x6e1   :  { %v1317_v62 = vmul.f32 %v1302_v39, %v5670_v17 }
 0x6e2   :  { %v4855_v22 = vpack.i.bf16 %v1331_v42, %v1330_v37  ;;  %v1665_v19 = vpack.c.bf16 %v6365_v11, %v6362_v1  ;;  %v4865_v36 = vpack.i.bf16 %v1333_v38, %v1332_v58  ;;  %v4860_v60 = vpack.i.bf16 %v1323_v21, %v1322_v8 }
 0x6e3   :  { %v1325_v42 = vmul.f32 %v1302_v39, %v5651_v4  ;;  %v1315_v37 = vmul.f32 %v1301_v9, %v5670_v17  ;;  %v1314_v8 = vmul.f32 %v6258_v45, %v5667_v13  ;;  %v1327_v38 = vmul.f32 %v1303_v52, %v5651_v4 }
 0x6e4   :  { %4851 = vrot.lane.b32.xlu1 %v4850_v10, %s8311_s26  ;;  %4856 = vrot.lane.b32.xlu0 %v4855_v22, %s5418_s3  ;;  %v1334_v22 = vmul.f32 %v6200_v33, %v5648_v2  ;;  %v4870_v10 = vpack.i.bf16 %v1313_v16, %v1312_v48  ;;  %v1316_v16 = vmul.f32 %v6137_v12, %v5667_v13 }
 0x6e5   :  { %v4890_v58 = vpack.i.bf16 %v1315_v37, %v1314_v8  ;;  %v1326_v9 = vmul.f32 %v6200_v33, %v5646_v63  ;;  %v1319_v45 = vmul.f32 %v1303_v52, %v5670_v17  ;;  %v8389_v39 = vpack.i.bf16 %v6155_v31, %v6151_v0 }
 0x6e6   :  { %v4885_v59 = vpack.i.bf16 %v1335_v24, %v1334_v22  ;;  %v4880_v24 = vpack.i.bf16 %v1317_v62, %v1316_v16  ;;  %v1318_v48 = vmul.f32 %v6200_v33, %v5667_v13  ;;  %v8392_v0 = vpack.i.bf16 %v6168_v57, %v6159_v23  ;;  %v8407_v33 = vld [vmem:[#allocation32_spill] sm:$0xff] }
 0x6e7   :  { %v8394_v31 = vpack.i.bf16 %v6241_v5, %v6145_v46  ;;  %v8397_v23 = vpack.i.bf16 %v6176_v43, %v6172_v35  ;;  %v8399_v57 = vmax.f32 %v6111_v30, 0.0  ;;  %v1340_v46 = vmul.f32 %v6109_v18, %v5586_v28  ;;  %v8403_v18 = vld [vmem:[#allocation34_spill] sm:$0xff] }
 0x6e8   :  { %4866 = vrot.lane.b32.xlu1 %v4865_v36, %s5418_s3  ;;  %4861 = vrot.lane.b32.xlu0 %v4860_v60, %s8311_s26  ;;  %v1324_v36 = vmul.f32 %v6137_v12, %v5646_v63  ;;  %v4900_v60 = vpack.i.bf16 %v1327_v38, %v1326_v9  ;;  %v8390_v12 = vpack.i.bf16 %v6229_v40, %v6225_v53  ;;  %v8409_v40 = vld [vmem:[#allocation35_spill] sm:$0xff] }
 0x6e9   :  { %v4915_v22 = vpack.i.bf16 %v1319_v45, %v1318_v48  ;;  %v8393_v53 = vpack.i.bf16 %v6272_v25, %v6182_v14  ;;  %v8398_v25 = vpack.i.bf16 %v6292_v51, %v6186_v15  ;;  %v1341_v5 = vmul.f32 %v8399_v57, %v5589_v29  ;;  %v8416_v38 = vld [vmem:[#allocation39_spill] sm:$0xff] }
 0x6ea   :  { %v4875_v21 = vpack.i.bf16 %v1325_v42, %v1324_v36  ;;  %v8391_v42 = vpack.i.bf16 %v6233_v50, %v6141_v26  ;;  %v8395_v26 = vpack.i.bf16 %v6245_v6, %v6237_v27  ;;  %v8400_v6 = vpack.i.bf16 %v6249_v3, %v6163_v47  ;;  %v8405_v47 = vld [vmem:[#allocation30_spill] sm:$0xff] }
 0x6eb   :  { %v8401_v35 = vpack.i.bf16 %v6266_v32, %v6276_v41  ;;  %v4965_v43 = vpack.i.bf16 %v1341_v5, %v1340_v46  ;;  %v8402_v51 = vmax.f32 %v6128_v20, 0.0  ;;  %v1342_v30 = vmul.f32 %v6117_v56, %v5586_v28  ;;  %v8408_v20 = vld [vmem:[#allocation37_spill] sm:$0xff]  ;;  %v8411_v41 = vld [vmem:[#allocation31_spill] sm:$0xff] }
 0x6ec   :  { %4871 = vrot.lane.b32.xlu1 %v4870_v10, %s8309_s27  ;;  %4886 = vrot.lane.b32.xlu0 %v4885_v59, %s5418_s3  ;;  %v8404_v3 = vpack.i.bf16 %v6302_v54, %v8403_v18  ;;  %v8406_v14 = vmax.f32 %v8405_v47, 0.0  ;;  %v1336_v50 = vmul.f32 %v8407_v33, %v5586_v28  ;;  %v8410_v52 = vpack.i.bf16 %v8408_v20, %v8409_v40  ;;  %v8413_v10 = vld [vmem:[#allocation33_spill] sm:$0xff] }
 0x6ed   :  { %v1343_v27 = vmul.f32 %v8402_v51, %v5589_v29  ;;  %v8412_v54 = vmax.f32 %v8411_v41, 0.0  ;;  %v1338_v59 = vmul.f32 %v8413_v10, %v5586_v28  ;;  %v8414_v36 = vpack.i.bf16 %v6310_v44, %v6280_v34 }
 0x6ee   :  { %v1337_v32 = vmul.f32 %v8406_v14, %v5589_v29  ;;  %v8415_v62 = vpack.i.bf16 %v6314_v55, %v6190_v49 }
 0x6ef   :  { %v4970_v15 = vpack.i.bf16 %v1343_v27, %v1342_v30  ;;  %v1339_v37 = vmul.f32 %v8412_v54, %v5589_v29 }
 0x6f0   :  { %4876 = vrot.lane.b32.xlu1 %v4875_v21, %s8311_s26  ;;  %4891 = vrot.lane.b32.xlu0 %v4890_v58, %s8309_s27  ;;  %v4985_v56 = vpack.i.bf16 %v1337_v32, %v1336_v50  ;;  %v8417_v21 = vld [vmem:[#allocation36_spill] sm:$0xff] }
 0x6f1   :  { %v4990_v8 = vpack.i.bf16 %v1339_v37, %v1338_v59  ;;  %v8418_v58 = vpack.i.bf16 %v8416_v38, %v8417_v21 }
 0x6f4   :  { %4881 = vrot.lane.b32.xlu1 %v4880_v24, %s8309_s27  ;;  %4901 = vrot.lane.b32.xlu0 %v4900_v60, %s8311_s26 }
 0x6f8   :  { %4896 = vrot.lane.b32.xlu1 %v8389_v39, %s8307_s24  ;;  %4906 = vrot.lane.b32.xlu0 %v8390_v12, %s8307_s24 }
 0x6fc   :  { %4911 = vrot.lane.b32.xlu1 %v8391_v42, %s8307_s24  ;;  %4916 = vrot.lane.b32.xlu0 %v4915_v22, %s8309_s27 }
 0x700   :  { %4926 = vrot.lane.b32.xlu1 %v8392_v0, %s8305_s12  ;;  %4921 = vrot.lane.b32.xlu0 %v8393_v53, %s8307_s24 }
 0x704   :  { %4936 = vrot.lane.b32.xlu1 %v8394_v31, %s8305_s12  ;;  %4931 = vrot.lane.b32.xlu0 %v8395_v26, %s8305_s12 }
 0x708   :  { %4946 = vrot.lane.b32.xlu1 %v8397_v23, %s8396_s0  ;;  %4941 = vrot.lane.b32.xlu0 %v8398_v25, %s8305_s12 }
 0x70c   :  { %4956 = vrot.lane.b32.xlu1 %v8400_v6, %s8396_s0  ;;  %4951 = vrot.lane.b32.xlu0 %v8401_v35, %s8396_s0 }
 0x710   :  { %4966 = vrot.lane.b32.xlu1 %v4965_v43, %s8368_s30  ;;  %4961 = vrot.lane.b32.xlu0 %v8404_v3, %s8396_s0 }
 0x714   :  { %4976 = vrot.lane.b32.xlu1 %v8410_v52, %s8369_s20  ;;  %4971 = vrot.lane.b32.xlu0 %v4970_v15, %s8368_s30 }
 0x718   :  { %4986 = vrot.lane.b32.xlu1 %v4985_v56, %s8368_s30  ;;  %4981 = vrot.lane.b32.xlu0 %v8414_v36, %s8369_s20 }
 0x71c   :  { %4996 = vrot.lane.b32.xlu1 %v8415_v62, %s8369_s20  ;;  %4991 = vrot.lane.b32.xlu0 %v4990_v8, %s8368_s30 }
 0x720   :  { %5001 = vrot.lane.b32.xlu0 %v8418_v58, %s8369_s20 }
 0x752   :  { %v4847_v16 = vpop.permute.xlu1 %4846 }
 0x753   :  { %v4849_v9 = vunpack.i.h.bf16 %v4847_v16  ;;  %v4848_v24 = vunpack.i.l.bf16 %v4847_v16 }
 0x755   :  { %v1472_v39 = vsel %vm289_vm14, %v4848_v24, %v4849_v9 }
 0x756   :  { %v4852_v60 = vpop.permute.xlu1 %4851  ;;  %v4857_v45 = vpop.permute.xlu0 %4856 }
 0x757   :  { %v4859_v44 = vunpack.i.h.bf16 %v4857_v45  ;;  %v4858_v34 = vunpack.i.l.bf16 %v4857_v45  ;;  %v4854_v5 = vunpack.i.h.bf16 %v4852_v60  ;;  %v4853_v46 = vunpack.i.l.bf16 %v4852_v60 }
 0x759   :  { %v1677_v12 = vpack.c.bf16 %v4859_v44, %v4849_v9  ;;  %v1473_v55 = vsel %vm289_vm14, %v4858_v34, %v4859_v44  ;;  %v1436_v3 = vsel %vm279_vm13, %v4853_v46, %v4854_v5 }
 0x75a   :  { %v4867_v49 = vpop.permute.xlu1 %4866  ;;  %v4862_v48 = vpop.permute.xlu0 %4861  ;;  %v1676_v22 = vpack.c.bf16 %v1473_v55, %v1472_v39 }
 0x75b   :  { %1812 = vrot.lane.b32.xlu0 %v1677_v12, %s8370_s2  ;;  %v4869_v42 = vunpack.i.h.bf16 %v4867_v49  ;;  %v4868_v0 = vunpack.i.l.bf16 %v4867_v49  ;;  %v4864_v26 = vunpack.i.h.bf16 %v4862_v48  ;;  %v4863_v23 = vunpack.i.l.bf16 %v4862_v48 }
 0x75c   :  { %1810 = vrot.lane.b32.xlu1 %v1676_v22, %s8370_s2 }
 0x75d   :  { %v1474_v6 = vsel %vm289_vm14, %v4868_v0, %v4869_v42  ;;  %v1437_v18 = vsel %vm279_vm13, %v4863_v23, %v4864_v26  ;;  %v1673_v38 = vpack.c.bf16 %v4864_v26, %v4854_v5  ;;  %v8419_v0 = vld [vmem:[#allocation40_spill] sm:$0xff] }
 0x75e   :  { %v4872_v53 = vpop.permute.xlu1 %4871  ;;  %v4887_v31 = vpop.permute.xlu0 %4886  ;;  %v1672_v33 = vpack.c.bf16 %v1437_v18, %v1436_v3 }
 0x75f   :  { %v4889_v25 = vunpack.i.h.bf16 %v4887_v31  ;;  %v4888_v57 = vunpack.i.l.bf16 %v4887_v31  ;;  %v4874_v56 = vunpack.i.h.bf16 %v4872_v53  ;;  %v4873_v41 = vunpack.i.l.bf16 %v4872_v53  ;;  %v8420_v53 = vld [vmem:[#allocation38_spill] sm:$0xff] }
 0x760   :  { %v8421_v31 = vpack.c.bf16 %v8419_v0, %v8420_v53 }
 0x761   :  { %v1679_v35 = vpack.c.bf16 %v4889_v25, %v4869_v42  ;;  %v1475_v43 = vsel %vm289_vm14, %v4888_v57, %v4889_v25  ;;  %v1400_v21 = vsel %vm269_vm15, %v4873_v41, %v4874_v56 }
 0x762   :  { %v4877_v51 = vpop.permute.xlu1 %4876  ;;  %v4892_v27 = vpop.permute.xlu0 %4891  ;;  %v1678_v30 = vpack.c.bf16 %v1475_v43, %v1474_v6  ;;  %v8422_v6 = vld [vmem:[#allocation43_spill] sm:$0xff]  ;;  %v8424_v43 = vld [vmem:[#allocation42_spill] sm:$0xff] }
 0x763   :  { %1816 = vrot.lane.b32.xlu0 %v1679_v35, %s8370_s2  ;;  %v4879_v47 = vunpack.i.h.bf16 %v4877_v51  ;;  %v4878_v14 = vunpack.i.l.bf16 %v4877_v51  ;;  %v4894_v50 = vunpack.i.h.bf16 %v4892_v27  ;;  %v4893_v20 = vunpack.i.l.bf16 %v4892_v27  ;;  %v8425_v51 = vld [vmem:[#allocation41_spill] sm:$0xff] }
 0x764   :  { %1814 = vrot.lane.b32.xlu1 %v1678_v30, %s8370_s2  ;;  %v8423_v35 = vpack.c.bf16 %v6352_v61, %v8422_v6  ;;  %v8426_v27 = vpack.c.bf16 %v8424_v43, %v8425_v51 }
 0x765   :  { %v1438_v54 = vsel %vm279_vm13, %v4878_v14, %v4879_v47  ;;  %v1401_v62 = vsel %vm269_vm15, %v4893_v20, %v4894_v50  ;;  %v1669_v22 = vpack.c.bf16 %v4894_v50, %v4874_v56 }
 0x766   :  { %v4882_v32 = vpop.permute.xlu1 %4881  ;;  %v4902_v15 = vpop.permute.xlu0 %4901  ;;  %v1668_v60 = vpack.c.bf16 %v1401_v62, %v1400_v21 }
 0x767   :  { %v4904_v40 = vunpack.i.h.bf16 %v4902_v15  ;;  %v4903_v52 = vunpack.i.l.bf16 %v4902_v15  ;;  %v4884_v58 = vunpack.i.h.bf16 %v4882_v32  ;;  %v4883_v16 = vunpack.i.l.bf16 %v4882_v32 }
 0x768   :  { %1802 = vrot.lane.b32.xlu1 %v1672_v33, %s8370_s2 }
 0x769   :  { %v1675_v37 = vpack.c.bf16 %v4904_v40, %v4879_v47  ;;  %v1439_v10 = vsel %vm279_vm13, %v4903_v52, %v4904_v40  ;;  %v1402_v34 = vsel %vm269_vm15, %v4883_v16, %v4884_v58 }
 0x76a   :  { %v4897_v59 = vpop.permute.xlu1 %4896  ;;  %v4907_v36 = vpop.permute.xlu0 %4906  ;;  %v1674_v8 = vpack.c.bf16 %v1439_v10, %v1438_v54 }
 0x76b   :  { %1808 = vrot.lane.b32.xlu0 %v1675_v37, %s8370_s2  ;;  %v4899_v26 = vunpack.i.h.bf16 %v4897_v59  ;;  %v4898_v23 = vunpack.i.l.bf16 %v4897_v59  ;;  %v4909_v57 = vunpack.i.h.bf16 %v4907_v36  ;;  %v4908_v5 = vunpack.i.l.bf16 %v4907_v36 }
 0x76c   :  { %1806 = vrot.lane.b32.xlu1 %v1674_v8, %s8370_s2 }
 0x76d   :  { %v1618_v30 = vsel %vm328_vm10, %v4898_v23, %v4899_v26  ;;  %v1619_v18 = vsel %vm328_vm10, %v4908_v5, %v4909_v57  ;;  %v1694_v3 = vpack.c.bf16 %v4908_v5, %v4898_v23 }
 0x76e   :  { %v4912_v9 = vpop.permute.xlu1 %4911  ;;  %v4917_v24 = vpop.permute.xlu0 %4916  ;;  %v1695_v50 = vpack.c.bf16 %v1619_v18, %v1618_v30 }
 0x76f   :  { %v4919_v45 = vunpack.i.h.bf16 %v4917_v24  ;;  %v4918_v44 = vunpack.i.l.bf16 %v4917_v24  ;;  %1804 = vrot.lane.b32.xlu0 %v1673_v38, %s8370_s2  ;;  %v4914_v61 = vunpack.i.h.bf16 %v4912_v9  ;;  %v4913_v33 = vunpack.i.l.bf16 %v4912_v9 }
 0x770   :  { %1794 = vrot.lane.b32.xlu1 %v1668_v60, %s8370_s2 }
 0x771   :  { %v1671_v39 = vpack.c.bf16 %v4919_v45, %v4884_v58  ;;  %v1403_v12 = vsel %vm269_vm15, %v4918_v44, %v4919_v45  ;;  %v1616_v54 = vsel %vm328_vm10, %v4913_v33, %v4914_v61 }
 0x772   :  { %v4922_v55 = vpop.permute.xlu0 %4921  ;;  %v1670_v49 = vpack.c.bf16 %v1403_v12, %v1402_v34  ;;  %v4927_v48 = vpop.permute.xlu1 %4926 }
 0x773   :  { %1800 = vrot.lane.b32.xlu0 %v1671_v39, %s8370_s2  ;;  %v4924_v47 = vunpack.i.h.bf16 %v4922_v55  ;;  %v4923_v14 = vunpack.i.l.bf16 %v4922_v55  ;;  %v4929_v37 = vunpack.i.h.bf16 %v4927_v48  ;;  %v4928_v10 = vunpack.i.l.bf16 %v4927_v48 }
 0x774   :  { %1798 = vrot.lane.b32.xlu1 %v1670_v49, %s8370_s2 }
 0x775   :  { %v1617_v20 = vsel %vm328_vm10, %v4923_v14, %v4924_v47  ;;  %v1692_v40 = vpack.c.bf16 %v4923_v14, %v4913_v33  ;;  %v1582_v62 = vsel %vm318_vm9, %v4928_v10, %v4929_v37 }
 0x776   :  { %v4932_v42 = vpop.permute.xlu0 %4931  ;;  %v4937_v25 = vpop.permute.xlu1 %4936  ;;  %v1693_v1 = vpack.c.bf16 %v1617_v20, %v1616_v54 }
 0x777   :  { %1796 = vrot.lane.b32.xlu0 %v1669_v22, %s8370_s2  ;;  %v4934_v52 = vunpack.i.h.bf16 %v4932_v42  ;;  %v4933_v56 = vunpack.i.l.bf16 %v4932_v42  ;;  %v4939_v38 = vunpack.i.h.bf16 %v4937_v25  ;;  %v4938_v21 = vunpack.i.l.bf16 %v4937_v25 }
 0x778   :  { %1790 = vrot.lane.b32.xlu1 %v8421_v31, %s8370_s2 }
 0x779   :  { %v1583_v11 = vsel %vm318_vm9, %v4933_v56, %v4934_v52  ;;  %v1690_v59 = vpack.c.bf16 %v4933_v56, %v4928_v10  ;;  %v1580_v34 = vsel %vm318_vm9, %v4938_v21, %v4939_v38 }
 0x77a   :  { %v4942_v46 = vpop.permute.xlu0 %4941  ;;  %v4947_v15 = vpop.permute.xlu1 %4946  ;;  %v1691_v16 = vpack.c.bf16 %v1583_v11, %v1582_v62 }
 0x77b   :  { %1792 = vrot.lane.b32.xlu0 %v8423_v35, %s8370_s2  ;;  %v4944_v36 = vunpack.i.h.bf16 %v4942_v46  ;;  %v4943_v8 = vunpack.i.l.bf16 %v4942_v46  ;;  %v4949_v39 = vunpack.i.h.bf16 %v4947_v15  ;;  %v4948_v12 = vunpack.i.l.bf16 %v4947_v15  ;;  %v5337_v15 = vld [vmem:[%s8223_s4 + $0x34] ss:$12 sps:$4 sm:$0xff]  }
 0x77c   :  { %1786 = vrot.lane.b32.xlu1 %v8426_v27, %s8370_s2  ;;  %1950 = vmatprep.mubr.bf16.mxu0 %v5337_v15 }
 0x77d   :  { %v1581_v9 = vsel %vm318_vm9, %v4943_v8, %v4944_v36  ;;  %v1688_v24 = vpack.c.bf16 %v4943_v8, %v4938_v21  ;;  %v1546_v53 = vsel %vm308_vm12, %v4948_v12, %v4949_v39  ;;  %v4445_v39 = vld [vmem:[%s8224_s5 + $0x20] sm:$0xff] }
 0x77e   :  { %v4952_v32 = vpop.permute.xlu0 %4951  ;;  %v1689_v55 = vpack.c.bf16 %v1581_v9, %v1580_v34  ;;  %v4448_v34 = vld [vmem:[%s8224_s5 + $0x38] sm:$0xff] }
 0x77f   :  { %1788 = vrot.lane.b32.xlu0 %v1665_v19, %s8370_s2  ;;  %v4957_v19 = vpop.permute.xlu1 %4956  ;;  %v4954_v60 = vunpack.i.h.bf16 %v4952_v32  ;;  %v4953_v45 = vunpack.i.l.bf16 %v4952_v32 }
 0x780   :  { %1846 = vrot.lane.b32.xlu1 %v1694_v3, %s8370_s2  ;;  %v4959_v31 = vunpack.i.h.bf16 %v4957_v19  ;;  %v4958_v26 = vunpack.i.l.bf16 %v4957_v19 }
 0x781   :  { %v1547_v49 = vsel %vm308_vm12, %v4953_v45, %v4954_v60  ;;  %v1686_v48 = vpack.c.bf16 %v4953_v45, %v4948_v12  ;;  %v4446_v12 = vld [vmem:[%s8224_s5 + $0x28] sm:$0xff] }
 0x782   :  { %v4962_v41 = vpop.permute.xlu0 %4961  ;;  %v1687_v25 = vpack.c.bf16 %v1547_v49, %v1546_v53  ;;  %v1544_v35 = vsel %vm308_vm12, %v4958_v26, %v4959_v31 }
 0x783   :  { %1848 = vrot.lane.b32.xlu0 %v1695_v50, %s8370_s2  ;;  %v4967_v44 = vpop.permute.xlu1 %4966  ;;  %v4964_v22 = vunpack.i.h.bf16 %v4962_v41  ;;  %v4963_v42 = vunpack.i.l.bf16 %v4962_v41 }
 0x784   :  { %1842 = vrot.lane.b32.xlu1 %v1692_v40, %s8370_s2  ;;  %v4969_v43 = vunpack.i.h.bf16 %v4967_v44  ;;  %v4968_v51 = vunpack.i.l.bf16 %v4967_v44  ;;  %v4447_v44 = vld [vmem:[%s8224_s5 + $0x30] sm:$0xff] }
 0x785   :  { %v1545_v57 = vsel %vm308_vm12, %v4963_v42, %v4964_v22  ;;  %v1684_v5 = vpack.c.bf16 %v4963_v42, %v4958_v26 }
 0x786   :  { %v4972_v58 = vpop.permute.xlu0 %4971  ;;  %v1685_v30 = vpack.c.bf16 %v1545_v57, %v1544_v35  ;;  %v1510_v61 = vsel %vm95_vm11, %v4968_v51, %v4969_v43 }
 0x787   :  { %1844 = vrot.lane.b32.xlu0 %v1693_v1, %s8370_s2  ;;  %v4977_v23 = vpop.permute.xlu1 %4976  ;;  %v4974_v46 = vunpack.i.h.bf16 %v4972_v58  ;;  %v4973_v6 = vunpack.i.l.bf16 %v4972_v58 }
 0x788   :  { %1838 = vrot.lane.b32.xlu1 %v1690_v59, %s8370_s2  ;;  %v4979_v33 = vunpack.i.h.bf16 %v4977_v23  ;;  %v4978_v50 = vunpack.i.l.bf16 %v4977_v23 }
 0x789   :  { %v1511_v18 = vsel %vm95_vm11, %v4973_v6, %v4974_v46  ;;  %v1682_v3 = vpack.c.bf16 %v4973_v6, %v4968_v51 }
 0x78a   :  { %v4982_v0 = vpop.permute.xlu0 %4981  ;;  %v1683_v20 = vpack.c.bf16 %v1511_v18, %v1510_v61  ;;  %v1654_v37 = vsel %vm338_vm8, %v4978_v50, %v4979_v33 }
 0x78b   :  { %1840 = vrot.lane.b32.xlu0 %v1691_v16, %s8370_s2  ;;  %v4984_v47 = vunpack.i.h.bf16 %v4982_v0  ;;  %v4983_v14 = vunpack.i.l.bf16 %v4982_v0  ;;  %v4987_v32 = vpop.permute.xlu1 %4986 }
 0x78c   :  { %1834 = vrot.lane.b32.xlu1 %v1688_v24, %s8370_s2  ;;  %v4989_v10 = vunpack.i.h.bf16 %v4987_v32  ;;  %v4988_v19 = vunpack.i.l.bf16 %v4987_v32 }
 0x78d   :  { %v1655_v40 = vsel %vm338_vm8, %v4983_v14, %v4984_v47  ;;  %v1698_v52 = vpack.c.bf16 %v4983_v14, %v4978_v50 }
 0x78e   :  { %v4992_v27 = vpop.permute.xlu0 %4991  ;;  %v1699_v11 = vpack.c.bf16 %v1655_v40, %v1654_v37  ;;  %v1508_v38 = vsel %vm95_vm11, %v4988_v19, %v4989_v10 }
 0x78f   :  { %1836 = vrot.lane.b32.xlu0 %v1689_v55, %s8370_s2  ;;  %v4994_v56 = vunpack.i.h.bf16 %v4992_v27  ;;  %v4993_v41 = vunpack.i.l.bf16 %v4992_v27  ;;  %v4997_v1 = vpop.permute.xlu1 %4996 }
 0x790   :  { %1830 = vrot.lane.b32.xlu1 %v1686_v48, %s8370_s2  ;;  %v4999_v21 = vunpack.i.h.bf16 %v4997_v1  ;;  %v4998_v58 = vunpack.i.l.bf16 %v4997_v1 }
 0x791   :  { %v1509_v59 = vsel %vm95_vm11, %v4993_v41, %v4994_v56  ;;  %v1680_v36 = vpack.c.bf16 %v4993_v41, %v4988_v19 }
 0x792   :  { %v5002_v54 = vpop.permute.xlu0 %5001  ;;  %v1681_v16 = vpack.c.bf16 %v1509_v59, %v1508_v38  ;;  %v1652_v60 = vsel %vm338_vm8, %v4998_v58, %v4999_v21 }
 0x793   :  { %1832 = vrot.lane.b32.xlu0 %v1687_v25, %s8370_s2  ;;  %v5004_v8 = vunpack.i.h.bf16 %v5002_v54  ;;  %v5003_v62 = vunpack.i.l.bf16 %v5002_v54 }
 0x794   :  { %1826 = vrot.lane.b32.xlu1 %v1684_v5, %s8370_s2 }
 0x795   :  { %v1653_v9 = vsel %vm338_vm8, %v5003_v62, %v5004_v8  ;;  %v1696_v24 = vpack.c.bf16 %v5003_v62, %v4998_v58 }
 0x796   :  { %v1697_v45 = vpack.c.bf16 %v1653_v9, %v1652_v60 }
 0x797   :  { %1828 = vrot.lane.b32.xlu0 %v1685_v30, %s8370_s2 }
 0x798   :  { %1822 = vrot.lane.b32.xlu1 %v1682_v3, %s8370_s2 }
 0x79b   :  { %1824 = vrot.lane.b32.xlu0 %v1683_v20, %s8370_s2 }
 0x79c   :  { %1854 = vrot.lane.b32.xlu1 %v1698_v52, %s8370_s2 }
 0x79f   :  { %1856 = vrot.lane.b32.xlu0 %v1699_v11, %s8370_s2 }
 0x7a0   :  { %1818 = vrot.lane.b32.xlu1 %v1680_v36, %s8370_s2 }
 0x7a3   :  { %1820 = vrot.lane.b32.xlu0 %v1681_v16, %s8370_s2 }
 0x7a4   :  { %1850 = vrot.lane.b32.xlu1 %v1696_v24, %s8370_s2 }
 0x7a7   :  { %1852 = vrot.lane.b32.xlu0 %v1697_v45, %s8370_s2  ;;  %v5335_v45 = vld [vmem:[%s8223_s4 + $0x30] ss:$12 sps:$4 sm:$0xff]  }
 0x7a8   :  { %1712 = vperm.xlu1 %4684, %v4447_v44   ;;  %v5339_v44 = vld [vmem:[%s8223_s4 + $0x4c] ss:$12 sps:$4 sm:$0xff]  }
 0x7ab   :  { %1717 = vperm.xlu0 %4683, %v4448_v34  }
 0x7ac   :  { %1702 = vperm.xlu1 %4684, %v4445_v39  }
 0x7af   :  { %1707 = vperm.xlu0 %4683, %v4446_v12  }
 0x7cd   :  { %v1813_v55 = vpop.permute.xlu0 %1812 }
 0x7ce   :  { %v1811_v49 = vpop.permute.xlu1 %1810 }
 0x7cf   :  { %v1864_v53 = vsel %vm412_vm2, %v1811_v49, %v1813_v55  ;;  %v5341_v49 = vld [vmem:[%s8223_s4 + $0x48] ss:$12 sps:$4 sm:$0xff]  }
 0x7d5   :  { %v1817_v48 = vpop.permute.xlu0 %1816 }
 0x7d6   :  { %v1815_v22 = vpop.permute.xlu1 %1814  ;;  %1918 = vmatprep.subr.bf16.mxu0 %v1817_v48 }
 0x7d7   :  { %v1865_v42 = vsel %vm412_vm2, %v1815_v22, %v1817_v48  ;;  %v8427_v48 = vmov 0   ;;  %v5342_v22 = vld [vmem:[%s8223_s4 + $0x50] ss:$12 sps:$4 sm:$0xff]  }
 0x7d8   :  { %1919 = vmatpush1.bf16.msra.mxu0 %v1865_v42 }
 0x7d9   :  { %1920 = vmatprep.subr.bf16.mxu0 %v1813_v55  ;;  %v5338_v55 = vld [vmem:[%s8223_s4 + $0x38] ss:$12 sps:$4 sm:$0xff]  }
 0x7da   :  { %v1803_v0 = vpop.permute.xlu1 %1802 }
 0x7dc   :  { %1921 = vmatpush1.bf16.msra.mxu0 %v1864_v53 }
 0x7dd   :  { %v1809_v31 = vpop.permute.xlu0 %1808 }
 0x7de   :  { %1922 = vmatprep.subr.bf16.mxu0 %v1809_v31  ;;  %v1807_v26 = vpop.permute.xlu1 %1806 }
 0x7df   :  { %v1863_v23 = vsel %vm412_vm2, %v1807_v26, %v1809_v31 }
 0x7e0   :  { %1923 = vmatpush1.bf16.msra.mxu0 %v1863_v23 }
 0x7e1   :  { %v1805_v25 = vpop.permute.xlu0 %1804 }
 0x7e2   :  { %1924 = vmatprep.subr.bf16.mxu0 %v1805_v25  ;;  %v1795_v57 = vpop.permute.xlu1 %1794  ;;  %v1862_v5 = vsel %vm412_vm2, %v1803_v0, %v1805_v25 }
 0x7e4   :  { %1925 = vmatpush1.bf16.msra.mxu0 %v1862_v5 }
 0x7e5   :  { %v1801_v46 = vpop.permute.xlu0 %1800 }
 0x7e6   :  { %1926 = vmatprep.subr.bf16.mxu0 %v1801_v46  ;;  %v1799_v6 = vpop.permute.xlu1 %1798 }
 0x7e7   :  { %v1861_v35 = vsel %vm412_vm2, %v1799_v6, %v1801_v46 }
 0x7e8   :  { %1927 = vmatpush1.bf16.msra.mxu0 %v1861_v35 }
 0x7e9   :  { %v1797_v43 = vpop.permute.xlu0 %1796 }
 0x7ea   :  { %1928 = vmatprep.subr.bf16.mxu0 %v1797_v43  ;;  %v1791_v51 = vpop.permute.xlu1 %1790  ;;  %v1860_v27 = vsel %vm412_vm2, %v1795_v57, %v1797_v43 }
 0x7ec   :  { %1929 = vmatpush1.bf16.msra.mxu0 %v1860_v27 }
 0x7ed   :  { %v1793_v30 = vpop.permute.xlu0 %1792 }
 0x7ee   :  { %1930 = vmatprep.subr.bf16.mxu0 %v1793_v30  ;;  %v1787_v18 = vpop.permute.xlu1 %1786  ;;  %v1859_v3 = vsel %vm412_vm2, %v1791_v51, %v1793_v30 }
 0x7f0   :  { %1931 = vmatpush1.bf16.msra.mxu0 %v1859_v3 }
 0x7f1   :  { %v1789_v47 = vpop.permute.xlu0 %1788 }
 0x7f2   :  { %v1847_v14 = vpop.permute.xlu1 %1846  ;;  %1932 = vmatprep.subr.bf16.mxu0 %v1789_v47  ;;  %v1858_v32 = vsel %vm412_vm2, %v1787_v18, %v1789_v47 }
 0x7f4   :  { %1933 = vmatpush1.bf16.msra.mxu0 %v1858_v32 }
 0x7f5   :  { %v1849_v15 = vpop.permute.xlu0 %1848 }
 0x7f6   :  { %v1843_v61 = vpop.permute.xlu1 %1842  ;;  %1934 = vmatprep.subr.bf16.mxu0 %v1849_v15  ;;  %v1873_v33 = vsel %vm412_vm2, %v1847_v14, %v1849_v15 }
 0x7f8   :  { %1935 = vmatpush2.bf16.msra.mxu0 %v1873_v33 }
 0x7f9   :  { %v1845_v50 = vpop.permute.xlu0 %1844 }
 0x7fa   :  { %v1839_v20 = vpop.permute.xlu1 %1838  ;;  %1936 = vmatprep.subr.bf16.mxu0 %v1845_v50  ;;  %v1872_v40 = vsel %vm412_vm2, %v1843_v61, %v1845_v50 }
 0x7fc   :  { %1937 = vmatpush2.bf16.msra.mxu0 %v1872_v40 }
 0x7fd   :  { %v1841_v52 = vpop.permute.xlu0 %1840 }
 0x7fe   :  { %v1835_v56 = vpop.permute.xlu1 %1834  ;;  %1938 = vmatprep.subr.bf16.mxu0 %v1841_v52  ;;  %v1871_v41 = vsel %vm412_vm2, %v1839_v20, %v1841_v52 }
 0x800   :  { %1939 = vmatpush2.bf16.msra.mxu0 %v1871_v41  ;;  %v8428_v41 = vld [vmem:[#allocation22_spill] sm:$0xff] }
 0x801   :  { %v1837_v54 = vpop.permute.xlu0 %1836 }
 0x802   :  { %v1831_v37 = vpop.permute.xlu1 %1830  ;;  %1940 = vmatprep.subr.bf16.mxu0 %v1837_v54  ;;  %v1870_v10 = vsel %vm412_vm2, %v1835_v56, %v1837_v54 }
 0x804   :  { %1941 = vmatpush2.bf16.msra.mxu0 %v1870_v10 }
 0x805   :  { %v1833_v19 = vpop.permute.xlu0 %1832 }
 0x806   :  { %v1827_v1 = vpop.permute.xlu1 %1826  ;;  %1942 = vmatprep.subr.bf16.mxu0 %v1833_v19  ;;  %v1869_v11 = vsel %vm412_vm2, %v1831_v37, %v1833_v19 }
 0x808   :  { %1943 = vmatpush2.bf16.msra.mxu0 %v1869_v11 }
 0x809   :  { %v1829_v59 = vpop.permute.xlu0 %1828 }
 0x80a   :  { %v1823_v36 = vpop.permute.xlu1 %1822  ;;  %1944 = vmatprep.subr.bf16.mxu0 %v1829_v59  ;;  %v1868_v8 = vsel %vm412_vm2, %v1827_v1, %v1829_v59  ;;  %v8429_v1 = vld [vmem:[#allocation23_spill] sm:$0xff] }
 0x80c   :  { %1945 = vmatpush2.bf16.msra.mxu0 %v1868_v8 }
 0x80d   :  { %v1825_v62 = vpop.permute.xlu0 %1824 }
 0x80e   :  { %v1855_v38 = vpop.permute.xlu1 %1854  ;;  %1946 = vmatprep.subr.bf16.mxu0 %v1825_v62  ;;  %v1867_v21 = vsel %vm412_vm2, %v1823_v36, %v1825_v62  ;;  %v8431_v36 = vld [vmem:[#allocation24_spill] sm:$0xff]  ;;  %v8432_v62 = vld [vmem:[#allocation25_spill] sm:$0xff] }
 0x810   :  { %1947 = vmatpush2.bf16.msra.mxu0 %v1867_v21 }
 0x811   :  { %v1857_v58 = vpop.permute.xlu0 %1856 }
 0x812   :  { %1983 = vmatprep.subr.bf16.mxu1 %v1857_v58  ;;  %v1875_v16 = vsel %vm412_vm2, %v1855_v38, %v1857_v58  ;;  %v1819_v9 = vpop.permute.xlu1 %1818 }
 0x813   :  { %1984 = vmatpush1.bf16.msra.mxu1 %v1875_v16 }
 0x815   :  { %v1821_v24 = vpop.permute.xlu0 %1820 }
 0x816   :  { %1948 = vmatprep.subr.bf16.mxu0 %v1821_v24  ;;  %v1866_v60 = vsel %vm412_vm2, %v1819_v9, %v1821_v24  ;;  %v1851_v34 = vpop.permute.xlu1 %1850 }
 0x817   :  { %1949 = vmatpush2.bf16.msra.mxu0 %v1866_v60 }
 0x819   :  { %v1853_v39 = vpop.permute.xlu0 %1852 }
 0x81a   :  { %1951 = vmatmul.mubr.bf16.vlgmr.msra.gmra.mxu0 %v5335_v45  ;;  %1985 = vmatprep.subr.bf16.mxu1 %v1853_v39  ;;  %v1874_v12 = vsel %vm412_vm2, %v1851_v34, %v1853_v39  ;;  %v8437_v39 = vld [vmem:[#allocation28_spill] sm:$0xff] }
 0x81b   :  { %1986 = vmatpush1.bf16.msra.mxu1 %v1874_v12  ;;  %1960 = vmatprep.mubr.bf16.mxu0 %v5339_v44  ;;  %v8436_v44 = vld [vmem:[#allocation26_spill] sm:$0xff] }
 0x81e   :  { %4455 = vmatmul.mubr.msk.bf16.vlgmr.msra.gmra.mxu1 %vm1145_vm4, %v5338_v55  ;;  %v8438_v55 = vld [vmem:[#allocation27_spill] sm:$0xff] }
 0x81f   :  { %2013 = vmatprep.mubr.bf16.mxu1 %v8427_v48 }
 0x822   :  { %1961 = vmatmul.mubr.bf16.gmra.mxu0 %v5341_v49 }
 0x823   :  { %2777 = vmatprep.mubr.bf16.mxu0 %v8427_v48  ;;  %v1713_v42 = vpop.permute.xlu1 %1712 }
 0x826   :  { %4456 = vmatmul.mubr.msk.bf16.gmra.mxu1 %vm1145_vm4, %v5342_v22  ;;  %v1718_v53 = vpop.permute.xlu0 %1717 }
 0x827   :  { %v1703_v26 = vpop.permute.xlu1 %1702 }
 0x82a   :  { %v1708_v6 = vpop.permute.xlu0 %1707 }
 0x8da   :  { %v1952_v0 = vpop.f32.mrf.mxu0 }
 0x8db   :  { %v1953_v47 = vadd.f32 %v1952_v0, %v1703_v26 }
 0x8dc   :  { %v1954_v31 = vpop.f32.mrf.mxu0 }
 0x8dd   :  { %v1955_v57 = vadd.f32 %v1954_v31, %v1703_v26  ;;  %v8440_v31 = vld [vmem:[#allocation29_spill] sm:$0xff] }
 0x8de   :  { %v1956_v23 = vpop.f32.mrf.mxu0  ;;  %v2005_v25 = vpop.f32.mrf.mxu1 }
 0x8df   :  { %v2006_v33 = vadd.f32 %v2005_v25, %v1953_v47  ;;  %v1957_v40 = vadd.f32 %v1956_v23, %v1708_v6 }
 0x8e0   :  { %v1958_v5 = vpop.f32.mrf.mxu0  ;;  %v2007_v46 = vpop.f32.mrf.mxu1 }
 0x8e1   :  { %v2008_v35 = vadd.f32 %v2007_v46, %v1955_v57  ;;  %v1959_v27 = vadd.f32 %v1958_v5, %v1708_v6  ;;  %v2024_v11 = vadd.f32 %v2006_v33, %v8429_v1 }
 0x8e2   :  { %v1962_v43 = vpop.f32.mrf.mxu0  ;;  %v2009_v51 = vpop.f32.mrf.mxu1 }
 0x8e3   :  { %v1963_v14 = vadd.f32 %v1962_v43, %v1713_v42  ;;  %v2010_v10 = vadd.f32 %v2009_v51, %v1957_v40  ;;  %v6643_v58 = vmax.f32 %v2024_v11, 0.0  ;;  %v2025_v49 = vadd.f32 %v2008_v35, %v8438_v55  ;;  %v8444_v51 = vld [vmem:[#allocation20_spill] sm:$0xff] }
 0x8e4   :  { %v1964_v30 = vpop.f32.mrf.mxu0  ;;  %v2011_v18 = vpop.f32.mrf.mxu1 }
 0x8e5   :  { %v2012_v3 = vadd.f32 %v2011_v18, %v1959_v27  ;;  %v1965_v61 = vadd.f32 %v1964_v30, %v1713_v42  ;;  %v2026_v38 = vadd.f32 %v2010_v10, %v8432_v62  ;;  %8434 = vst [vmem:[#allocation32_spill] sm:$0xff] %v6643_v58 }
 0x8e6   :  { %v1966_v32 = vpop.f32.mrf.mxu0  ;;  %v2015_v15 = vpop.f32.mrf.mxu1 }
 0x8e7   :  { %v2016_v50 = vadd.f32 %v2015_v15, %v1963_v14  ;;  %v1967_v52 = vadd.f32 %v1966_v32, %v1718_v53  ;;  %v6649_v16 = vmax.f32 %v2026_v38, 0.0  ;;  %v2027_v26 = vadd.f32 %v2012_v3, %v8440_v31 }
 0x8e8   :  { %v2017_v20 = vpop.f32.mrf.mxu1  ;;  %v1968_v9 = vpop.f32.mrf.mxu0 }
 0x8e9   :  { %v2018_v56 = vadd.f32 %v2017_v20, %v1965_v61  ;;  %v2028_v54 = vadd.f32 %v2016_v50, %v8428_v41  ;;  %8435 = vst [vmem:[#allocation37_spill] sm:$0xff] %v6649_v16  ;;  %v1969_v60 = vadd.f32 %v1968_v9, %v1718_v53  ;;  %v6667_v53 = vmax.f32 %v2025_v49, 0.0  ;;  %v8445_v20 = vld [vmem:[#allocation21_spill] sm:$0xff] }
 0x8ea   :  { %v2019_v37 = vpop.f32.mrf.mxu1  ;;  %v6679_v6 = vmax.f32 %v2027_v26, 0.0 }
 0x8eb   :  { %v2020_v19 = vadd.f32 %v2019_v37, %v1967_v52  ;;  %v6635_v59 = vmax.f32 %v2028_v54, 0.0  ;;  %v2029_v34 = vadd.f32 %v2018_v56, %v8436_v44  ;;  %8442 = vst [vmem:[#allocation33_spill] sm:$0xff] %v6667_v53 }
 0x8ec   :  { %v2021_v24 = vpop.f32.mrf.mxu1  ;;  %8443 = vst [vmem:[#allocation39_spill] sm:$0xff] %v6679_v6 }
 0x8ed   :  { %8430 = vst [vmem:[#allocation34_spill] sm:$0xff] %v6635_v59  ;;  %v2030_v8 = vadd.f32 %v2020_v19, %v8431_v36  ;;  %2060 = vrot.lane.b32.xlu1 %v6635_v59, %s5405_s22  ;;  %v2022_v45 = vadd.f32 %v2021_v24, %v1969_v60  ;;  %v6656_v22 = vmax.f32 %v2029_v34, 0.0 }
 0x8ef   :  { %v6641_v21 = vmax.f32 %v2030_v8, 0.0  ;;  %v2031_v12 = vadd.f32 %v2022_v45, %v8437_v39  ;;  %8439 = vst [vmem:[#allocation35_spill] sm:$0xff] %v6656_v22 }
 0x8f1   :  { %8433 = vst [vmem:[#allocation30_spill] sm:$0xff] %v6641_v21  ;;  %2063 = vrot.lane.b32.xlu0 %v6641_v21, %s5405_s22  ;;  %2054 = vrot.lane.b32.xlu1 %v6643_v58, %s5405_s22  ;;  %v6663_v23 = vmax.f32 %v2031_v12, 0.0 }
 0x8f3   :  { %8441 = vst [vmem:[#allocation31_spill] sm:$0xff] %v6663_v23 }
 0x8f5   :  { %2057 = vrot.lane.b32.xlu0 %v6649_v16, %s5405_s22 }
 0x95f   :  { %v2061_v42 = vpop.permute.xlu1 %2060 }
 0x960   :  { %v6660_v0 = vsel %vm74_vm0, %v2061_v42, %v6656_v22 }
 0x961   :  { %2070 = vrot.lane.b32.xlu1 %v6660_v0, %s5405_s22  ;;  %v6691_v27 = vmul.f32 %v6660_v0, %v8444_v51  ;;  %v2106_v12 = vmul.f32 %v6660_v0, %v5648_v2 }
 0x963   :  { %v2064_v25 = vpop.permute.xlu0 %2063  ;;  %v2055_v57 = vpop.permute.xlu1 %2054 }
 0x964   :  { %v6671_v5 = vsel %vm74_vm0, %v2064_v25, %v6663_v23  ;;  %v6675_v46 = vsel %vm74_vm0, %v2055_v57, %v6667_v53 }
 0x965   :  { %2072 = vrot.lane.b32.xlu0 %v6671_v5, %s5405_s22  ;;  %2066 = vrot.lane.b32.xlu1 %v6675_v46, %s5405_s22  ;;  %v6695_v30 = vmul.f32 %v6671_v5, %v8444_v51  ;;  %v6699_v18 = vmul.f32 %v6675_v46, %v8444_v51  ;;  %v2102_v54 = vmul.f32 %v6675_v46, %v5648_v2 }
 0x966   :  { %v2094_v9 = vmul.f32 %v6675_v46, %v5646_v63  ;;  %v2108_v26 = vmul.f32 %v6671_v5, %v5648_v2 }
 0x967   :  { %v2058_v35 = vpop.permute.xlu0 %2057  ;;  %v2440_v47 = vpack.c.bf16 %v6695_v30, %v6691_v27 }
 0x968   :  { %v6685_v43 = vsel %vm74_vm0, %v2058_v35, %v6679_v6 }
 0x969   :  { %2068 = vrot.lane.b32.xlu0 %v6685_v43, %s5405_s22  ;;  %v6703_v3 = vmul.f32 %v6685_v43, %v8444_v51  ;;  %v2104_v38 = vmul.f32 %v6685_v43, %v5648_v2  ;;  %v2096_v39 = vmul.f32 %v6685_v43, %v5646_v63 }
 0x96b   :  { %v2438_v14 = vpack.c.bf16 %v6703_v3, %v6699_v18 }
 0x9d3   :  { %v2071_v32 = vpop.permute.xlu1 %2070 }
 0x9d4   :  { %v2076_v15 = vsel %vm74_vm0, %v2071_v32, %v2061_v42 }
 0x9d5   :  { %v6712_v40 = vmul.f32 %v2076_v15, %v8445_v20  ;;  %v2107_v44 = vmul.f32 %v2076_v15, %v5654_v7  ;;  %v2099_v32 = vmul.f32 %v2076_v15, %v5651_v4 }
 0x9d7   :  { %v2073_v61 = vpop.permute.xlu0 %2072  ;;  %v2067_v33 = vpop.permute.xlu1 %2066  ;;  %v5025_v31 = vpack.i.bf16 %v2107_v44, %v2106_v12 }
 0x9d8   :  { %v2077_v50 = vsel %vm74_vm0, %v2073_v61, %v2064_v25  ;;  %v2074_v52 = vsel %vm74_vm0, %v2067_v33, %v2055_v57  ;;  %v2086_v25 = vmul.f32 %v6675_v46, %v5667_v13  ;;  %v2088_v33 = vmul.f32 %v6685_v43, %v5667_v13 }
 0x9d9   :  { %v6716_v56 = vmul.f32 %v2077_v50, %v8445_v20  ;;  %v2103_v41 = vmul.f32 %v2074_v52, %v5654_v7  ;;  %v2095_v19 = vmul.f32 %v2074_v52, %v5651_v4  ;;  %v6726_v36 = vmul.f32 %v2074_v52, %v8445_v20 }
 0x9da   :  { %v2109_v55 = vmul.f32 %v2077_v50, %v5654_v7  ;;  %v2087_v42 = vmul.f32 %v2074_v52, %v5670_v17  ;;  %v2098_v52 = vmul.f32 %v6660_v0, %v5646_v63 }
 0x9db   :  { %v2069_v37 = vpop.permute.xlu0 %2068  ;;  %v2441_v10 = vpack.c.bf16 %v6716_v56, %v6712_v40  ;;  %v5005_v11 = vpack.i.bf16 %v2103_v41, %v2102_v54  ;;  %v5010_v34 = vpack.i.bf16 %v2095_v19, %v2094_v9  ;;  %v2101_v41 = vmul.f32 %v2077_v50, %v5651_v4 }
 0x9dc   :  { %v2075_v1 = vsel %vm74_vm0, %v2069_v37, %v2058_v35  ;;  %v5045_v35 = vpack.i.bf16 %v2109_v55, %v2108_v26  ;;  %v5030_v61 = vpack.i.bf16 %v2087_v42, %v2086_v25  ;;  %v2091_v37 = vmul.f32 %v2076_v15, %v5670_v17  ;;  %v8447_v15 = vld [vmem:[#allocation16_spill] sm:$0xff] }
 0x9dd   :  { %v6729_v8 = vmul.f32 %v2075_v1, %v8445_v20  ;;  %v2105_v62 = vmul.f32 %v2075_v1, %v5654_v7  ;;  %5006 = vrot.lane.b32.xlu1 %v5005_v11, %s5418_s3  ;;  %v2097_v24 = vmul.f32 %v2075_v1, %v5651_v4  ;;  %v2089_v57 = vmul.f32 %v2075_v1, %v5670_v17 }
 0x9de   :  { %v5035_v19 = vpack.i.bf16 %v2099_v32, %v2098_v52  ;;  %v2100_v1 = vmul.f32 %v6671_v5, %v5646_v63  ;;  %v2090_v11 = vmul.f32 %v6660_v0, %v5667_v13  ;;  %v2140_v44 = vmul.f32 %v6641_v21, %v8447_v15 }
 0x9df   :  { %v5015_v60 = vpack.i.bf16 %v2105_v62, %v2104_v38  ;;  %v2439_v45 = vpack.c.bf16 %v6729_v8, %v6726_v36  ;;  %v5020_v49 = vpack.i.bf16 %v2097_v24, %v2096_v39  ;;  %v5050_v54 = vpack.i.bf16 %v2089_v57, %v2088_v33  ;;  %v8446_v38 = vld [vmem:[#allocation17_spill] sm:$0xff]  ;;  %v8449_v57 = vld [vmem:[#allocation15_spill] sm:$0xff] }
 0x9e0   :  { %v5060_v62 = vpack.i.bf16 %v2101_v41, %v2100_v1  ;;  %v2141_v9 = vmul.f32 %v6671_v5, %v8446_v38  ;;  %v5040_v24 = vpack.i.bf16 %v2091_v37, %v2090_v11  ;;  %v2093_v39 = vmul.f32 %v2077_v50, %v5670_v17 }
 0x9e1   :  { %5016 = vrot.lane.b32.xlu0 %v5015_v60, %s5418_s3  ;;  %5011 = vrot.lane.b32.xlu1 %v5010_v34, %s8311_s26  ;;  %v2139_v60 = vmul.f32 %v6660_v0, %v8446_v38  ;;  %v2138_v34 = vmul.f32 %v6635_v59, %v8447_v15  ;;  %v2092_v42 = vmul.f32 %v6671_v5, %v5667_v13 }
 0x9e2   :  { %v5065_v12 = vpack.i.bf16 %v2141_v9, %v2140_v44  ;;  %v2137_v25 = vmul.f32 %v6685_v43, %v8446_v38  ;;  %v2136_v32 = vmul.f32 %v6649_v16, %v8447_v15  ;;  %v2133_v41 = vmul.f32 %v6671_v5, %v8449_v57 }
 0x9e3   :  { %v5055_v55 = vpack.i.bf16 %v2139_v60, %v2138_v34  ;;  %v5075_v26 = vpack.i.bf16 %v2093_v39, %v2092_v42  ;;  %v2127_v37 = vmul.f32 %v6675_v46, %v8449_v57  ;;  %v8453_v34 = vld [vmem:[#allocation18_spill] sm:$0xff] }
 0x9e4   :  { %v5080_v52 = vpack.i.bf16 %v2137_v25, %v2136_v32  ;;  %v2122_v39 = vmul.f32 %v6635_v59, %v8453_v34 }
 0x9e5   :  { %5021 = vrot.lane.b32.xlu0 %v5020_v49, %s8311_s26  ;;  %5026 = vrot.lane.b32.xlu1 %v5025_v31, %s5418_s3  ;;  %v2135_v49 = vmul.f32 %v6675_v46, %v8446_v38  ;;  %v2134_v31 = vmul.f32 %v6643_v58, %v8447_v15 }
 0x9e7   :  { %v5070_v50 = vpack.i.bf16 %v2135_v49, %v2134_v31  ;;  %v2124_v31 = vmul.f32 %v6641_v21, %v8453_v34 }
 0x9e9   :  { %5046 = vrot.lane.b32.xlu0 %v5045_v35, %s5418_s3  ;;  %5031 = vrot.lane.b32.xlu1 %v5030_v61, %s8309_s27  ;;  %v2131_v35 = vmul.f32 %v6660_v0, %v8449_v57  ;;  %v8450_v61 = vld [vmem:[#allocation14_spill] sm:$0xff] }
 0x9ea   :  { %v2130_v33 = vmul.f32 %v6635_v59, %v8450_v61  ;;  %v2126_v1 = vmul.f32 %v6643_v58, %v8450_v61  ;;  %v2128_v44 = vmul.f32 %v6649_v16, %v8450_v61 }
 0x9ec   :  { %v5095_v9 = vpack.i.bf16 %v2127_v37, %v2126_v1 }
 0x9ed   :  { %5051 = vrot.lane.b32.xlu0 %v5050_v54, %s8309_s27  ;;  %5036 = vrot.lane.b32.xlu1 %v5035_v19, %s8311_s26  ;;  %v5085_v54 = vpack.i.bf16 %v2131_v35, %v2130_v33  ;;  %v2132_v19 = vmul.f32 %v6641_v21, %v8450_v61  ;;  %v2115_v35 = vmul.f32 %v6656_v22, %v5589_v29 }
 0x9ee   :  { %v2120_v33 = vmul.f32 %v6649_v16, %v8453_v34 }
 0x9ef   :  { %v5090_v11 = vpack.i.bf16 %v2133_v41, %v2132_v19  ;;  %v2117_v41 = vmul.f32 %v6663_v23, %v5589_v29  ;;  %v8454_v19 = vld [vmem:[#allocation13_spill] sm:$0xff] }
 0x9f0   :  { %v2147_v1 = vmul.f32 %v6660_v0, %v8454_v19 }
 0x9f1   :  { %5061 = vrot.lane.b32.xlu0 %v5060_v62, %s8311_s26  ;;  %5041 = vrot.lane.b32.xlu1 %v5040_v24, %s8309_s27  ;;  %v2129_v62 = vmul.f32 %v6685_v43, %v8449_v57  ;;  %v8452_v24 = vld [vmem:[#allocation19_spill] sm:$0xff] }
 0x9f2   :  { %v2123_v60 = vmul.f32 %v6660_v0, %v8452_v24  ;;  %v2119_v42 = vmul.f32 %v6675_v46, %v8452_v24 }
 0x9f4   :  { %v5105_v49 = vpack.i.bf16 %v2123_v60, %v2122_v39  ;;  %v2111_v39 = vmul.f32 %v6667_v53, %v5589_v29 }
 0x9f5   :  { %5066 = vrot.lane.b32.xlu0 %v5065_v12, %s8448_s21  ;;  %5056 = vrot.lane.b32.xlu1 %v5055_v55, %s8448_s21  ;;  %v5100_v12 = vpack.i.bf16 %v2129_v62, %v2128_v44  ;;  %v2125_v55 = vmul.f32 %v6671_v5, %v8452_v24  ;;  %v8455_v62 = vld [vmem:[#allocation12_spill] sm:$0xff]  ;;  %v2149_v44 = vmul.f32 %v6671_v5, %v8454_v19 }
 0x9f6   :  { %v2148_v0 = vmul.f32 %v6641_v21, %v8455_v62  ;;  %v2143_v5 = vmul.f32 %v6675_v46, %v8454_v19  ;;  %v2144_v46 = vmul.f32 %v6649_v16, %v8455_v62 }
 0x9f7   :  { %v5110_v25 = vpack.i.bf16 %v2125_v55, %v2124_v31  ;;  %v2110_v55 = vmul.f32 %v6643_v58, %v5586_v28 }
 0x9f9   :  { %5076 = vrot.lane.b32.xlu0 %v5075_v26, %s8309_s27  ;;  %5071 = vrot.lane.b32.xlu1 %v5070_v50, %s8448_s21  ;;  %v2118_v26 = vmul.f32 %v6643_v58, %v8453_v34  ;;  %v2121_v50 = vmul.f32 %v6685_v43, %v8452_v24  ;;  %v5145_v31 = vpack.i.bf16 %v2111_v39, %v2110_v55 }
 0x9fb   :  { %v5115_v32 = vpack.i.bf16 %v2119_v42, %v2118_v26  ;;  %v5140_v42 = vpack.i.bf16 %v2149_v44, %v2148_v0  ;;  %v2112_v26 = vmul.f32 %v6649_v16, %v5586_v28 }
 0x9fd   :  { %5081 = vrot.lane.b32.xlu0 %v5080_v52, %s8448_s21  ;;  %5086 = vrot.lane.b32.xlu1 %v5085_v54, %s8451_s25  ;;  %v2114_v52 = vmul.f32 %v6635_v59, %v5586_v28  ;;  %v5120_v54 = vpack.i.bf16 %v2121_v50, %v2120_v33 }
 0x9ff   :  { %v5125_v37 = vpack.i.bf16 %v2115_v35, %v2114_v52  ;;  %v2145_v35 = vmul.f32 %v6685_v43, %v8454_v19 }
 0xa01   :  { %5091 = vrot.lane.b32.xlu0 %v5090_v11, %s8451_s25  ;;  %5096 = vrot.lane.b32.xlu1 %v5095_v9, %s8451_s25  ;;  %v2116_v11 = vmul.f32 %v6641_v21, %v5586_v28  ;;  %v2146_v9 = vmul.f32 %v6635_v59, %v8455_v62  ;;  %v5160_v33 = vpack.i.bf16 %v2145_v35, %v2144_v46 }
 0xa03   :  { %v5130_v60 = vpack.i.bf16 %v2117_v41, %v2116_v11 }
 0xa05   :  { %5101 = vrot.lane.b32.xlu0 %v5100_v12, %s8451_s25  ;;  %5106 = vrot.lane.b32.xlu1 %v5105_v49, %s8396_s0  ;;  %v5135_v12 = vpack.i.bf16 %v2147_v1, %v2146_v9  ;;  %v2113_v49 = vmul.f32 %v6679_v6, %v5589_v29 }
 0xa07   :  { %v5150_v50 = vpack.i.bf16 %v2113_v49, %v2112_v26 }
 0xa09   :  { %5111 = vrot.lane.b32.xlu0 %v5110_v25, %s8396_s0  ;;  %5116 = vrot.lane.b32.xlu1 %v5115_v32, %s8396_s0  ;;  %v2142_v25 = vmul.f32 %v6643_v58, %v8455_v62 }
 0xa0b   :  { %v5155_v32 = vpack.i.bf16 %v2143_v5, %v2142_v25 }
 0xa0d   :  { %5121 = vrot.lane.b32.xlu0 %v5120_v54, %s8396_s0  ;;  %5126 = vrot.lane.b32.xlu1 %v5125_v37, %s8368_s30 }
 0xa11   :  { %5131 = vrot.lane.b32.xlu0 %v5130_v60, %s8368_s30  ;;  %5136 = vrot.lane.b32.xlu1 %v5135_v12, %s8369_s20 }
 0xa15   :  { %5141 = vrot.lane.b32.xlu0 %v5140_v42, %s8369_s20  ;;  %5146 = vrot.lane.b32.xlu1 %v5145_v31, %s8368_s30 }
 0xa19   :  { %5151 = vrot.lane.b32.xlu0 %v5150_v50, %s8368_s30  ;;  %5156 = vrot.lane.b32.xlu1 %v5155_v32, %s8369_s20 }
 0xa1d   :  { %5161 = vrot.lane.b32.xlu0 %v5160_v33, %s8369_s20 }
 0xa4f   :  { %v5007_v52 = vpop.permute.xlu1 %5006 }
 0xa50   :  { %v5009_v41 = vunpack.i.h.bf16 %v5007_v52  ;;  %v5008_v54 = vunpack.i.l.bf16 %v5007_v52 }
 0xa52   :  { %v2246_v43 = vsel %vm289_vm14, %v5008_v54, %v5009_v41 }
 0xa53   :  { %v5017_v37 = vpop.permute.xlu0 %5016  ;;  %v5012_v1 = vpop.permute.xlu1 %5011 }
 0xa54   :  { %v5019_v11 = vunpack.i.h.bf16 %v5017_v37  ;;  %v5018_v9 = vunpack.i.l.bf16 %v5017_v37  ;;  %v5014_v35 = vunpack.i.h.bf16 %v5012_v1  ;;  %v5013_v32 = vunpack.i.l.bf16 %v5012_v1 }
 0xa56   :  { %v2451_v60 = vpack.c.bf16 %v5019_v11, %v5009_v41  ;;  %v2247_v44 = vsel %vm289_vm14, %v5018_v9, %v5019_v11  ;;  %v2210_v9 = vsel %vm279_vm13, %v5013_v32, %v5014_v35 }
 0xa57   :  { %v5022_v39 = vpop.permute.xlu0 %5021  ;;  %v2450_v12 = vpack.c.bf16 %v2247_v44, %v2246_v43  ;;  %v5027_v0 = vpop.permute.xlu1 %5026 }
 0xa58   :  { %2586 = vrot.lane.b32.xlu0 %v2451_v60, %s8370_s2  ;;  %v5029_v55 = vunpack.i.h.bf16 %v5027_v0  ;;  %v5028_v49 = vunpack.i.l.bf16 %v5027_v0  ;;  %v5024_v31 = vunpack.i.h.bf16 %v5022_v39  ;;  %v5023_v5 = vunpack.i.l.bf16 %v5022_v39 }
 0xa59   :  { %2584 = vrot.lane.b32.xlu1 %v2450_v12, %s8370_s2 }
 0xa5a   :  { %v2248_v46 = vsel %vm289_vm14, %v5028_v49, %v5029_v55  ;;  %v2211_v37 = vsel %vm279_vm13, %v5023_v5, %v5024_v31 }
 0xa5b   :  { %v5047_v42 = vpop.permute.xlu0 %5046  ;;  %v5032_v26 = vpop.permute.xlu1 %5031  ;;  %v2446_v1 = vpack.c.bf16 %v2211_v37, %v2210_v9 }
 0xa5c   :  { %v5049_v25 = vunpack.i.h.bf16 %v5047_v42  ;;  %v5048_v50 = vunpack.i.l.bf16 %v5047_v42  ;;  %v5034_v42 = vunpack.i.h.bf16 %v5032_v26  ;;  %v5033_v5 = vunpack.i.l.bf16 %v5032_v26 }
 0xa5e   :  { %v2453_v33 = vpack.c.bf16 %v5049_v25, %v5029_v55  ;;  %v2249_v52 = vsel %vm289_vm14, %v5048_v50, %v5049_v25  ;;  %v2174_v37 = vsel %vm269_vm15, %v5033_v5, %v5034_v42 }
 0xa5f   :  { %v5052_v41 = vpop.permute.xlu0 %5051  ;;  %v2452_v54 = vpack.c.bf16 %v2249_v52, %v2248_v46  ;;  %v5037_v11 = vpop.permute.xlu1 %5036 }
 0xa60   :  { %2590 = vrot.lane.b32.xlu0 %v2453_v33, %s8370_s2  ;;  %v5039_v43 = vunpack.i.h.bf16 %v5037_v11  ;;  %v5038_v60 = vunpack.i.l.bf16 %v5037_v11  ;;  %v5054_v39 = vunpack.i.h.bf16 %v5052_v41  ;;  %v5053_v12 = vunpack.i.l.bf16 %v5052_v41 }
 0xa61   :  { %2588 = vrot.lane.b32.xlu1 %v2452_v54, %s8370_s2  ;;  %v2447_v41 = vpack.c.bf16 %v5024_v31, %v5014_v35 }
 0xa62   :  { %v2212_v25 = vsel %vm279_vm13, %v5038_v60, %v5039_v43  ;;  %v2175_v52 = vsel %vm269_vm15, %v5053_v12, %v5054_v39 }
 0xa63   :  { %v5062_v44 = vpop.permute.xlu0 %5061  ;;  %v5042_v0 = vpop.permute.xlu1 %5041 }
 0xa64   :  { %v5064_v55 = vunpack.i.h.bf16 %v5062_v44  ;;  %v5063_v49 = vunpack.i.l.bf16 %v5062_v44  ;;  %v5044_v11 = vunpack.i.h.bf16 %v5042_v0  ;;  %v5043_v9 = vunpack.i.l.bf16 %v5042_v0 }
 0xa65   :  { %2576 = vrot.lane.b32.xlu1 %v2446_v1, %s8370_s2  ;;  %v2442_v44 = vpack.c.bf16 %v2175_v52, %v2174_v37  ;;  %v2443_v0 = vpack.c.bf16 %v5054_v39, %v5034_v42 }
 0xa66   :  { %v2449_v50 = vpack.c.bf16 %v5064_v55, %v5039_v43  ;;  %v2213_v46 = vsel %vm279_vm13, %v5063_v49, %v5064_v55  ;;  %v2176_v12 = vsel %vm269_vm15, %v5043_v9, %v5044_v11 }
 0xa67   :  { %v5067_v33 = vpop.permute.xlu0 %5066  ;;  %v2448_v32 = vpack.c.bf16 %v2213_v46, %v2212_v25  ;;  %v5057_v54 = vpop.permute.xlu1 %5056 }
 0xa68   :  { %2582 = vrot.lane.b32.xlu0 %v2449_v50, %s8370_s2  ;;  %v5069_v50 = vunpack.i.h.bf16 %v5067_v33  ;;  %v5068_v46 = vunpack.i.l.bf16 %v5067_v33  ;;  %v5059_v52 = vunpack.i.h.bf16 %v5057_v54 }
 0xa69   :  { %2580 = vrot.lane.b32.xlu1 %v2448_v32, %s8370_s2 }
 0xa6a   :  { %v2393_v39 = vsel %vm328_vm10, %v5068_v46, %v5069_v50 }
 0xa6b   :  { %v5077_v26 = vpop.permute.xlu0 %5076  ;;  %v5072_v60 = vpop.permute.xlu1 %5071 }
 0xa6c   :  { %v5079_v43 = vunpack.i.h.bf16 %v5077_v26  ;;  %v5078_v1 = vunpack.i.l.bf16 %v5077_v26  ;;  %2578 = vrot.lane.b32.xlu0 %v2447_v41, %s8370_s2  ;;  %v5058_v41 = vunpack.i.l.bf16 %v5057_v54  ;;  %v5074_v40 = vunpack.i.h.bf16 %v5072_v60 }
 0xa6d   :  { %2568 = vrot.lane.b32.xlu1 %v2442_v44, %s8370_s2  ;;  %v5073_v56 = vunpack.i.l.bf16 %v5072_v60 }
 0xa6e   :  { %v2445_v55 = vpack.c.bf16 %v5079_v43, %v5044_v11  ;;  %v2177_v49 = vsel %vm269_vm15, %v5078_v1, %v5079_v43  ;;  %v2392_v27 = vsel %vm328_vm10, %v5058_v41, %v5059_v52  ;;  %v2468_v30 = vpack.c.bf16 %v5068_v46, %v5058_v41 }
 0xa6f   :  { %v5082_v25 = vpop.permute.xlu0 %5081  ;;  %v2444_v31 = vpack.c.bf16 %v2177_v49, %v2176_v12  ;;  %v5087_v35 = vpop.permute.xlu1 %5086  ;;  %v2469_v18 = vpack.c.bf16 %v2393_v39, %v2392_v27  ;;  %v2390_v26 = vsel %vm328_vm10, %v5073_v56, %v5074_v40 }
 0xa70   :  { %2574 = vrot.lane.b32.xlu0 %v2445_v55, %s8370_s2  ;;  %v5083_v42 = vunpack.i.l.bf16 %v5082_v25  ;;  %v5089_v44 = vunpack.i.h.bf16 %v5087_v35  ;;  %v5088_v43 = vunpack.i.l.bf16 %v5087_v35 }
 0xa71   :  { %2572 = vrot.lane.b32.xlu1 %v2444_v31, %s8370_s2 }
 0xa72   :  { %v2356_v55 = vsel %vm318_vm9, %v5088_v43, %v5089_v44 }
 0xa73   :  { %v5092_v5 = vpop.permute.xlu0 %5091  ;;  %v5097_v32 = vpop.permute.xlu1 %5096 }
 0xa74   :  { %2570 = vrot.lane.b32.xlu0 %v2443_v0, %s8370_s2  ;;  %v5093_v11 = vunpack.i.l.bf16 %v5092_v5  ;;  %v5099_v49 = vunpack.i.h.bf16 %v5097_v32 }
 0xa75   :  { %2564 = vrot.lane.b32.xlu1 %v2440_v47, %s8370_s2  ;;  %v5084_v47 = vunpack.i.h.bf16 %v5082_v25  ;;  %v5098_v25 = vunpack.i.l.bf16 %v5097_v32 }
 0xa76   :  { %v2464_v60 = vpack.c.bf16 %v5093_v11, %v5088_v43 }
 0xa77   :  { %v5102_v37 = vpop.permute.xlu0 %5101  ;;  %v5107_v54 = vpop.permute.xlu1 %5106  ;;  %v2391_v3 = vsel %vm328_vm10, %v5083_v42, %v5084_v47  ;;  %v2354_v41 = vsel %vm318_vm9, %v5098_v25, %v5099_v49  ;;  %v5345_v49 = vld [vmem:[%s8223_s4 + $0x64] ss:$12 sps:$4 sm:$0xff]  }
 0xa78   :  { %2566 = vrot.lane.b32.xlu0 %v2441_v10, %s8370_s2  ;;  %v5094_v10 = vunpack.i.h.bf16 %v5092_v5  ;;  %v2467_v8 = vpack.c.bf16 %v2391_v3, %v2390_v26  ;;  %v5104_v1 = vunpack.i.h.bf16 %v5102_v37  ;;  %v5103_v12 = vunpack.i.l.bf16 %v5102_v37  ;;  %2724 = vmatprep.mubr.bf16.mxu1 %v5345_v49 }
 0xa79   :  { %2560 = vrot.lane.b32.xlu1 %v2438_v14, %s8370_s2  ;;  %v2466_v14 = vpack.c.bf16 %v5083_v42, %v5073_v56  ;;  %v5109_v37 = vunpack.i.h.bf16 %v5107_v54  ;;  %v5108_v39 = vunpack.i.l.bf16 %v5107_v54 }
 0xa7a   :  { %v2355_v35 = vsel %vm318_vm9, %v5103_v12, %v5104_v1  ;;  %v2462_v5 = vpack.c.bf16 %v5103_v12, %v5098_v25 }
 0xa7b   :  { %v5112_v33 = vpop.permute.xlu0 %5111  ;;  %v5117_v36 = vpop.permute.xlu1 %5116  ;;  %v2463_v27 = vpack.c.bf16 %v2355_v35, %v2354_v41 }
 0xa7c   :  { %2562 = vrot.lane.b32.xlu0 %v2439_v45, %s8370_s2  ;;  %v2357_v45 = vsel %vm318_vm9, %v5093_v11, %v5094_v10  ;;  %v5114_v50 = vunpack.i.h.bf16 %v5112_v33  ;;  %v5113_v46 = vunpack.i.l.bf16 %v5112_v33  ;;  %v2320_v33 = vsel %vm308_vm12, %v5108_v39, %v5109_v37 }
 0xa7d   :  { %2620 = vrot.lane.b32.xlu1 %v2468_v30, %s8370_s2  ;;  %v2465_v0 = vpack.c.bf16 %v2357_v45, %v2356_v55  ;;  %v5119_v56 = vunpack.i.h.bf16 %v5117_v36 }
 0xa7e   :  { %v2321_v32 = vsel %vm308_vm12, %v5113_v46, %v5114_v50  ;;  %v2460_v30 = vpack.c.bf16 %v5113_v46, %v5108_v39 }
 0xa7f   :  { %v5122_v9 = vpop.permute.xlu0 %5121  ;;  %v5127_v52 = vpop.permute.xlu1 %5126 }
 0xa80   :  { %2622 = vrot.lane.b32.xlu0 %v2469_v18, %s8370_s2  ;;  %v5124_v47 = vunpack.i.h.bf16 %v5122_v9  ;;  %v5123_v42 = vunpack.i.l.bf16 %v5122_v9  ;;  %v5118_v18 = vunpack.i.l.bf16 %v5117_v36  ;;  %v5129_v44 = vunpack.i.h.bf16 %v5127_v52 }
 0xa81   :  { %2616 = vrot.lane.b32.xlu1 %v2466_v14, %s8370_s2  ;;  %v2461_v14 = vpack.c.bf16 %v2321_v32, %v2320_v33  ;;  %v5128_v43 = vunpack.i.l.bf16 %v5127_v52 }
 0xa82   :  { %v2319_v54 = vsel %vm308_vm12, %v5123_v42, %v5124_v47  ;;  %v2458_v10 = vpack.c.bf16 %v5123_v42, %v5118_v18  ;;  %v2318_v9 = vsel %vm308_vm12, %v5118_v18, %v5119_v56 }
 0xa83   :  { %v5132_v31 = vpop.permute.xlu0 %5131  ;;  %v5137_v3 = vpop.permute.xlu1 %5136  ;;  %v2459_v45 = vpack.c.bf16 %v2319_v54, %v2318_v9  ;;  %v2284_v25 = vsel %vm95_vm11, %v5128_v43, %v5129_v44  ;;  %v4467_v9 = vld [vmem:[%s8224_s5 + $0x50] sm:$0xff]  ;;  %v4468_v44 = vld [vmem:[%s8224_s5 + $0x58] sm:$0xff] }
 0xa84   :  { %2618 = vrot.lane.b32.xlu0 %v2467_v8, %s8370_s2  ;;  %v5134_v11 = vunpack.i.h.bf16 %v5132_v31  ;;  %v5133_v26 = vunpack.i.l.bf16 %v5132_v31  ;;  %v5139_v31 = vunpack.i.h.bf16 %v5137_v3 }
 0xa85   :  { %2612 = vrot.lane.b32.xlu1 %v2464_v60, %s8370_s2 }
 0xa86   :  { %v2285_v36 = vsel %vm95_vm11, %v5133_v26, %v5134_v11  ;;  %v2456_v60 = vpack.c.bf16 %v5133_v26, %v5128_v43  ;;  %v4465_v43 = vld [vmem:[%s8224_s5 + $0x40] sm:$0xff] }
 0xa87   :  { %v5142_v40 = vpop.permute.xlu0 %5141  ;;  %v5147_v55 = vpop.permute.xlu1 %5146  ;;  %v2457_v35 = vpack.c.bf16 %v2285_v36, %v2284_v25 }
 0xa88   :  { %2614 = vrot.lane.b32.xlu0 %v2465_v0, %s8370_s2  ;;  %v5144_v1 = vunpack.i.h.bf16 %v5142_v40  ;;  %v5143_v12 = vunpack.i.l.bf16 %v5142_v40  ;;  %v5138_v0 = vunpack.i.l.bf16 %v5137_v3  ;;  %v5149_v39 = vunpack.i.h.bf16 %v5147_v55 }
 0xa89   :  { %2608 = vrot.lane.b32.xlu1 %v2462_v5, %s8370_s2 }
 0xa8a   :  { %v2429_v5 = vsel %vm338_vm8, %v5143_v12, %v5144_v1  ;;  %v2472_v50 = vpack.c.bf16 %v5143_v12, %v5138_v0  ;;  %v2428_v37 = vsel %vm338_vm8, %v5138_v0, %v5139_v31 }
 0xa8b   :  { %v5152_v8 = vpop.permute.xlu0 %5151  ;;  %v5157_v32 = vpop.permute.xlu1 %5156 }
 0xa8c   :  { %2610 = vrot.lane.b32.xlu0 %v2463_v27, %s8370_s2  ;;  %v5154_v46 = vunpack.i.h.bf16 %v5152_v8  ;;  %v5153_v52 = vunpack.i.l.bf16 %v5152_v8  ;;  %v5148_v27 = vunpack.i.l.bf16 %v5147_v55  ;;  %v5159_v18 = vunpack.i.h.bf16 %v5157_v32  ;;  %v4466_v8 = vld [vmem:[%s8224_s5 + $0x48] sm:$0xff] }
 0xa8d   :  { %2604 = vrot.lane.b32.xlu1 %v2460_v30, %s8370_s2  ;;  %v2473_v30 = vpack.c.bf16 %v2429_v5, %v2428_v37  ;;  %v5158_v3 = vunpack.i.l.bf16 %v5157_v32 }
 0xa8e   :  { %v2283_v47 = vsel %vm95_vm11, %v5153_v52, %v5154_v46  ;;  %v2454_v42 = vpack.c.bf16 %v5153_v52, %v5148_v27  ;;  %v2282_v56 = vsel %vm95_vm11, %v5148_v27, %v5149_v39 }
 0xa8f   :  { %v5162_v41 = vpop.permute.xlu0 %5161  ;;  %v2426_v11 = vsel %vm338_vm8, %v5158_v3, %v5159_v18 }
 0xa90   :  { %2606 = vrot.lane.b32.xlu0 %v2461_v14, %s8370_s2  ;;  %v5164_v40 = vunpack.i.h.bf16 %v5162_v41  ;;  %v5163_v33 = vunpack.i.l.bf16 %v5162_v41  ;;  %v2455_v14 = vpack.c.bf16 %v2283_v47, %v2282_v56 }
 0xa91   :  { %2600 = vrot.lane.b32.xlu1 %v2458_v10, %s8370_s2 }
 0xa92   :  { %v2427_v54 = vsel %vm338_vm8, %v5163_v33, %v5164_v40  ;;  %v2470_v10 = vpack.c.bf16 %v5163_v33, %v5158_v3 }
 0xa93   :  { %v2471_v26 = vpack.c.bf16 %v2427_v54, %v2426_v11 }
 0xa94   :  { %2602 = vrot.lane.b32.xlu0 %v2459_v45, %s8370_s2 }
 0xa95   :  { %2596 = vrot.lane.b32.xlu1 %v2456_v60, %s8370_s2 }
 0xa98   :  { %2598 = vrot.lane.b32.xlu0 %v2457_v35, %s8370_s2 }
 0xa99   :  { %2628 = vrot.lane.b32.xlu1 %v2472_v50, %s8370_s2 }
 0xa9c   :  { %2630 = vrot.lane.b32.xlu0 %v2473_v30, %s8370_s2 }
 0xa9d   :  { %2592 = vrot.lane.b32.xlu1 %v2454_v42, %s8370_s2 }
 0xaa0   :  { %2594 = vrot.lane.b32.xlu0 %v2455_v14, %s8370_s2 }
 0xaa1   :  { %2624 = vrot.lane.b32.xlu1 %v2470_v10, %s8370_s2 }
 0xaa4   :  { %2626 = vrot.lane.b32.xlu0 %v2471_v26, %s8370_s2 }
 0xaa5   :  { %2486 = vperm.xlu1 %4684, %v4467_v9  }
 0xaa8   :  { %2491 = vperm.xlu0 %4683, %v4468_v44  }
 0xaa9   :  { %2476 = vperm.xlu1 %4684, %v4465_v43  }
 0xaac   :  { %2481 = vperm.xlu0 %4683, %v4466_v8  }
 0xaca   :  { %v2587_v45 = vpop.permute.xlu0 %2586 }
 0xacb   :  { %v2585_v36 = vpop.permute.xlu1 %2584 }
 0xacc   :  { %v2638_v49 = vsel %vm412_vm2, %v2585_v36, %v2587_v45 }
 0xad2   :  { %v2591_v60 = vpop.permute.xlu0 %2590 }
 0xad3   :  { %v2589_v1 = vpop.permute.xlu1 %2588  ;;  %2692 = vmatprep.subr.bf16.mxu1 %v2591_v60 }
 0xad4   :  { %v2639_v12 = vsel %vm412_vm2, %v2589_v1, %v2591_v60 }
 0xad5   :  { %2693 = vmatpush1.bf16.msra.mxu1 %v2639_v12 }
 0xad6   :  { %2694 = vmatprep.subr.bf16.mxu1 %v2587_v45 }
 0xad7   :  { %v2577_v55 = vpop.permute.xlu1 %2576 }
 0xad9   :  { %2695 = vmatpush1.bf16.msra.mxu1 %v2638_v49 }
 0xada   :  { %v2583_v25 = vpop.permute.xlu0 %2582 }
 0xadb   :  { %2696 = vmatprep.subr.bf16.mxu1 %v2583_v25  ;;  %v2581_v31 = vpop.permute.xlu1 %2580 }
 0xadc   :  { %v2637_v0 = vsel %vm412_vm2, %v2581_v31, %v2583_v25 }
 0xadd   :  { %2697 = vmatpush1.bf16.msra.mxu1 %v2637_v0 }
 0xade   :  { %v2579_v35 = vpop.permute.xlu0 %2578 }
 0xadf   :  { %2698 = vmatprep.subr.bf16.mxu1 %v2579_v35  ;;  %v2569_v5 = vpop.permute.xlu1 %2568  ;;  %v2636_v50 = vsel %vm412_vm2, %v2577_v55, %v2579_v35 }
 0xae1   :  { %2699 = vmatpush1.bf16.msra.mxu1 %v2636_v50 }
 0xae2   :  { %v2575_v46 = vpop.permute.xlu0 %2574 }
 0xae3   :  { %2700 = vmatprep.subr.bf16.mxu1 %v2575_v46  ;;  %v2573_v52 = vpop.permute.xlu1 %2572 }
 0xae4   :  { %v2635_v41 = vsel %vm412_vm2, %v2573_v52, %v2575_v46  ;;  %v5343_v52 = vld [vmem:[%s8223_s4 + $0x60] ss:$12 sps:$4 sm:$0xff]  }
 0xae5   :  { %2701 = vmatpush1.bf16.msra.mxu1 %v2635_v41  ;;  %v5347_v41 = vld [vmem:[%s8223_s4 + $0x7c] ss:$12 sps:$4 sm:$0xff]  }
 0xae6   :  { %v2571_v37 = vpop.permute.xlu0 %2570 }
 0xae7   :  { %2702 = vmatprep.subr.bf16.mxu1 %v2571_v37  ;;  %v2565_v39 = vpop.permute.xlu1 %2564  ;;  %v2634_v27 = vsel %vm412_vm2, %v2569_v5, %v2571_v37 }
 0xae9   :  { %2703 = vmatpush1.bf16.msra.mxu1 %v2634_v27 }
 0xaea   :  { %v2567_v32 = vpop.permute.xlu0 %2566 }
 0xaeb   :  { %2704 = vmatprep.subr.bf16.mxu1 %v2567_v32  ;;  %v2561_v30 = vpop.permute.xlu1 %2560  ;;  %v2633_v47 = vsel %vm412_vm2, %v2565_v39, %v2567_v32  ;;  %v5346_v32 = vld [vmem:[%s8223_s4 + $0x68] ss:$12 sps:$4 sm:$0xff]  }
 0xaed   :  { %2705 = vmatpush1.bf16.msra.mxu1 %v2633_v47  ;;  %v5350_v47 = vld [vmem:[%s8223_s4 + $0x80] ss:$12 sps:$4 sm:$0xff]  }
 0xaee   :  { %v2563_v42 = vpop.permute.xlu0 %2562 }
 0xaef   :  { %v2621_v40 = vpop.permute.xlu1 %2620  ;;  %2706 = vmatprep.subr.bf16.mxu1 %v2563_v42  ;;  %v2632_v33 = vsel %vm412_vm2, %v2561_v30, %v2563_v42  ;;  %v5349_v30 = vld [vmem:[%s8223_s4 + $0x78] ss:$12 sps:$4 sm:$0xff]  }
 0xaf1   :  { %2707 = vmatpush1.bf16.msra.mxu1 %v2632_v33 }
 0xaf2   :  { %v2623_v56 = vpop.permute.xlu0 %2622 }
 0xaf3   :  { %v2617_v18 = vpop.permute.xlu1 %2616  ;;  %2708 = vmatprep.subr.bf16.mxu1 %v2623_v56  ;;  %v2647_v3 = vsel %vm412_vm2, %v2621_v40, %v2623_v56 }
 0xaf5   :  { %2709 = vmatpush2.bf16.msra.mxu1 %v2647_v3 }
 0xaf6   :  { %v2619_v14 = vpop.permute.xlu0 %2618 }
 0xaf7   :  { %v2613_v54 = vpop.permute.xlu1 %2612  ;;  %2710 = vmatprep.subr.bf16.mxu1 %v2619_v14  ;;  %v2646_v10 = vsel %vm412_vm2, %v2617_v18, %v2619_v14 }
 0xaf9   :  { %2711 = vmatpush2.bf16.msra.mxu1 %v2646_v10 }
 0xafa   :  { %v2615_v11 = vpop.permute.xlu0 %2614 }
 0xafb   :  { %v2609_v26 = vpop.permute.xlu1 %2608  ;;  %2712 = vmatprep.subr.bf16.mxu1 %v2615_v11  ;;  %v2645_v9 = vsel %vm412_vm2, %v2613_v54, %v2615_v11 }
 0xafd   :  { %2713 = vmatpush2.bf16.msra.mxu1 %v2645_v9 }
 0xafe   :  { %v2611_v44 = vpop.permute.xlu0 %2610 }
 0xaff   :  { %v2605_v43 = vpop.permute.xlu1 %2604  ;;  %2714 = vmatprep.subr.bf16.mxu1 %v2611_v44  ;;  %v2644_v8 = vsel %vm412_vm2, %v2609_v26, %v2611_v44 }
 0xb01   :  { %2715 = vmatpush2.bf16.msra.mxu1 %v2644_v8 }
 0xb02   :  { %v2607_v45 = vpop.permute.xlu0 %2606 }
 0xb03   :  { %v2643_v36 = vsel %vm412_vm2, %v2605_v43, %v2607_v45  ;;  %v2601_v60 = vpop.permute.xlu1 %2600  ;;  %2716 = vmatprep.subr.bf16.mxu1 %v2607_v45 }
 0xb05   :  { %2717 = vmatpush2.bf16.msra.mxu1 %v2643_v36 }
 0xb06   :  { %v2603_v1 = vpop.permute.xlu0 %2602 }
 0xb07   :  { %v2642_v12 = vsel %vm412_vm2, %v2601_v60, %v2603_v1  ;;  %v2597_v55 = vpop.permute.xlu1 %2596  ;;  %2718 = vmatprep.subr.bf16.mxu1 %v2603_v1 }
 0xb09   :  { %2719 = vmatpush2.bf16.msra.mxu1 %v2642_v12 }
 0xb0a   :  { %v2599_v49 = vpop.permute.xlu0 %2598 }
 0xb0b   :  { %v2641_v25 = vsel %vm412_vm2, %v2597_v55, %v2599_v49  ;;  %v2629_v31 = vpop.permute.xlu1 %2628  ;;  %2720 = vmatprep.subr.bf16.mxu1 %v2599_v49 }
 0xb0d   :  { %2721 = vmatpush2.bf16.msra.mxu1 %v2641_v25 }
 0xb0e   :  { %v2631_v0 = vpop.permute.xlu0 %2630 }
 0xb0f   :  { %v2649_v35 = vsel %vm412_vm2, %v2629_v31, %v2631_v0  ;;  %2757 = vmatprep.subr.bf16.mxu0 %v2631_v0  ;;  %v2593_v5 = vpop.permute.xlu1 %2592 }
 0xb10   :  { %2758 = vmatpush1.bf16.msra.mxu0 %v2649_v35 }
 0xb12   :  { %v2595_v50 = vpop.permute.xlu0 %2594 }
 0xb13   :  { %v2640_v46 = vsel %vm412_vm2, %v2593_v5, %v2595_v50  ;;  %2722 = vmatprep.subr.bf16.mxu1 %v2595_v50  ;;  %v2625_v37 = vpop.permute.xlu1 %2624 }
 0xb14   :  { %2723 = vmatpush2.bf16.msra.mxu1 %v2640_v46 }
 0xb16   :  { %v2627_v39 = vpop.permute.xlu0 %2626 }
 0xb17   :  { %v2648_v27 = vsel %vm412_vm2, %v2625_v37, %v2627_v39  ;;  %2725 = vmatmul.mubr.bf16.vlgmr.msra.gmra.mxu1 %v5343_v52  ;;  %2759 = vmatprep.subr.bf16.mxu0 %v2627_v39 }
 0xb18   :  { %2760 = vmatpush1.bf16.msra.mxu0 %v2648_v27  ;;  %2734 = vmatprep.mubr.bf16.mxu1 %v5347_v41 }
 0xb1b   :  { %4475 = vmatmul.mubr.msk.bf16.vlgmr.msra.gmra.mxu0 %vm1145_vm4, %v5346_v32 }
 0xb1c   :  { %2787 = vmatprep.mubr.bf16.mxu0 %v8427_v48 }
 0xb1f   :  { %2735 = vmatmul.mubr.bf16.gmra.mxu1 %v5349_v30 }
 0xb20   :  { %3543 = vmatprep.mubr.bf16.mxu1 %v8427_v48  ;;  %v2487_v42 = vpop.permute.xlu1 %2486 }
 0xb23   :  { %4476 = vmatmul.mubr.msk.bf16.gmra.mxu0 %vm1145_vm4, %v5350_v47  ;;  %v2492_v33 = vpop.permute.xlu0 %2491 }
 0xb24   :  { %v2477_v18 = vpop.permute.xlu1 %2476 }
 0xb27   :  { %v2482_v26 = vpop.permute.xlu0 %2481 }
 0xbd7   :  { %v2726_v40 = vpop.f32.mrf.mxu1 }
 0xbd8   :  { %v2727_v25 = vadd.f32 %v2726_v40, %v2477_v18 }
 0xbd9   :  { %v2728_v56 = vpop.f32.mrf.mxu1 }
 0xbda   :  { %v2729_v54 = vadd.f32 %v2728_v56, %v2477_v18 }
 0xbdb   :  { %v2730_v3 = vpop.f32.mrf.mxu1  ;;  %v2779_v14 = vpop.f32.mrf.mxu0 }
 0xbdc   :  { %v2780_v50 = vadd.f32 %v2779_v14, %v2727_v25  ;;  %v2731_v41 = vadd.f32 %v2730_v3, %v2482_v26 }
 0xbdd   :  { %v2732_v10 = vpop.f32.mrf.mxu1  ;;  %v2781_v11 = vpop.f32.mrf.mxu0 }
 0xbde   :  { %v7009_v9 = vadd.f32 %v2781_v11, %v2729_v54  ;;  %v2733_v8 = vadd.f32 %v2732_v10, %v2482_v26  ;;  %v7021_v32 = vmax.f32 %v2780_v50, 0.0 }
 0xbdf   :  { %v2736_v44 = vpop.f32.mrf.mxu1  ;;  %v2783_v43 = vpop.f32.mrf.mxu0 }
 0xbe0   :  { %v2737_v1 = vadd.f32 %v2736_v44, %v2487_v42  ;;  %v2784_v39 = vadd.f32 %v2783_v43, %v2731_v41  ;;  %v8313_v3 = vmax.f32 %v7009_v9, 0.0  ;;  %v7039_v54 = vmul.f32 %v7021_v32, %v8447_v15 }
 0xbe1   :  { %v2738_v45 = vpop.f32.mrf.mxu1  ;;  %v2785_v36 = vpop.f32.mrf.mxu0  ;;  %v7053_v11 = vmul.f32 %v7021_v32, %v8453_v34  ;;  %v7057_v26 = vmul.f32 %v7021_v32, %v8455_v62 }
 0xbe2   :  { %v7011_v60 = vadd.f32 %v2785_v36, %v2733_v8  ;;  %v2739_v49 = vadd.f32 %v2738_v45, %v2487_v42  ;;  %v7027_v30 = vmax.f32 %v2784_v39, 0.0 }
 0xbe3   :  { %v2740_v12 = vpop.f32.mrf.mxu1  ;;  %v2789_v55 = vpop.f32.mrf.mxu0  ;;  %8458 = vst [vmem:[#allocation38_spill] sm:$0xff] %v7057_v26 }
 0xbe4   :  { %8456 = vst [vmem:[#allocation36_spill] sm:$0xff] %v7011_v60  ;;  %v2790_v31 = vadd.f32 %v2789_v55, %v2737_v1  ;;  %v2741_v35 = vadd.f32 %v2740_v12, %v2492_v33  ;;  %8457 = vst [vmem:[#allocation40_spill] sm:$0xff] %v7027_v30  ;;  %v8319_v44 = vmax.f32 %v7011_v60, 0.0  ;;  %v7077_v12 = vmul.f32 %v7027_v30, %v8447_v15 }
 0xbe5   :  { %v2791_v0 = vpop.f32.mrf.mxu0  ;;  %v2742_v47 = vpop.f32.mrf.mxu1  ;;  %v7081_v55 = vmul.f32 %v7027_v30, %v8450_v61  ;;  %v7100_v50 = vmul.f32 %v7027_v30, %v8455_v62 }
 0xbe6   :  { %v7013_v5 = vadd.f32 %v2791_v0, %v2739_v49  ;;  %v7015_v46 = vmax.f32 %v2790_v31, 0.0  ;;  %v2743_v40 = vadd.f32 %v2742_v47, %v2492_v33  ;;  %v7049_v33 = vmul.f32 %v7021_v32, %v8450_v61 }
 0xbe7   :  { %v2793_v52 = vpop.f32.mrf.mxu0  ;;  %v7085_v49 = vmul.f32 %v7027_v30, %v8453_v34 }
 0xbe8   :  { %v2794_v37 = vadd.f32 %v2793_v52, %v2741_v35  ;;  %2826 = vrot.lane.b32.xlu1 %v7015_v46, %s5405_s22  ;;  %v8315_v18 = vmax.f32 %v7013_v5, 0.0  ;;  %v7065_v8 = vmul.f32 %v7015_v46, %v8447_v15  ;;  %v7119_v39 = vmul.f32 %v7015_v46, %v8450_v61 }
 0xbe9   :  { %v2795_v42 = vpop.f32.mrf.mxu0 }
 0xbea   :  { %v7019_v27 = vmax.f32 %v2794_v37, 0.0  ;;  %v7031_v56 = vadd.f32 %v2795_v42, %v2743_v40  ;;  %v7137_v40 = vmul.f32 %v7015_v46, %v8455_v62 }
 0xbec   :  { %2829 = vrot.lane.b32.xlu0 %v7019_v27, %s5405_s22  ;;  %2820 = vrot.lane.b32.xlu1 %v7021_v32, %s5405_s22  ;;  %v8314_v43 = vmax.f32 %v7031_v56, 0.0  ;;  %v7111_v41 = vmul.f32 %v7019_v27, %v8447_v15  ;;  %v7129_v42 = vmul.f32 %v7019_v27, %v8450_v61  ;;  %v7133_v15 = vmul.f32 %v7015_v46, %v8453_v34 }
 0xbed   :  { %8459 = vst [vmem:[#allocation43_spill] sm:$0xff] %v7137_v40  ;;  %v7176_v53 = vmul.f32 %v7019_v27, %v8455_v62 }
 0xbef   :  { %8460 = vst [vmem:[#allocation42_spill] sm:$0xff] %v7176_v53 }
 0xbf0   :  { %2823 = vrot.lane.b32.xlu0 %v7027_v30, %s5405_s22 }
 0xc5a   :  { %v7035_v14 = vpop.permute.xlu1 %2826 }
 0xc5b   :  { %v7045_v10 = vsel %vm74_vm0, %v7035_v14, %v8315_v18 }
 0xc5c   :  { %2836 = vrot.lane.b32.xlu1 %v7045_v10, %s5405_s22  ;;  %v7069_v45 = vmul.f32 %v7045_v10, %v8446_v38  ;;  %v7073_v1 = vmul.f32 %v7045_v10, %v8449_v57  ;;  %v7096_v35 = vmul.f32 %v7045_v10, %v8452_v24  ;;  %v7149_v61 = vmul.f32 %v7045_v10, %v8454_v19 }
 0xc5d   :  { %v7180_v6 = vmul.f32 %v7045_v10, %v8444_v51 }
 0xc5e   :  { %v2830_v36 = vpop.permute.xlu0 %2829  ;;  %v2821_v25 = vpop.permute.xlu1 %2820 }
 0xc5f   :  { %v7090_v31 = vsel %vm74_vm0, %v2830_v36, %v8314_v43  ;;  %v7105_v52 = vsel %vm74_vm0, %v2821_v25, %v8313_v3  ;;  %8461 = vst [vmem:[#allocation41_spill] sm:$0xff] %v7180_v6 }
 0xc60   :  { %2838 = vrot.lane.b32.xlu0 %v7090_v31, %s5405_s22  ;;  %v7115_v37 = vmul.f32 %v7090_v31, %v8446_v38  ;;  %2832 = vrot.lane.b32.xlu1 %v7105_v52, %s5405_s22  ;;  %v7125_v47 = vmul.f32 %v7105_v52, %v8446_v38  ;;  %v7145_v0 = vmul.f32 %v7105_v52, %v8449_v57 }
 0xc61   :  { %v7160_v43 = vmul.f32 %v7090_v31, %v8449_v57  ;;  %v7198_v23 = vmul.f32 %v7090_v31, %v8452_v24  ;;  %v7212_v62 = vmul.f32 %v7090_v31, %v8454_v19  ;;  %v7216_v21 = vmul.f32 %v7105_v52, %v8454_v19 }
 0xc62   :  { %v2824_v3 = vpop.permute.xlu0 %2823  ;;  %v7228_v22 = vmul.f32 %v7090_v31, %v8444_v51  ;;  %v2868_v48 = vmul.f32 %v7105_v52, %v5648_v2 }
 0xc63   :  { %v7154_v58 = vsel %vm74_vm0, %v2824_v3, %v8319_v44  ;;  %v7172_v44 = vmul.f32 %v7019_v27, %v8453_v34  ;;  %v7192_v34 = vmul.f32 %v7105_v52, %v8452_v24  ;;  %8462 = vst [vmem:[#allocation22_spill] sm:$0xff] %v7212_v62  ;;  %8463 = vst [vmem:[#allocation23_spill] sm:$0xff] %v7216_v21 }
 0xc64   :  { %2834 = vrot.lane.b32.xlu0 %v7154_v58, %s5405_s22  ;;  %v7168_v16 = vmul.f32 %v7154_v58, %v8446_v38  ;;  %v7188_v38 = vmul.f32 %v7154_v58, %v8449_v57  ;;  %v7202_v18 = vmul.f32 %v7154_v58, %v8452_v24  ;;  %v7224_v57 = vmul.f32 %v7154_v58, %v8454_v19  ;;  %s8469_s22 = smov 126  }
 0xc65   :  { %8464 = vst [vmem:[#allocation24_spill] sm:$0xff] %v7228_v22  ;;  %v7236_v24 = vmul.f32 %v7105_v52, %v8444_v51  ;;  %v7240_v59 = vmul.f32 %v7154_v58, %v8444_v51  ;;  %v2870_v6 = vmul.f32 %v7154_v58, %v5648_v2 }
 0xc67   :  { %8465 = vst [vmem:[#allocation25_spill] sm:$0xff] %v7236_v24  ;;  %8466 = vst [vmem:[#allocation26_spill] sm:$0xff] %v7240_v59 }
 0xcce   :  { %v2837_v53 = vpop.permute.xlu1 %2836 }
 0xccf   :  { %v2842_v30 = vsel %vm74_vm0, %v2837_v53, %v7035_v14  ;;  %v2860_v53 = vmul.f32 %v7105_v52, %v5646_v63 }
 0xcd0   :  { %v7252_v51 = vmul.f32 %v2842_v30, %v8445_v20 }
 0xcd2   :  { %v2839_v26 = vpop.permute.xlu0 %2838  ;;  %v2833_v21 = vpop.permute.xlu1 %2832  ;;  %8467 = vst [vmem:[#allocation28_spill] sm:$0xff] %v7252_v51 }
 0xcd3   :  { %v2843_v62 = vsel %vm74_vm0, %v2839_v26, %v2830_v36  ;;  %v2840_v40 = vsel %vm74_vm0, %v2833_v21, %v2821_v25 }
 0xcd4   :  { %v7256_v19 = vmul.f32 %v2843_v62, %v8445_v20  ;;  %v2869_v60 = vmul.f32 %v2840_v40, %v5654_v7  ;;  %v2861_v14 = vmul.f32 %v2840_v40, %v5651_v4  ;;  %v7266_v59 = vmul.f32 %v2840_v40, %v8445_v20 }
 0xcd6   :  { %8468 = vst [vmem:[#allocation27_spill] sm:$0xff] %v7256_v19  ;;  %v2835_v24 = vpop.permute.xlu0 %2834  ;;  %v5165_v36 = vpack.i.bf16 %v2869_v60, %v2868_v48  ;;  %v2873_v60 = vmul.f32 %v2842_v30, %v5654_v7  ;;  %v2875_v19 = vmul.f32 %v2843_v62, %v5654_v7  ;;  %v2865_v48 = vmul.f32 %v2842_v30, %v5651_v4 }
 0xcd7   :  { %v2841_v26 = vsel %vm74_vm0, %v2835_v24, %v2824_v3  ;;  %v2862_v24 = vmul.f32 %v7154_v58, %v5646_v63  ;;  %vm3754_vm0 = vcmask 523264  }
 0xcd8   :  { %v7269_v21 = vmul.f32 %v2841_v26, %v8445_v20  ;;  %v2871_v25 = vmul.f32 %v2841_v26, %v5654_v7  ;;  %5166 = vrot.lane.b32.xlu1 %v5165_v36, %s5418_s3  ;;  %v2863_v51 = vmul.f32 %v2841_v26, %v5651_v4  ;;  %v5170_v20 = vpack.i.bf16 %v2861_v14, %v2860_v53 }
 0xcd9   :  { %v2872_v36 = vmul.f32 %v7045_v10, %v5648_v2  ;;  %v2874_v53 = vmul.f32 %v7090_v31, %v5648_v2  ;;  %v2852_v14 = vmul.f32 %v7105_v52, %v5667_v13  ;;  %v2864_v2 = vmul.f32 %v7045_v10, %v5646_v63 }
 0xcda   :  { %v5175_v3 = vpack.i.bf16 %v2871_v25, %v2870_v6  ;;  %v5180_v22 = vpack.i.bf16 %v2863_v51, %v2862_v24  ;;  %v2853_v6 = vmul.f32 %v2840_v40, %v5670_v17  ;;  %v2854_v40 = vmul.f32 %v7154_v58, %v5667_v13 }
 0xcdb   :  { %v5185_v25 = vpack.i.bf16 %v2873_v60, %v2872_v36  ;;  %v2857_v52 = vmul.f32 %v2842_v30, %v5670_v17  ;;  %v2856_v58 = vmul.f32 %v7045_v10, %v5667_v13  ;;  %v8471_v30 = vpack.i.bf16 %v7115_v37, %v7111_v41 }
 0xcdc   :  { %5176 = vrot.lane.b32.xlu0 %v5175_v3, %s5418_s3  ;;  %5171 = vrot.lane.b32.xlu1 %v5170_v20, %s8469_s22  ;;  %v2855_v3 = vmul.f32 %v2841_v26, %v5670_v17  ;;  %v5205_v20 = vpack.i.bf16 %v2875_v19, %v2874_v53  ;;  %v5190_v7 = vpack.i.bf16 %v2853_v6, %v2852_v14 }
 0xcdd   :  { %v5195_v26 = vpack.i.bf16 %v2865_v48, %v2864_v2  ;;  %v2866_v19 = vmul.f32 %v7090_v31, %v5646_v63  ;;  %v5200_v24 = vpack.i.bf16 %v2857_v52, %v2856_v58  ;;  %v2858_v63 = vmul.f32 %v7090_v31, %v5667_v13 }
 0xcde   :  { %v5210_v51 = vpack.i.bf16 %v2855_v3, %v2854_v40  ;;  %v8472_v10 = vpack.i.bf16 %v7069_v45, %v7065_v8  ;;  %v8474_v41 = vpack.i.bf16 %v7168_v16, %v7077_v12  ;;  %v8475_v13 = vpack.i.bf16 %v7073_v1, %v7119_v39 }
 0xcdf   :  { %v8476_v8 = vpack.i.bf16 %v7160_v43, %v7129_v42  ;;  %v8478_v16 = vpack.i.bf16 %v7188_v38, %v7081_v55  ;;  %v8479_v45 = vpack.i.bf16 %v7096_v35, %v7133_v15  ;;  %v8480_v1 = vmax.f32 %v7013_v5, 0.0  ;;  %v8490_v42 = vld [vmem:[#allocation40_spill] sm:$0xff]  ;;  %v8492_v38 = vld [vmem:[#allocation42_spill] sm:$0xff] }
 0xce0   :  { %5181 = vrot.lane.b32.xlu0 %v5180_v22, %s8469_s22  ;;  %5186 = vrot.lane.b32.xlu1 %v5185_v25, %s5418_s3  ;;  %v2867_v22 = vmul.f32 %v2843_v62, %v5651_v4  ;;  %v2859_v4 = vmul.f32 %v2843_v62, %v5670_v17  ;;  %v8473_v17 = vpack.i.bf16 %v7125_v47, %v7039_v54  ;;  %v8483_v31 = vmax.f32 %v7031_v56, 0.0  ;;  %v8495_v62 = vld [vmem:[#allocation38_spill] sm:$0xff] }
 0xce1   :  { %v8477_v54 = vpack.i.bf16 %v7145_v0, %v7049_v33  ;;  %v2881_v43 = vmul.f32 %v8480_v1, %v5589_v29  ;;  %v8481_v12 = vpack.i.bf16 %v7198_v23, %v7172_v44  ;;  %v2880_v33 = vmul.f32 %v7015_v46, %v5586_v28 }
 0xce2   :  { %v5220_v60 = vpack.i.bf16 %v2867_v22, %v2866_v19  ;;  %v5235_v48 = vpack.i.bf16 %v2859_v4, %v2858_v63  ;;  %v8482_v55 = vpack.i.bf16 %v7192_v34, %v7053_v11  ;;  %v2883_v0 = vmul.f32 %v8483_v31, %v5589_v29 }
 0xce3   :  { %v5285_v35 = vpack.i.bf16 %v2881_v43, %v2880_v33  ;;  %v2882_v5 = vmul.f32 %v7019_v27, %v5586_v28  ;;  %v8484_v23 = vpack.i.bf16 %v7202_v18, %v7085_v49  ;;  %v8485_v11 = vmax.f32 %v7009_v9, 0.0  ;;  %v8486_v27 = vld [vmem:[#allocation43_spill] sm:$0xff]  ;;  %v8488_v18 = vld [vmem:[#allocation36_spill] sm:$0xff]  ;;  %v8491_v9 = vld [vmem:[#allocation22_spill] sm:$0xff] }
 0xce4   :  { %5206 = vrot.lane.b32.xlu0 %v5205_v20, %s5418_s3  ;;  %5191 = vrot.lane.b32.xlu1 %v5190_v7, %s8470_s23  ;;  %v2876_v56 = vmul.f32 %v7021_v32, %v5586_v28  ;;  %v8487_v37 = vpack.i.bf16 %v7149_v61, %v8486_v27  ;;  %v8489_v49 = vmax.f32 %v8488_v18, 0.0  ;;  %v2878_v15 = vmul.f32 %v8490_v42, %v5586_v28  ;;  %v8494_v61 = vld [vmem:[#allocation23_spill] sm:$0xff] }
 0xce5   :  { %v5290_v46 = vpack.i.bf16 %v2883_v0, %v2882_v5  ;;  %v2877_v44 = vmul.f32 %v8485_v11, %v5589_v29  ;;  %v8493_v34 = vpack.i.bf16 %v8491_v9, %v8492_v38  ;;  %v8496_v36 = vpack.i.bf16 %v8494_v61, %v8495_v62 }
 0xce6   :  { %v2879_v39 = vmul.f32 %v8489_v49, %v5589_v29  ;;  %v8497_v29 = vpack.i.bf16 %v7224_v57, %v7100_v50 }
 0xce7   :  { %v5305_v47 = vpack.i.bf16 %v2877_v44, %v2876_v56 }
 0xce8   :  { %5211 = vrot.lane.b32.xlu0 %v5210_v51, %s8470_s23  ;;  %5196 = vrot.lane.b32.xlu1 %v5195_v26, %s8469_s22  ;;  %v5310_v32 = vpack.i.bf16 %v2879_v39, %v2878_v15 }
 0xcec   :  { %5221 = vrot.lane.b32.xlu0 %v5220_v60, %s8469_s22  ;;  %5201 = vrot.lane.b32.xlu1 %v5200_v24, %s8470_s23 }
 0xcf0   :  { %5226 = vrot.lane.b32.xlu0 %v8471_v30, %s8448_s21  ;;  %5216 = vrot.lane.b32.xlu1 %v8472_v10, %s8448_s21 }
 0xcf4   :  { %5236 = vrot.lane.b32.xlu0 %v5235_v48, %s8470_s23  ;;  %5231 = vrot.lane.b32.xlu1 %v8473_v17, %s8448_s21 }
 0xcf8   :  { %5241 = vrot.lane.b32.xlu0 %v8474_v41, %s8448_s21  ;;  %5246 = vrot.lane.b32.xlu1 %v8475_v13, %s8451_s25 }
 0xcfc   :  { %5251 = vrot.lane.b32.xlu0 %v8476_v8, %s8451_s25  ;;  %5256 = vrot.lane.b32.xlu1 %v8477_v54, %s8451_s25 }
 0xd00   :  { %5261 = vrot.lane.b32.xlu0 %v8478_v16, %s8451_s25  ;;  %5266 = vrot.lane.b32.xlu1 %v8479_v45, %s8396_s0 }
 0xd04   :  { %5271 = vrot.lane.b32.xlu0 %v8481_v12, %s8396_s0  ;;  %5276 = vrot.lane.b32.xlu1 %v8482_v55, %s8396_s0 }
 0xd08   :  { %5281 = vrot.lane.b32.xlu0 %v8484_v23, %s8396_s0  ;;  %5286 = vrot.lane.b32.xlu1 %v5285_v35, %s8368_s30 }
 0xd0c   :  { %5291 = vrot.lane.b32.xlu0 %v5290_v46, %s8368_s30  ;;  %5296 = vrot.lane.b32.xlu1 %v8487_v37, %s8369_s20 }
 0xd10   :  { %5301 = vrot.lane.b32.xlu0 %v8493_v34, %s8369_s20  ;;  %5306 = vrot.lane.b32.xlu1 %v5305_v47, %s8368_s30 }
 0xd14   :  { %5311 = vrot.lane.b32.xlu0 %v5310_v32, %s8368_s30  ;;  %5316 = vrot.lane.b32.xlu1 %v8496_v36, %s8369_s20 }
 0xd18   :  { %5321 = vrot.lane.b32.xlu0 %v8497_v29, %s8369_s20 }
 0xd4a   :  { %v5167_v28 = vpop.permute.xlu1 %5166 }
 0xd4b   :  { %v5169_v6 = vunpack.i.h.bf16 %v5167_v28  ;;  %v5168_v25 = vunpack.i.l.bf16 %v5167_v28 }
 0xd4d   :  { %v3012_v7 = vsel %vm289_vm14, %v5168_v25, %v5169_v6 }
 0xd4e   :  { %v5177_v53 = vpop.permute.xlu0 %5176  ;;  %v5172_v14 = vpop.permute.xlu1 %5171 }
 0xd4f   :  { %v5179_v3 = vunpack.i.h.bf16 %v5177_v53  ;;  %v5178_v20 = vunpack.i.l.bf16 %v5177_v53  ;;  %v5174_v30 = vunpack.i.h.bf16 %v5172_v14  ;;  %v5173_v63 = vunpack.i.l.bf16 %v5172_v14  ;;  %v8498_v14 = vld [vmem:[#allocation24_spill] sm:$0xff] }
 0xd51   :  { %v3217_v40 = vpack.c.bf16 %v5179_v3, %v5169_v6  ;;  %v3013_v2 = vsel %vm289_vm14, %v5178_v20, %v5179_v3  ;;  %v2976_v16 = vsel %vm279_vm13, %v5173_v63, %v5174_v30  ;;  %v8499_v3 = vld [vmem:[#allocation41_spill] sm:$0xff] }
 0xd52   :  { %v3216_v22 = vpack.c.bf16 %v3013_v2, %v3012_v7  ;;  %v5182_v51 = vpop.permute.xlu0 %5181  ;;  %v5187_v52 = vpop.permute.xlu1 %5186  ;;  %v8500_v20 = vpack.c.bf16 %v8498_v14, %v8499_v3 }
 0xd53   :  { %3352 = vrot.lane.b32.xlu0 %v3217_v40, %s8370_s2  ;;  %v5189_v50 = vunpack.i.h.bf16 %v5187_v52  ;;  %v5188_v57 = vunpack.i.l.bf16 %v5187_v52  ;;  %v5184_v19 = vunpack.i.h.bf16 %v5182_v51  ;;  %v5183_v58 = vunpack.i.l.bf16 %v5182_v51 }
 0xd54   :  { %3350 = vrot.lane.b32.xlu1 %v3216_v22, %s8370_s2 }
 0xd55   :  { %v3014_v10 = vsel %vm289_vm14, %v5188_v57, %v5189_v50  ;;  %v2977_v8 = vsel %vm279_vm13, %v5183_v58, %v5184_v19  ;;  %v3213_v49 = vpack.c.bf16 %v5184_v19, %v5174_v30  ;;  %v8502_v57 = vld [vmem:[#allocation28_spill] sm:$0xff]  ;;  %v8504_v19 = vld [vmem:[#allocation26_spill] sm:$0xff]  ;;  %v8505_v58 = vld [vmem:[#allocation25_spill] sm:$0xff] }
 0xd56   :  { %v5207_v26 = vpop.permute.xlu0 %5206  ;;  %v5192_v60 = vpop.permute.xlu1 %5191  ;;  %v3212_v43 = vpack.c.bf16 %v2977_v8, %v2976_v16 }
 0xd57   :  { %v5209_v24 = vunpack.i.h.bf16 %v5207_v26  ;;  %v5208_v4 = vunpack.i.l.bf16 %v5207_v26  ;;  %v5194_v5 = vunpack.i.h.bf16 %v5192_v60  ;;  %v5193_v23 = vunpack.i.l.bf16 %v5192_v60 }
 0xd58   :  { %v8506_v60 = vpack.c.bf16 %v8504_v19, %v8505_v58 }
 0xd59   :  { %v3219_v48 = vpack.c.bf16 %v5209_v24, %v5189_v50  ;;  %v3015_v17 = vsel %vm289_vm14, %v5208_v4, %v5209_v24  ;;  %v2940_v39 = vsel %vm269_vm15, %v5193_v23, %v5194_v5  ;;  %v8501_v50 = vld [vmem:[#allocation27_spill] sm:$0xff] }
 0xd5a   :  { %v3218_v41 = vpack.c.bf16 %v3015_v17, %v3014_v10  ;;  %v5212_v13 = vpop.permute.xlu0 %5211  ;;  %v5197_v54 = vpop.permute.xlu1 %5196  ;;  %v8503_v26 = vpack.c.bf16 %v8501_v50, %v8502_v57 }
 0xd5b   :  { %3356 = vrot.lane.b32.xlu0 %v3219_v48, %s8370_s2  ;;  %v5199_v45 = vunpack.i.h.bf16 %v5197_v54  ;;  %v5198_v1 = vunpack.i.l.bf16 %v5197_v54  ;;  %v5214_v33 = vunpack.i.h.bf16 %v5212_v13  ;;  %v5213_v55 = vunpack.i.l.bf16 %v5212_v13 }
 0xd5c   :  { %3354 = vrot.lane.b32.xlu1 %v3218_v41, %s8370_s2  ;;  %v8507_v41 = vpack.c.bf16 %v7269_v21, %v7266_v59 }
 0xd5d   :  { %v2978_v46 = vsel %vm279_vm13, %v5198_v1, %v5199_v45  ;;  %v2941_v37 = vsel %vm269_vm15, %v5213_v55, %v5214_v33  ;;  %v3209_v25 = vpack.c.bf16 %v5214_v33, %v5194_v5 }
 0xd5e   :  { %v5222_v12 = vpop.permute.xlu0 %5221  ;;  %v5202_v31 = vpop.permute.xlu1 %5201  ;;  %v3208_v15 = vpack.c.bf16 %v2941_v37, %v2940_v39 }
 0xd5f   :  { %v5224_v0 = vunpack.i.h.bf16 %v5222_v12  ;;  %v5223_v35 = vunpack.i.l.bf16 %v5222_v12  ;;  %v5204_v47 = vunpack.i.h.bf16 %v5202_v31  ;;  %v5203_v42 = vunpack.i.l.bf16 %v5202_v31 }
 0xd60   :  { %3342 = vrot.lane.b32.xlu1 %v3212_v43, %s8370_s2 }
 0xd61   :  { %v3215_v11 = vpack.c.bf16 %v5224_v0, %v5199_v45  ;;  %v2979_v44 = vsel %vm279_vm13, %v5223_v35, %v5224_v0  ;;  %v2942_v61 = vsel %vm269_vm15, %v5203_v42, %v5204_v47 }
 0xd62   :  { %v3214_v56 = vpack.c.bf16 %v2979_v44, %v2978_v46  ;;  %v5227_v27 = vpop.permute.xlu0 %5226  ;;  %v5217_v18 = vpop.permute.xlu1 %5216 }
 0xd63   :  { %3348 = vrot.lane.b32.xlu0 %v3215_v11, %s8370_s2  ;;  %v5229_v7 = vunpack.i.h.bf16 %v5227_v27  ;;  %v5228_v40 = vunpack.i.l.bf16 %v5227_v27  ;;  %v5219_v22 = vunpack.i.h.bf16 %v5217_v18  ;;  %v5218_v51 = vunpack.i.l.bf16 %v5217_v18 }
 0xd64   :  { %3346 = vrot.lane.b32.xlu1 %v3214_v56, %s8370_s2 }
 0xd65   :  { %v3159_v24 = vsel %vm328_vm10, %v5228_v40, %v5229_v7  ;;  %v3158_v4 = vsel %vm328_vm10, %v5218_v51, %v5219_v22  ;;  %v3234_v30 = vpack.c.bf16 %v5228_v40, %v5218_v51 }
 0xd66   :  { %v5237_v9 = vpop.permute.xlu0 %5236  ;;  %v5232_v38 = vpop.permute.xlu1 %5231  ;;  %v3235_v54 = vpack.c.bf16 %v3159_v24, %v3158_v4 }
 0xd67   :  { %v5239_v34 = vunpack.i.h.bf16 %v5237_v9  ;;  %v5238_v32 = vunpack.i.l.bf16 %v5237_v9  ;;  %3344 = vrot.lane.b32.xlu0 %v3213_v49, %s8370_s2  ;;  %v5234_v13 = vunpack.i.h.bf16 %v5232_v38  ;;  %v5233_v8 = vunpack.i.l.bf16 %v5232_v38 }
 0xd68   :  { %3334 = vrot.lane.b32.xlu1 %v3208_v15, %s8370_s2 }
 0xd69   :  { %v3211_v62 = vpack.c.bf16 %v5239_v34, %v5204_v47  ;;  %v2943_v36 = vsel %vm269_vm15, %v5238_v32, %v5239_v34  ;;  %v3156_v33 = vsel %vm328_vm10, %v5233_v8, %v5234_v13 }
 0xd6a   :  { %v3210_v29 = vpack.c.bf16 %v2943_v36, %v2942_v61  ;;  %v5242_v28 = vpop.permute.xlu0 %5241  ;;  %v5247_v6 = vpop.permute.xlu1 %5246 }
 0xd6b   :  { %3340 = vrot.lane.b32.xlu0 %v3211_v62, %s8370_s2  ;;  %v5244_v63 = vunpack.i.h.bf16 %v5242_v28  ;;  %v5243_v10 = vunpack.i.l.bf16 %v5242_v28  ;;  %v5249_v55 = vunpack.i.h.bf16 %v5247_v6  ;;  %v5248_v31 = vunpack.i.l.bf16 %v5247_v6 }
 0xd6c   :  { %3338 = vrot.lane.b32.xlu1 %v3210_v29, %s8370_s2 }
 0xd6d   :  { %v3157_v16 = vsel %vm328_vm10, %v5243_v10, %v5244_v63  ;;  %v3232_v45 = vpack.c.bf16 %v5243_v10, %v5233_v8  ;;  %v3122_v46 = vsel %vm318_vm9, %v5248_v31, %v5249_v55 }
 0xd6e   :  { %v5252_v53 = vpop.permute.xlu0 %5251  ;;  %v5257_v2 = vpop.permute.xlu1 %5256  ;;  %v3233_v59 = vpack.c.bf16 %v3157_v16, %v3156_v33 }
 0xd6f   :  { %3336 = vrot.lane.b32.xlu0 %v3209_v25, %s8370_s2  ;;  %v5254_v1 = vunpack.i.h.bf16 %v5252_v53  ;;  %v5253_v43 = vunpack.i.l.bf16 %v5252_v53  ;;  %v5259_v11 = vunpack.i.h.bf16 %v5257_v2  ;;  %v5258_v44 = vunpack.i.l.bf16 %v5257_v2 }
 0xd70   :  { %3330 = vrot.lane.b32.xlu1 %v8500_v20, %s8370_s2 }
 0xd71   :  { %v3123_v0 = vsel %vm318_vm9, %v5253_v43, %v5254_v1  ;;  %v3230_v35 = vpack.c.bf16 %v5253_v43, %v5248_v31  ;;  %v3120_v42 = vsel %vm318_vm9, %v5258_v44, %v5259_v11  ;;  %v4488_v11 = vld [vmem:[%s8224_s5 + $0x78] sm:$0xff] }
 0xd72   :  { %v5262_v52 = vpop.permute.xlu0 %5261  ;;  %v5267_v17 = vpop.permute.xlu1 %5266  ;;  %v3231_v56 = vpack.c.bf16 %v3123_v0, %v3122_v46 }
 0xd73   :  { %3332 = vrot.lane.b32.xlu0 %v8503_v26, %s8370_s2  ;;  %v5264_v5 = vunpack.i.h.bf16 %v5262_v52  ;;  %v5263_v23 = vunpack.i.l.bf16 %v5262_v52  ;;  %v5269_v15 = vunpack.i.h.bf16 %v5267_v17  ;;  %v5268_v9 = vunpack.i.l.bf16 %v5267_v17 }
 0xd74   :  { %3326 = vrot.lane.b32.xlu1 %v8506_v60, %s8370_s2  ;;  %v5353_v60 = vld [vmem:[%s8223_s4 + $0x94] ss:$12 sps:$4 sm:$0xff]  }
 0xd75   :  { %v3121_v37 = vsel %vm318_vm9, %v5263_v23, %v5264_v5  ;;  %v3228_v18 = vpack.c.bf16 %v5263_v23, %v5258_v44  ;;  %v3086_v29 = vsel %vm308_vm12, %v5268_v9, %v5269_v15  ;;  %3490 = vmatprep.mubr.bf16.mxu0 %v5353_v60  ;;  %v4487_v44 = vld [vmem:[%s8224_s5 + $0x70] sm:$0xff] }
 0xd76   :  { %v5272_v48 = vpop.permute.xlu0 %5271  ;;  %v5277_v21 = vpop.permute.xlu1 %5276  ;;  %v3229_v38 = vpack.c.bf16 %v3121_v37, %v3120_v42  ;;  %v3581_v37 = vld [vmem:[%s8226_s7] sm:$0x7] }
 0xd77   :  { %3328 = vrot.lane.b32.xlu0 %v8507_v41, %s8370_s2  ;;  %v5274_v49 = vunpack.i.h.bf16 %v5272_v48  ;;  %v5273_v39 = vunpack.i.l.bf16 %v5272_v48  ;;  %v5279_v28 = vunpack.i.h.bf16 %v5277_v21  ;;  %v5278_v6 = vunpack.i.l.bf16 %v5277_v21 }
 0xd78   :  { %3386 = vrot.lane.b32.xlu1 %v3234_v30, %s8370_s2 }
 0xd79   :  { %v3087_v34 = vsel %vm308_vm12, %v5273_v39, %v5274_v49  ;;  %v3226_v32 = vpack.c.bf16 %v5273_v39, %v5268_v9  ;;  %v3084_v40 = vsel %vm308_vm12, %v5278_v6, %v5279_v28 }
 0xd7a   :  { %v5282_v12 = vpop.permute.xlu0 %5281  ;;  %v5287_v47 = vpop.permute.xlu1 %5286  ;;  %v3227_v25 = vpack.c.bf16 %v3087_v34, %v3086_v29 }
 0xd7b   :  { %3388 = vrot.lane.b32.xlu0 %v3235_v54, %s8370_s2  ;;  %v5284_v61 = vunpack.i.h.bf16 %v5282_v12  ;;  %v5283_v62 = vunpack.i.l.bf16 %v5282_v12  ;;  %v5289_v2 = vunpack.i.h.bf16 %v5287_v47  ;;  %v5288_v22 = vunpack.i.l.bf16 %v5287_v47 }
 0xd7c   :  { %3382 = vrot.lane.b32.xlu1 %v3232_v45, %s8370_s2 }
 0xd7d   :  { %v3085_v14 = vsel %vm308_vm12, %v5283_v62, %v5284_v61  ;;  %v3224_v3 = vpack.c.bf16 %v5283_v62, %v5278_v6  ;;  %v3050_v24 = vsel %vm95_vm11, %v5288_v22, %v5289_v2 }
 0xd7e   :  { %v5292_v27 = vpop.permute.xlu0 %5291  ;;  %v5297_v53 = vpop.permute.xlu1 %5296  ;;  %v3225_v51 = vpack.c.bf16 %v3085_v14, %v3084_v40 }
 0xd7f   :  { %3384 = vrot.lane.b32.xlu0 %v3233_v59, %s8370_s2  ;;  %v5294_v20 = vunpack.i.h.bf16 %v5292_v27  ;;  %v5293_v7 = vunpack.i.l.bf16 %v5292_v27  ;;  %v5299_v4 = vunpack.i.h.bf16 %v5297_v53  ;;  %v5298_v30 = vunpack.i.l.bf16 %v5297_v53  ;;  %v4485_v27 = vld [vmem:[%s8224_s5 + $0x60] sm:$0xff] }
 0xd80   :  { %3378 = vrot.lane.b32.xlu1 %v3230_v35, %s8370_s2 }
 0xd81   :  { %v3051_v50 = vsel %vm95_vm11, %v5293_v7, %v5294_v20  ;;  %v3222_v57 = vpack.c.bf16 %v5293_v7, %v5288_v22  ;;  %v3194_v8 = vsel %vm338_vm8, %v5298_v30, %v5299_v4 }
 0xd82   :  { %v5302_v36 = vpop.permute.xlu0 %5301  ;;  %v5307_v58 = vpop.permute.xlu1 %5306  ;;  %v3223_v63 = vpack.c.bf16 %v3051_v50, %v3050_v24 }
 0xd83   :  { %3380 = vrot.lane.b32.xlu0 %v3231_v56, %s8370_s2  ;;  %v5304_v26 = vunpack.i.h.bf16 %v5302_v36  ;;  %v5303_v19 = vunpack.i.l.bf16 %v5302_v36  ;;  %v5309_v54 = vunpack.i.h.bf16 %v5307_v58  ;;  %v5308_v16 = vunpack.i.l.bf16 %v5307_v58  ;;  %v4486_v56 = vld [vmem:[%s8224_s5 + $0x68] sm:$0xff] }
 0xd84   :  { %3374 = vrot.lane.b32.xlu1 %v3228_v18, %s8370_s2 }
 0xd85   :  { %v3195_v10 = vsel %vm338_vm8, %v5303_v19, %v5304_v26  ;;  %v3238_v48 = vpack.c.bf16 %v5303_v19, %v5298_v30  ;;  %v3048_v31 = vsel %vm95_vm11, %v5308_v16, %v5309_v54 }
 0xd86   :  { %v5312_v52 = vpop.permute.xlu0 %5311  ;;  %v3239_v45 = vpack.c.bf16 %v3195_v10, %v3194_v8  ;;  %v5317_v1 = vpop.permute.xlu1 %5316 }
 0xd87   :  { %3376 = vrot.lane.b32.xlu0 %v3229_v38, %s8370_s2  ;;  %v5314_v17 = vunpack.i.h.bf16 %v5312_v52  ;;  %v5313_v41 = vunpack.i.l.bf16 %v5312_v52  ;;  %v5319_v59 = vunpack.i.h.bf16 %v5317_v1  ;;  %v5318_v21 = vunpack.i.l.bf16 %v5317_v1 }
 0xd88   :  { %3370 = vrot.lane.b32.xlu1 %v3226_v32, %s8370_s2 }
 0xd89   :  { %v3049_v43 = vsel %vm95_vm11, %v5313_v41, %v5314_v17  ;;  %v3220_v12 = vpack.c.bf16 %v5313_v41, %v5308_v16  ;;  %v3192_v23 = vsel %vm338_vm8, %v5318_v21, %v5319_v59  ;;  %v5355_v59 = vld [vmem:[%s8223_s4 + $0xac] ss:$12 sps:$4 sm:$0xff]  }
 0xd8a   :  { %v5322_v13 = vpop.permute.xlu0 %5321  ;;  %v3221_v0 = vpack.c.bf16 %v3049_v43, %v3048_v31  ;;  %v5351_v31 = vld [vmem:[%s8223_s4 + $0x90] ss:$12 sps:$4 sm:$0xff]  }
 0xd8b   :  { %3372 = vrot.lane.b32.xlu0 %v3227_v25, %s8370_s2  ;;  %v5324_v33 = vunpack.i.h.bf16 %v5322_v13  ;;  %v5323_v55 = vunpack.i.l.bf16 %v5322_v13 }
 0xd8c   :  { %3366 = vrot.lane.b32.xlu1 %v3224_v3, %s8370_s2 }
 0xd8d   :  { %v3193_v35 = vsel %vm338_vm8, %v5323_v55, %v5324_v33  ;;  %v3236_v5 = vpack.c.bf16 %v5323_v55, %v5318_v21 }
 0xd8e   :  { %v3237_v46 = vpack.c.bf16 %v3193_v35, %v3192_v23  ;;  %v5357_v23 = vld [vmem:[%s8223_s4 + $0xa8] ss:$12 sps:$4 sm:$0xff]  }
 0xd8f   :  { %3368 = vrot.lane.b32.xlu0 %v3225_v51, %s8370_s2 }
 0xd90   :  { %3362 = vrot.lane.b32.xlu1 %v3222_v57, %s8370_s2 }
 0xd93   :  { %3364 = vrot.lane.b32.xlu0 %v3223_v63, %s8370_s2 }
 0xd94   :  { %3394 = vrot.lane.b32.xlu1 %v3238_v48, %s8370_s2 }
 0xd97   :  { %3396 = vrot.lane.b32.xlu0 %v3239_v45, %s8370_s2 }
 0xd98   :  { %3358 = vrot.lane.b32.xlu1 %v3220_v12, %s8370_s2 }
 0xd9b   :  { %3360 = vrot.lane.b32.xlu0 %v3221_v0, %s8370_s2 }
 0xd9c   :  { %3390 = vrot.lane.b32.xlu1 %v3236_v5, %s8370_s2  ;;  %v5354_v5 = vld [vmem:[%s8223_s4 + $0x98] ss:$12 sps:$4 sm:$0xff]  }
 0xd9f   :  { %3392 = vrot.lane.b32.xlu0 %v3237_v46, %s8370_s2  ;;  %v8508_v46 = vmov 0  }
 0xda0   :  { %3257 = vperm.xlu1 %4684, %v4488_v11   ;;  %v5358_v11 = vld [vmem:[%s8223_s4 + $0xb0] ss:$12 sps:$4 sm:$0xff]  }
 0xda3   :  { %3252 = vperm.xlu0 %4683, %v4487_v44   ;;  %v5423_v44 = vmov 0.0  }
 0xda4   :  { %3247 = vperm.xlu1 %4684, %v4486_v56  }
 0xda7   :  { %3242 = vperm.xlu0 %4683, %v4485_v27  }
 0xda8   :  { %3584 = vperm.xlu1 %4684, %v3581_v37  }
 0xdc5   :  { %v3353_v18 = vpop.permute.xlu0 %3352 }
 0xdc6   :  { %v3351_v49 = vpop.permute.xlu1 %3350 }
 0xdc7   :  { %v3404_v9 = vsel %vm412_vm2, %v3351_v49, %v3353_v18 }
 0xdcd   :  { %v3357_v39 = vpop.permute.xlu0 %3356 }
 0xdce   :  { %v3355_v47 = vpop.permute.xlu1 %3354  ;;  %3458 = vmatprep.subr.bf16.mxu0 %v3357_v39 }
 0xdcf   :  { %v3405_v42 = vsel %vm412_vm2, %v3355_v47, %v3357_v39 }
 0xdd0   :  { %3459 = vmatpush1.bf16.msra.mxu0 %v3405_v42 }
 0xdd1   :  { %3460 = vmatprep.subr.bf16.mxu0 %v3353_v18 }
 0xdd2   :  { %v3343_v15 = vpop.permute.xlu1 %3342 }
 0xdd4   :  { %3461 = vmatpush1.bf16.msra.mxu0 %v3404_v9 }
 0xdd5   :  { %v3349_v38 = vpop.permute.xlu0 %3348 }
 0xdd6   :  { %3462 = vmatprep.subr.bf16.mxu0 %v3349_v38  ;;  %v3347_v34 = vpop.permute.xlu1 %3346 }
 0xdd7   :  { %v3403_v32 = vsel %vm412_vm2, %v3347_v34, %v3349_v38 }
 0xdd8   :  { %3463 = vmatpush1.bf16.msra.mxu0 %v3403_v32 }
 0xdd9   :  { %v3345_v61 = vpop.permute.xlu0 %3344 }
 0xdda   :  { %v3402_v62 = vsel %vm412_vm2, %v3343_v15, %v3345_v61  ;;  %3464 = vmatprep.subr.bf16.mxu0 %v3345_v61  ;;  %v3335_v36 = vpop.permute.xlu1 %3334 }
 0xddc   :  { %3465 = vmatpush1.bf16.msra.mxu0 %v3402_v62 }
 0xddd   :  { %v3341_v29 = vpop.permute.xlu0 %3340 }
 0xdde   :  { %3466 = vmatprep.subr.bf16.mxu0 %v3341_v29  ;;  %v3339_v28 = vpop.permute.xlu1 %3338 }
 0xddf   :  { %v3401_v6 = vsel %vm412_vm2, %v3339_v28, %v3341_v29 }
 0xde0   :  { %3467 = vmatpush1.bf16.msra.mxu0 %v3401_v6 }
 0xde1   :  { %v3337_v25 = vpop.permute.xlu0 %3336 }
 0xde2   :  { %v3400_v53 = vsel %vm412_vm2, %v3335_v36, %v3337_v25  ;;  %3468 = vmatprep.subr.bf16.mxu0 %v3337_v25  ;;  %v3331_v14 = vpop.permute.xlu1 %3330 }
 0xde4   :  { %3469 = vmatpush1.bf16.msra.mxu0 %v3400_v53 }
 0xde5   :  { %v3333_v3 = vpop.permute.xlu0 %3332 }
 0xde6   :  { %v3399_v20 = vsel %vm412_vm2, %v3331_v14, %v3333_v3  ;;  %3470 = vmatprep.subr.bf16.mxu0 %v3333_v3  ;;  %v3327_v7 = vpop.permute.xlu1 %3326 }
 0xde8   :  { %3471 = vmatpush1.bf16.msra.mxu0 %v3399_v20 }
 0xde9   :  { %v3329_v40 = vpop.permute.xlu0 %3328 }
 0xdea   :  { %v3398_v2 = vsel %vm412_vm2, %v3327_v7, %v3329_v40  ;;  %v3387_v22 = vpop.permute.xlu1 %3386  ;;  %3472 = vmatprep.subr.bf16.mxu0 %v3329_v40 }
 0xdec   :  { %3473 = vmatpush1.bf16.msra.mxu0 %v3398_v2 }
 0xded   :  { %v3389_v51 = vpop.permute.xlu0 %3388 }
 0xdee   :  { %v3413_v52 = vsel %vm412_vm2, %v3387_v22, %v3389_v51  ;;  %v3383_v50 = vpop.permute.xlu1 %3382  ;;  %3474 = vmatprep.subr.bf16.mxu0 %v3389_v51 }
 0xdf0   :  { %3475 = vmatpush2.bf16.msra.mxu0 %v3413_v52 }
 0xdf1   :  { %v3385_v57 = vpop.permute.xlu0 %3384 }
 0xdf2   :  { %v3412_v26 = vsel %vm412_vm2, %v3383_v50, %v3385_v57  ;;  %v3379_v19 = vpop.permute.xlu1 %3378  ;;  %3476 = vmatprep.subr.bf16.mxu0 %v3385_v57 }
 0xdf4   :  { %3477 = vmatpush2.bf16.msra.mxu0 %v3412_v26 }
 0xdf5   :  { %v3381_v58 = vpop.permute.xlu0 %3380 }
 0xdf6   :  { %v3411_v60 = vsel %vm412_vm2, %v3379_v19, %v3381_v58  ;;  %v3375_v24 = vpop.permute.xlu1 %3374  ;;  %3478 = vmatprep.subr.bf16.mxu0 %v3381_v58  ;;  %v8509_v58 = vld [vmem:[#allocation30_spill] sm:$0xff] }
 0xdf8   :  { %3479 = vmatpush2.bf16.msra.mxu0 %v3411_v60 }
 0xdf9   :  { %v3377_v4 = vpop.permute.xlu0 %3376 }
 0xdfa   :  { %v3410_v30 = vsel %vm412_vm2, %v3375_v24, %v3377_v4  ;;  %v3371_v63 = vpop.permute.xlu1 %3370  ;;  %3480 = vmatprep.subr.bf16.mxu0 %v3377_v4  ;;  %v8510_v4 = vld [vmem:[#allocation35_spill] sm:$0xff] }
 0xdfc   :  { %3481 = vmatpush2.bf16.msra.mxu0 %v3410_v30 }
 0xdfd   :  { %v3373_v10 = vpop.permute.xlu0 %3372 }
 0xdfe   :  { %v3409_v48 = vsel %vm412_vm2, %v3371_v63, %v3373_v10  ;;  %v3367_v17 = vpop.permute.xlu1 %3366  ;;  %3482 = vmatprep.subr.bf16.mxu0 %v3373_v10  ;;  %v8511_v63 = vld [vmem:[#allocation31_spill] sm:$0xff] }
 0xe00   :  { %3483 = vmatpush2.bf16.msra.mxu0 %v3409_v48 }
 0xe01   :  { %v3369_v41 = vpop.permute.xlu0 %3368 }
 0xe02   :  { %v3408_v13 = vsel %vm412_vm2, %v3367_v17, %v3369_v41  ;;  %v3363_v8 = vpop.permute.xlu1 %3362  ;;  %3484 = vmatprep.subr.bf16.mxu0 %v3369_v41  ;;  %v8512_v17 = vld [vmem:[#allocation34_spill] sm:$0xff] }
 0xe04   :  { %3485 = vmatpush2.bf16.msra.mxu0 %v3408_v13  ;;  %v8513_v13 = vld [vmem:[#allocation39_spill] sm:$0xff] }
 0xe05   :  { %v3365_v54 = vpop.permute.xlu0 %3364 }
 0xe06   :  { %v3407_v16 = vsel %vm412_vm2, %v3363_v8, %v3365_v54  ;;  %v3395_v45 = vpop.permute.xlu1 %3394  ;;  %3486 = vmatprep.subr.bf16.mxu0 %v3365_v54 }
 0xe08   :  { %3487 = vmatpush2.bf16.msra.mxu0 %v3407_v16  ;;  %v8514_v16 = vld [vmem:[#allocation37_spill] sm:$0xff] }
 0xe09   :  { %v3397_v1 = vpop.permute.xlu0 %3396 }
 0xe0a   :  { %v3415_v43 = vsel %vm412_vm2, %v3395_v45, %v3397_v1  ;;  %3523 = vmatprep.subr.bf16.mxu1 %v3397_v1  ;;  %v3359_v12 = vpop.permute.xlu1 %3358 }
 0xe0b   :  { %3524 = vmatpush1.bf16.msra.mxu1 %v3415_v43  ;;  %v8515_v43 = vld [vmem:[#allocation33_spill] sm:$0xff] }
 0xe0d   :  { %v3361_v33 = vpop.permute.xlu0 %3360 }
 0xe0e   :  { %v3406_v55 = vsel %vm412_vm2, %v3359_v12, %v3361_v33  ;;  %3488 = vmatprep.subr.bf16.mxu0 %v3361_v33  ;;  %v3391_v21 = vpop.permute.xlu1 %3390 }
 0xe0f   :  { %3489 = vmatpush2.bf16.msra.mxu0 %v3406_v55  ;;  %v8516_v55 = vld [vmem:[#allocation32_spill] sm:$0xff] }
 0xe11   :  { %v3393_v0 = vpop.permute.xlu0 %3392 }
 0xe12   :  { %v3414_v35 = vsel %vm412_vm2, %v3391_v21, %v3393_v0  ;;  %3491 = vmatmul.mubr.bf16.vlgmr.msra.gmra.mxu0 %v5351_v31  ;;  %3525 = vmatprep.subr.bf16.mxu1 %v3393_v0 }
 0xe13   :  { %3526 = vmatpush1.bf16.msra.mxu1 %v3414_v35  ;;  %3500 = vmatprep.mubr.bf16.mxu0 %v5355_v59 }
 0xe16   :  { %4495 = vmatmul.mubr.msk.bf16.vlgmr.msra.gmra.mxu1 %vm1145_vm4, %v5354_v5 }
 0xe17   :  { %3553 = vmatprep.mubr.bf16.mxu1 %v8508_v46  ;;  %v3715_v46 = vld [vmem:[%s8228_s9 + $0xf8] sm:$0xff] }
 0xe1a   :  { %3501 = vmatmul.mubr.bf16.gmra.mxu0 %v5357_v23  ;;  %v3580_v23 = vld [vmem:[%s8225_s6] sm:$0x7] }
 0xe1b   :  { %v3258_v15 = vpop.permute.xlu1 %3257 }
 0xe1e   :  { %4496 = vmatmul.mubr.msk.bf16.gmra.mxu1 %vm1145_vm4, %v5358_v11  ;;  %v3253_v34 = vpop.permute.xlu0 %3252  ;;  %v3714_v11 = vld [vmem:[%s8228_s9 + $0xf0] sm:$0xff] }
 0xe1f   :  { %3654 = vmatprep.mubr.f32.mxu1 %v5423_v44  ;;  %v3248_v6 = vpop.permute.xlu1 %3247  ;;  %v3713_v44 = vld [vmem:[%s8228_s9 + $0xe8] sm:$0xff] }
 0xe22   :  { %v3243_v40 = vpop.permute.xlu0 %3242 }
 0xed2   :  { %v3492_v56 = vpop.f32.mrf.mxu0 }
 0xed3   :  { %v3493_v26 = vadd.f32 %v3492_v56, %v3243_v40  ;;  %v3712_v56 = vld [vmem:[%s8228_s9 + $0xe0] sm:$0xff] }
 0xed4   :  { %v3494_v27 = vpop.f32.mrf.mxu0 }
 0xed5   :  { %v3495_v52 = vadd.f32 %v3494_v27, %v3243_v40  ;;  %v3711_v27 = vld [vmem:[%s8228_s9 + $0xd8] sm:$0xff] }
 0xed6   :  { %v3496_v37 = vpop.f32.mrf.mxu0  ;;  %v3545_v18 = vpop.f32.mrf.mxu1  ;;  %v3687_v40 = vld [vmem:[%s8228_s9 + $0x18] sm:$0xff] }
 0xed7   :  { %v3497_v2 = vadd.f32 %v3496_v37, %v3248_v6  ;;  %v3546_v48 = vadd.f32 %v3545_v18, %v3493_v26  ;;  %v3710_v37 = vld [vmem:[%s8228_s9 + $0xd0] sm:$0xff]  ;;  %v3709_v18 = vld [vmem:[%s8228_s9 + $0xc8] sm:$0xff]  ;;  %v3728_v26 = vld [vmem:[%s8228_s9 + $0x160] sm:$0xff] }
 0xed8   :  { %v3498_v49 = vpop.f32.mrf.mxu0  ;;  %v3547_v39 = vpop.f32.mrf.mxu1 }
 0xed9   :  { %v3499_v14 = vadd.f32 %v3498_v49, %v3248_v6  ;;  %v3548_v24 = vadd.f32 %v3547_v39, %v3495_v52  ;;  %v3564_v31 = vadd.f32 %v3546_v48, %v8516_v55  ;;  %v3708_v49 = vld [vmem:[%s8228_s9 + $0xc0] sm:$0xff]  ;;  %v3707_v39 = vld [vmem:[%s8228_s9 + $0xb8] sm:$0xff]  ;;  %v3694_v6 = vld [vmem:[%s8228_s9 + $0x50] sm:$0xff] }
 0xeda   :  { %v3502_v47 = vpop.f32.mrf.mxu0  ;;  %v3549_v42 = vpop.f32.mrf.mxu1  ;;  %v3731_v52 = vld [vmem:[%s8228_s9 + $0x178] sm:$0xff]  ;;  %v3842_v55 = vld [vmem:[%s8230_s11 + $0x60] sm:$0xff] }
 0xedb   :  { %v3503_v25 = vadd.f32 %v3502_v47, %v3253_v34  ;;  %v3550_v19 = vadd.f32 %v3549_v42, %v3497_v2  ;;  %v3565_v12 = vadd.f32 %v3548_v24, %v8515_v43  ;;  %v3572_v5 = vmax.f32 %v3564_v31, 0.0  ;;  %v3706_v47 = vld [vmem:[%s8228_s9 + $0xb0] sm:$0xff]  ;;  %v3705_v42 = vld [vmem:[%s8228_s9 + $0xa8] sm:$0xff]  ;;  %v3724_v24 = vld [vmem:[%s8228_s9 + $0x140] sm:$0xff] }
 0xedc   :  { %v3504_v9 = vpop.f32.mrf.mxu0  ;;  %v3551_v38 = vpop.f32.mrf.mxu1  ;;  %v3686_v2 = vld [vmem:[%s8228_s9 + $0x10] sm:$0xff]  ;;  %v3719_v48 = vld [vmem:[%s8228_s9 + $0x118] sm:$0xff]  ;;  %v3859_v43 = vld [vmem:[%s8230_s11 + $0xe8] sm:$0xff] }
 0xedd   :  { %v3505_v29 = vadd.f32 %v3504_v9, %v3253_v34  ;;  %v3552_v50 = vadd.f32 %v3551_v38, %v3499_v14  ;;  %v3566_v45 = vadd.f32 %v3550_v19, %v8514_v16  ;;  %v3573_v35 = vmax.f32 %v3565_v12, 0.0  ;;  %v3703_v9 = vld [vmem:[%s8228_s9 + $0x98] sm:$0xff]  ;;  %v3702_v38 = vld [vmem:[%s8228_s9 + $0x90] sm:$0xff]  ;;  %v3701_v34 = vld [vmem:[%s8228_s9 + $0x88] sm:$0xff] }
 0xede   :  { %v3506_v32 = vpop.f32.mrf.mxu0  ;;  %v3555_v61 = vpop.f32.mrf.mxu1  ;;  %v3691_v14 = vld [vmem:[%s8228_s9 + $0x38] sm:$0xff]  ;;  %v3843_v12 = vld [vmem:[%s8230_s11 + $0x68] sm:$0xff] }
 0xedf   :  { %v3507_v28 = vadd.f32 %v3506_v32, %v3258_v15  ;;  %v3556_v22 = vadd.f32 %v3555_v61, %v3503_v25  ;;  %v3567_v8 = vadd.f32 %v3552_v50, %v8513_v13  ;;  %v3574_v0 = vmax.f32 %v3566_v45, 0.0  ;;  %v3700_v32 = vld [vmem:[%s8228_s9 + $0x80] sm:$0xff]  ;;  %v3699_v61 = vld [vmem:[%s8228_s9 + $0x78] sm:$0xff]  ;;  %v3693_v25 = vld [vmem:[%s8228_s9 + $0x48] sm:$0xff] }
 0xee0   :  { %v3508_v62 = vpop.f32.mrf.mxu0  ;;  %v3557_v36 = vpop.f32.mrf.mxu1  ;;  %v3730_v50 = vld [vmem:[%s8228_s9 + $0x170] sm:$0xff]  ;;  %v3727_v19 = vld [vmem:[%s8228_s9 + $0x158] sm:$0xff]  ;;  %v3716_v13 = vld [vmem:[%s8228_s9 + $0x100] sm:$0xff] }
 0xee1   :  { %v3509_v3 = vadd.f32 %v3508_v62, %v3258_v15  ;;  %v3558_v20 = vadd.f32 %v3557_v36, %v3505_v29  ;;  %v3568_v41 = vadd.f32 %v3556_v22, %v8512_v17  ;;  %v3575_v21 = vmax.f32 %v3567_v8, 0.0  ;;  %v3704_v15 = vld [vmem:[%s8228_s9 + $0xa0] sm:$0xff]  ;;  %v3698_v62 = vld [vmem:[%s8228_s9 + $0x70] sm:$0xff]  ;;  %v3697_v36 = vld [vmem:[%s8228_s9 + $0x68] sm:$0xff] }
 0xee2   :  { %v3559_v53 = vpop.f32.mrf.mxu1  ;;  %v3696_v29 = vld [vmem:[%s8228_s9 + $0x60] sm:$0xff]  ;;  %v3685_v22 = vld [vmem:[%s8228_s9 + $0x8] sm:$0xff]  ;;  %v3718_v17 = vld [vmem:[%s8228_s9 + $0x110] sm:$0xff] }
 0xee3   :  { %v3560_v7 = vadd.f32 %v3559_v53, %v3507_v28  ;;  %v3569_v30 = vadd.f32 %v3558_v20, %v8510_v4  ;;  %v3576_v59 = vmax.f32 %v3568_v41, 0.0  ;;  %v3695_v28 = vld [vmem:[%s8228_s9 + $0x58] sm:$0xff]  ;;  %v3692_v53 = vld [vmem:[%s8228_s9 + $0x40] sm:$0xff]  ;;  %v3689_v20 = vld [vmem:[%s8228_s9 + $0x28] sm:$0xff] }
 0xee4   :  { %v3561_v51 = vpop.f32.mrf.mxu1  ;;  %v3723_v4 = vld [vmem:[%s8228_s9 + $0x138] sm:$0xff]  ;;  %v3717_v41 = vld [vmem:[%s8228_s9 + $0x108] sm:$0xff]  ;;  %v3860_v45 = vld [vmem:[%s8230_s11 + $0xf0] sm:$0xff] }
 0xee5   :  { %v3562_v57 = vadd.f32 %v3561_v51, %v3509_v3  ;;  %v3570_v60 = vadd.f32 %v3560_v7, %v8509_v58  ;;  %v3577_v33 = vmax.f32 %v3569_v30, 0.0  ;;  %v3690_v3 = vld [vmem:[%s8228_s9 + $0x30] sm:$0xff]  ;;  %v3688_v7 = vld [vmem:[%s8228_s9 + $0x20] sm:$0xff]  ;;  %v3991_v8 = vld [vmem:[%s8232_s13 + $0xf8] sm:$0xff] }
 0xee6   :  { %v3684_v51 = vld [vmem:[%s8228_s9] sm:$0xff]  ;;  %v3726_v58 = vld [vmem:[%s8228_s9 + $0x150] sm:$0xff]  ;;  %v3845_v16 = vld [vmem:[%s8230_s11 + $0x78] sm:$0xff] }
 0xee7   :  { %v3571_v10 = vadd.f32 %v3562_v57, %v8511_v63  ;;  %v3578_v1 = vmax.f32 %v3570_v60, 0.0  ;;  %v3729_v57 = vld [vmem:[%s8228_s9 + $0x168] sm:$0xff]  ;;  %v3722_v30 = vld [vmem:[%s8228_s9 + $0x130] sm:$0xff]  ;;  %v3857_v31 = vld [vmem:[%s8230_s11 + $0xd8] sm:$0xff] }
 0xee8   :  { %v3725_v60 = vld [vmem:[%s8228_s9 + $0x148] sm:$0xff] }
 0xee9   :  { %v3579_v54 = vmax.f32 %v3571_v10, 0.0  ;;  %v3721_v63 = vld [vmem:[%s8228_s9 + $0x128] sm:$0xff]  ;;  %v3720_v10 = vld [vmem:[%s8228_s9 + $0x120] sm:$0xff] }
 0xeeb   :  { %3614 = vmatprep.subr.mxu1 %v3579_v54  ;;  %v3861_v54 = vld [vmem:[%s8230_s11 + $0xf8] sm:$0xff] }
 0xeec   :  { %3615 = vmatpush1.msra.mxu1 %v3578_v1  ;;  %4551 = vmatprep.subr.mxu0 %v3861_v54  ;;  %v3844_v1 = vld [vmem:[%s8230_s11 + $0x70] sm:$0xff]  ;;  %v3987_v54 = vld [vmem:[%s8232_s13 + $0xd8] sm:$0xff] }
 0xeed   :  { %3616 = vmatprep.subr.mxu1 %v3577_v33  ;;  %4552 = vmatpush3.msra.mxu0 %v3845_v16  ;;  %v3858_v33 = vld [vmem:[%s8230_s11 + $0xe0] sm:$0xff]  ;;  %v3986_v16 = vld [vmem:[%s8232_s13 + $0xd0] sm:$0xff] }
 0xeee   :  { %3617 = vmatpush1.msra.mxu1 %v3576_v59  ;;  %4553 = vmatprep.subr.mxu0 %v3860_v45  ;;  %v3841_v59 = vld [vmem:[%s8230_s11 + $0x58] sm:$0xff]  ;;  %v3985_v45 = vld [vmem:[%s8232_s13 + $0xc8] sm:$0xff] }
 0xeef   :  { %3618 = vmatprep.subr.mxu1 %v3575_v21  ;;  %4554 = vmatpush3.msra.mxu0 %v3844_v1  ;;  %v3856_v21 = vld [vmem:[%s8230_s11 + $0xd0] sm:$0xff]  ;;  %v3984_v1 = vld [vmem:[%s8232_s13 + $0xc0] sm:$0xff] }
 0xef0   :  { %3619 = vmatpush1.msra.mxu1 %v3574_v0  ;;  %4555 = vmatprep.subr.mxu0 %v3859_v43  ;;  %v3840_v0 = vld [vmem:[%s8230_s11 + $0x50] sm:$0xff]  ;;  %v3983_v43 = vld [vmem:[%s8232_s13 + $0xb8] sm:$0xff] }
 0xef1   :  { %3620 = vmatprep.subr.mxu1 %v3573_v35  ;;  %4556 = vmatpush3.msra.mxu0 %v3843_v12  ;;  %v3855_v35 = vld [vmem:[%s8230_s11 + $0xc8] sm:$0xff]  ;;  %v3982_v12 = vld [vmem:[%s8232_s13 + $0xb0] sm:$0xff] }
 0xef2   :  { %3621 = vmatpush1.msra.mxu1 %v3572_v5  ;;  %4557 = vmatprep.subr.mxu0 %v3858_v33  ;;  %v3839_v5 = vld [vmem:[%s8230_s11 + $0x48] sm:$0xff] }
 0xef3   :  { %4497 = vmatmul.mubr.msk.f32.vlgmr.msra.gmra.mxu1 %vm1145_vm4, %v3580_v23  ;;  %3757 = vmatprep.subr.mxu1 %v3715_v46  ;;  %v3854_v23 = vld [vmem:[%s8230_s11 + $0xc0] sm:$0xff]  ;;  %v3981_v33 = vld [vmem:[%s8232_s13 + $0xa8] sm:$0xff] }
 0xef4   :  { %3758 = vmatpush1.msra.mxu1 %v3714_v11  ;;  %4558 = vmatpush3.msra.mxu0 %v3842_v55  ;;  %v3838_v46 = vld [vmem:[%s8230_s11 + $0x40] sm:$0xff]  ;;  %v3853_v11 = vld [vmem:[%s8230_s11 + $0xb8] sm:$0xff] }
 0xef5   :  { %3759 = vmatprep.subr.mxu1 %v3713_v44  ;;  %4559 = vmatprep.subr.mxu0 %v3857_v31  ;;  %v3837_v44 = vld [vmem:[%s8230_s11 + $0x38] sm:$0xff]  ;;  %v3980_v55 = vld [vmem:[%s8232_s13 + $0xa0] sm:$0xff] }
 0xef6   :  { %3760 = vmatpush1.msra.mxu1 %v3712_v56  ;;  %4560 = vmatpush3.msra.mxu0 %v3841_v59  ;;  %v3852_v56 = vld [vmem:[%s8230_s11 + $0xb0] sm:$0xff]  ;;  %v3979_v31 = vld [vmem:[%s8232_s13 + $0x98] sm:$0xff] }
 0xef7   :  { %3761 = vmatprep.subr.mxu1 %v3711_v27  ;;  %4561 = vmatprep.subr.mxu0 %v3856_v21  ;;  %v3836_v27 = vld [vmem:[%s8230_s11 + $0x30] sm:$0xff]  ;;  %v3977_v21 = vld [vmem:[%s8232_s13 + $0x88] sm:$0xff] }
 0xef8   :  { %3762 = vmatpush1.msra.mxu1 %v3710_v37  ;;  %4562 = vmatpush3.msra.mxu0 %v3840_v0  ;;  %v3851_v37 = vld [vmem:[%s8230_s11 + $0xa8] sm:$0xff]  ;;  %v3978_v59 = vld [vmem:[%s8232_s13 + $0x90] sm:$0xff]  ;;  %v3976_v0 = vld [vmem:[%s8232_s13 + $0x80] sm:$0xff] }
 0xef9   :  { %3763 = vmatprep.subr.mxu1 %v3709_v18  ;;  %4563 = vmatprep.subr.mxu0 %v3855_v35  ;;  %v3835_v18 = vld [vmem:[%s8230_s11 + $0x28] sm:$0xff]  ;;  %v3975_v35 = vld [vmem:[%s8232_s13 + $0x78] sm:$0xff] }
 0xefa   :  { %3764 = vmatpush1.msra.mxu1 %v3708_v49  ;;  %4564 = vmatpush3.msra.mxu0 %v3839_v5  ;;  %v3850_v49 = vld [vmem:[%s8230_s11 + $0xa0] sm:$0xff]  ;;  %v3974_v5 = vld [vmem:[%s8232_s13 + $0x70] sm:$0xff] }
 0xefb   :  { %3765 = vmatprep.subr.mxu1 %v3707_v39  ;;  %4565 = vmatprep.subr.mxu0 %v3854_v23  ;;  %v3834_v39 = vld [vmem:[%s8230_s11 + $0x20] sm:$0xff]  ;;  %v3973_v23 = vld [vmem:[%s8232_s13 + $0x68] sm:$0xff] }
 0xefc   :  { %3766 = vmatpush1.msra.mxu1 %v3706_v47  ;;  %4566 = vmatpush3.msra.mxu0 %v3838_v46  ;;  %v3849_v47 = vld [vmem:[%s8230_s11 + $0x98] sm:$0xff]  ;;  %v3972_v46 = vld [vmem:[%s8232_s13 + $0x60] sm:$0xff] }
 0xefd   :  { %3767 = vmatprep.subr.mxu1 %v3705_v42  ;;  %4567 = vmatprep.subr.mxu0 %v3853_v11  ;;  %v5424_v42 = vmov 1983009808   ;;  %v3971_v11 = vld [vmem:[%s8232_s13 + $0x58] sm:$0xff] }
 0xefe   :  { %3768 = vmatpush1.msra.mxu1 %v3704_v15  ;;  %4568 = vmatpush3.msra.mxu0 %v3837_v44  ;;  %v3676_v15 = vunpack.c.l.s4 %v5424_v42  ;;  %v3970_v44 = vld [vmem:[%s8232_s13 + $0x50] sm:$0xff] }
 0xeff   :  { %3769 = vmatprep.subr.mxu1 %v3703_v9  ;;  %4569 = vmatprep.subr.mxu0 %v3852_v56  ;;  %v3585_v9 = vpop.permute.xlu1 %3584  ;;  %v3969_v56 = vld [vmem:[%s8232_s13 + $0x48] sm:$0xff]  ;;  %v3962_v42 = vld [vmem:[%s8232_s13 + $0x10] sm:$0xff] }
 0xf00   :  { %3770 = vmatpush1.msra.mxu1 %v3702_v38  ;;  %4570 = vmatpush3.msra.mxu0 %v3836_v27  ;;  %v3968_v27 = vld [vmem:[%s8232_s13 + $0x40] sm:$0xff] }
 0xf01   :  { %3771 = vmatprep.subr.mxu1 %v3701_v34  ;;  %4571 = vmatprep.subr.mxu0 %v3851_v37  ;;  %v3967_v37 = vld [vmem:[%s8232_s13 + $0x38] sm:$0xff] }
 0xf02   :  { %3772 = vmatpush1.msra.mxu1 %v3700_v32  ;;  %4572 = vmatpush3.msra.mxu0 %v3835_v18  ;;  %v3966_v18 = vld [vmem:[%s8232_s13 + $0x30] sm:$0xff] }
 0xf03   :  { %3773 = vmatprep.subr.mxu1 %v3699_v61  ;;  %4573 = vmatprep.subr.mxu0 %v3850_v49  ;;  %v3677_v61 = vunpack.c.0.s8 %v3676_v15  ;;  %v3965_v49 = vld [vmem:[%s8232_s13 + $0x28] sm:$0xff] }
 0xf04   :  { %3774 = vmatpush1.msra.mxu1 %v3698_v62  ;;  %4574 = vmatpush3.msra.mxu0 %v3834_v39  ;;  %v3964_v39 = vld [vmem:[%s8232_s13 + $0x20] sm:$0xff]  ;;  %v3961_v15 = vld [vmem:[%s8232_s13 + $0x8] sm:$0xff] }
 0xf05   :  { %3775 = vmatprep.subr.mxu1 %v3697_v36  ;;  %4575 = vmatprep.subr.mxu0 %v3849_v47  ;;  %v8517_v36 = vld [vmem:[#allocation9_spill] sm:$0xff]  ;;  %v3963_v47 = vld [vmem:[%s8232_s13 + $0x18] sm:$0xff] }
 0xf06   :  { %3776 = vmatpush1.msra.mxu1 %v3696_v29  ;;  %v4010_v29 = vsub.s32 2, %v8517_v36 }
 0xf07   :  { %3777 = vmatprep.subr.mxu1 %v3695_v28 }
 0xf08   :  { %3778 = vmatpush1.msra.mxu1 %v3694_v6 }
 0xf09   :  { %3779 = vmatprep.subr.mxu1 %v3693_v25  ;;  %v8518_v25 = vld [vmem:[#allocation11_spill] sm:$0xff] }
 0xf0a   :  { %3780 = vmatpush1.msra.mxu1 %v3692_v53 }
 0xf0b   :  { %3781 = vmatprep.subr.mxu1 %v3691_v14  ;;  %v8519_v14 = vld [vmem:[#allocation10_spill] sm:$0xff] }
 0xf0c   :  { %3782 = vmatpush1.msra.mxu1 %v3690_v3 }
 0xf0d   :  { %3783 = vmatprep.subr.mxu1 %v3689_v20  ;;  %v3680_v20 = vsub.s32 %v3677_v61, %v8517_v36  ;;  %v4004_v61 = vld [vmem:[%s8232_s13 + $0x160] sm:$0xff]  ;;  %v4002_v36 = vld [vmem:[%s8232_s13 + $0x150] sm:$0xff] }
 0xf0e   :  { %3784 = vmatpush1.msra.mxu1 %v3688_v7 }
 0xf0f   :  { %3785 = vmatprep.subr.mxu1 %v3687_v40 }
 0xf10   :  { %3786 = vmatpush1.msra.mxu1 %v3686_v2 }
 0xf11   :  { %3787 = vmatprep.subr.mxu1 %v3685_v22 }
 0xf12   :  { %3788 = vmatpush1.msra.mxu1 %v3684_v51 }
 0xf13   :  { %3805 = vmatprep.subr.mxu1 %v3731_v52 }
 0xf14   :  { %3806 = vmatpush2.msra.mxu1 %v3730_v50 }
 0xf15   :  { %3807 = vmatprep.subr.mxu1 %v3729_v57  ;;  %v3663_v57 = vld [vmem:[%s8227_s8] sm:$0xf] }
 0xf16   :  { %3808 = vmatpush2.msra.mxu1 %v3728_v26 }
 0xf17   :  { %3809 = vmatprep.subr.mxu1 %v3727_v19 }
 0xf18   :  { %3810 = vmatpush2.msra.mxu1 %v3726_v58 }
 0xf19   :  { %3811 = vmatprep.subr.mxu1 %v3725_v60 }
 0xf1a   :  { %3812 = vmatpush2.msra.mxu1 %v3724_v24 }
 0xf1b   :  { %3813 = vmatprep.subr.mxu1 %v3723_v4 }
 0xf1c   :  { %3814 = vmatpush2.msra.mxu1 %v3722_v30 }
 0xf1d   :  { %3815 = vmatprep.subr.mxu1 %v3721_v63 }
 0xf1e   :  { %3816 = vmatpush2.msra.mxu1 %v3720_v10 }
 0xf1f   :  { %3817 = vmatprep.subr.mxu1 %v3719_v48 }
 0xf20   :  { %3818 = vmatpush2.msra.mxu1 %v3718_v17  ;;  %v3990_v17 = vld [vmem:[%s8232_s13 + $0xf0] sm:$0xff] }
 0xf21   :  { %3819 = vmatprep.subr.mxu1 %v3717_v41  ;;  %v3989_v41 = vld [vmem:[%s8232_s13 + $0xe8] sm:$0xff] }
 0xf22   :  { %3820 = vmatpush2.msra.mxu1 %v3716_v13 }
 0xf23   :  { %4172 = vmatprep.subr.mxu1 %v3991_v8  ;;  %v3988_v8 = vld [vmem:[%s8232_s13 + $0xe0] sm:$0xff] }
 0xfb3   :  { %v3656_v38 = vpop.f32.mrf.mxu1 }
 0xfb4   :  { %v3657_v34 = vadd.f32 %v3656_v38, %v3585_v9  ;;  %v4007_v38 = vld [vmem:[%s8232_s13 + $0x178] sm:$0xff] }
 0xfb5   :  { %v3658_v32 = vpop.f32.mrf.mxu1 }
 0xfb6   :  { %v3661_v62 = vmax.f32 %v3657_v34, 0.0  ;;  %v3659_v28 = vadd.f32 %v3658_v32, %v3585_v9  ;;  %v3960_v9 = vld [vmem:[%s8232_s13] sm:$0xff]  ;;  %v4006_v34 = vld [vmem:[%s8232_s13 + $0x170] sm:$0xff]  ;;  %v4005_v32 = vld [vmem:[%s8232_s13 + $0x168] sm:$0xff] }
 0xfb8   :  { %v3662_v6 = vmax.f32 %v3659_v28, 0.0  ;;  %v3667_v53 = vrot.slane %v3661_v62, %v8518_v25  ;;  %v3943_v3 = vrot.slane %v3661_v62, %v8519_v14  ;;  %v4011_v7 = vrot.slane %v3661_v62, %v4010_v29  ;;  %v4003_v62 = vld [vmem:[%s8232_s13 + $0x158] sm:$0xff]  ;;  %v4000_v28 = vld [vmem:[%s8232_s13 + $0x140] sm:$0xff] }
 0xfba   :  { %v3671_v40 = vrot.slane %v3662_v6, %v8518_v25  ;;  %v3947_v2 = vrot.slane %v3662_v6, %v8519_v14  ;;  %v4015_v22 = vrot.slane %v3662_v6, %v4010_v29  ;;  %v4001_v29 = vld [vmem:[%s8232_s13 + $0x148] sm:$0xff]  ;;  %v3999_v6 = vld [vmem:[%s8232_s13 + $0x138] sm:$0xff] }
 0xfbc   :  { %v3674_v51 = vcombine.low %v3667_v53, %v3671_v40  ;;  %v3950_v52 = vcombine.low %v3943_v3, %v3947_v2  ;;  %v4018_v50 = vcombine.low %v4011_v7, %v4015_v22  ;;  %v3998_v53 = vld [vmem:[%s8232_s13 + $0x130] sm:$0xff]  ;;  %v3997_v3 = vld [vmem:[%s8232_s13 + $0x128] sm:$0xff]  ;;  %v3995_v7 = vld [vmem:[%s8232_s13 + $0x118] sm:$0xff] }
 0xfbd   :  { %v3994_v40 = vld [vmem:[%s8232_s13 + $0x110] sm:$0xff]  ;;  %v3993_v2 = vld [vmem:[%s8232_s13 + $0x108] sm:$0xff]  ;;  %v3992_v22 = vld [vmem:[%s8232_s13 + $0x100] sm:$0xff] }
 0xfbe   :  { %v3681_v26 = vrot.slane %v3674_v51, %v3680_v20  ;;  %v3957_v19 = vrot.slane %v3950_v52, %v3680_v20  ;;  %v4025_v58 = vrot.slane %v4018_v50, %v3680_v20  ;;  %v3833_v51 = vld [vmem:[%s8230_s11 + $0x18] sm:$0xff]  ;;  %v3848_v52 = vld [vmem:[%s8230_s11 + $0x90] sm:$0xff] }
 0xfbf   :  { %4576 = vmatpush3.msra.mxu0 %v3833_v51  ;;  %v3832_v50 = vld [vmem:[%s8230_s11 + $0x10] sm:$0xff]  ;;  %v4535_v51 = vld [vmem:[%s8232_s13 + $0x298] sm:$0xff] }
 0xfc0   :  { %v3683_v60 = vmul.f32 %v3681_v26, %v3663_v57  ;;  %v3959_v24 = vmul.f32 %v3957_v19, %v3663_v57  ;;  %v4027_v4 = vmul.f32 %v4025_v58, %v3663_v57  ;;  %4577 = vmatprep.subr.mxu0 %v3848_v52  ;;  %v3847_v57 = vld [vmem:[%s8230_s11 + $0x88] sm:$0xff]  ;;  %v3846_v19 = vld [vmem:[%s8230_s11 + $0x80] sm:$0xff]  ;;  %v4534_v52 = vld [vmem:[%s8232_s13 + $0x290] sm:$0xff] }
 0xfc1   :  { %v3831_v26 = vld [vmem:[%s8230_s11 + $0x8] sm:$0xff]  ;;  %4578 = vmatpush3.msra.mxu0 %v3832_v50  ;;  %v3830_v58 = vld [vmem:[%s8230_s11] sm:$0xff] }
 0xfc2   :  { %v3751_v30 = vrot.slane %v3683_v60, %v3680_v20  ;;  %v7782_v63 = vrot.slane %v3959_v24, %v3680_v20  ;;  %v7784_v10 = vrot.slane %v4027_v4, %v3680_v20  ;;  %v3996_v20 = vld [vmem:[%s8232_s13 + $0x120] sm:$0xff]  ;;  %4579 = vmatprep.subr.mxu0 %v3847_v57  ;;  %v4531_v60 = vld [vmem:[%s8232_s13 + $0x278] sm:$0xff]  ;;  %v4533_v50 = vld [vmem:[%s8232_s13 + $0x288] sm:$0xff] }
 0xfc3   :  { %4580 = vmatpush3.msra.mxu0 %v3831_v26  ;;  %v3732_v24 = vld [vmem:[%s8229_s10] sm:$0x3]  ;;  %v4290_v26 = vld [vmem:[%s8234_s15 + $0xf8] sm:$0xff] }
 0xfc4   :  { %v3752_v48 = vcombine.high %v3751_v30, %v3751_v30  ;;  %v4168_v13 = vcombine.high %v7782_v63, %v7782_v63  ;;  %4581 = vmatprep.subr.mxu0 %v3846_v19  ;;  %v3737_v4 = vrot.slane %v3732_v24, %v8518_v25  ;;  %v4532_v57 = vld [vmem:[%s8232_s13 + $0x280] sm:$0xff]  ;;  %v4274_v19 = vld [vmem:[%s8234_s15 + $0x78] sm:$0xff] }
 0xfc5   :  { %4582 = vmatpush3.msra.mxu0 %v3830_v58  ;;  %v4289_v58 = vld [vmem:[%s8234_s15 + $0xf0] sm:$0xff] }
 0xfc6   :  { %4498 = vmatprep.mubr.msk.f32.mxu1 %vm3754_vm0, %v3752_v48  ;;  %4089 = vmatprep.subr.mxu0 %v4531_v60  ;;  %v4273_v60 = vld [vmem:[%s8234_s15 + $0x70] sm:$0xff] }
 0xfc7   :  { %3822 = vmatmul.mubr.f32.vlgmr.msra.gmra.mxu1 %v3751_v30  ;;  %v3741_v30 = vrot.slane %v3732_v24, %v8519_v14  ;;  %v4272_v24 = vld [vmem:[%s8234_s15 + $0x68] sm:$0xff] }
 0xfc8   :  { %4173 = vmatpush1.msra.mxu1 %v3990_v17  ;;  %4549 = vmatprep.mubr.msk.f32.mxu1 %vm3754_vm0, %v4168_v13 }
 0xfc9   :  { %4174 = vmatprep.subr.mxu1 %v3989_v41 }
 0xfca   :  { %4175 = vmatpush1.msra.mxu1 %v3988_v8 }
 0xfcb   :  { %4176 = vmatprep.subr.mxu1 %v3987_v54  ;;  %v4530_v54 = vld [vmem:[%s8232_s13 + $0x270] sm:$0xff] }
 0xfcc   :  { %4177 = vmatpush1.msra.mxu1 %v3986_v16  ;;  %v4529_v16 = vld [vmem:[%s8232_s13 + $0x268] sm:$0xff] }
 0xfcd   :  { %4178 = vmatprep.subr.mxu1 %v3985_v45  ;;  %v4085_v45 = vcombine.high %v7784_v10, %v7784_v10 }
 0xfce   :  { %4179 = vmatpush1.msra.mxu1 %v3984_v1  ;;  %v4528_v1 = vld [vmem:[%s8232_s13 + $0x260] sm:$0xff] }
 0xfcf   :  { %4180 = vmatprep.subr.mxu1 %v3983_v43  ;;  %v4527_v43 = vld [vmem:[%s8232_s13 + $0x258] sm:$0xff] }
 0xfd0   :  { %4181 = vmatpush1.msra.mxu1 %v3982_v12  ;;  %v4526_v12 = vld [vmem:[%s8232_s13 + $0x250] sm:$0xff] }
 0xfd1   :  { %4182 = vmatprep.subr.mxu1 %v3981_v33  ;;  %v4525_v33 = vld [vmem:[%s8232_s13 + $0x248] sm:$0xff] }
 0xfd2   :  { %4183 = vmatpush1.msra.mxu1 %v3980_v55  ;;  %v4524_v55 = vld [vmem:[%s8232_s13 + $0x240] sm:$0xff] }
 0xfd3   :  { %4184 = vmatprep.subr.mxu1 %v3979_v31  ;;  %v4523_v31 = vld [vmem:[%s8232_s13 + $0x238] sm:$0xff] }
 0xfd4   :  { %4185 = vmatpush1.msra.mxu1 %v3978_v59  ;;  %v4522_v59 = vld [vmem:[%s8232_s13 + $0x230] sm:$0xff] }
 0xfd5   :  { %4186 = vmatprep.subr.mxu1 %v3977_v21  ;;  %v4521_v21 = vld [vmem:[%s8232_s13 + $0x228] sm:$0xff] }
 0xfd6   :  { %4187 = vmatpush1.msra.mxu1 %v3976_v0  ;;  %v4520_v0 = vld [vmem:[%s8232_s13 + $0x220] sm:$0xff] }
 0xfd7   :  { %4188 = vmatprep.subr.mxu1 %v3975_v35  ;;  %v4519_v35 = vld [vmem:[%s8232_s13 + $0x218] sm:$0xff] }
 0xfd8   :  { %4189 = vmatpush1.msra.mxu1 %v3974_v5  ;;  %v4518_v5 = vld [vmem:[%s8232_s13 + $0x210] sm:$0xff] }
 0xfd9   :  { %4190 = vmatprep.subr.mxu1 %v3973_v23  ;;  %v4517_v23 = vld [vmem:[%s8232_s13 + $0x208] sm:$0xff] }
 0xfda   :  { %4191 = vmatpush1.msra.mxu1 %v3972_v46  ;;  %v4516_v46 = vld [vmem:[%s8232_s13 + $0x200] sm:$0xff] }
 0xfdb   :  { %4192 = vmatprep.subr.mxu1 %v3971_v11  ;;  %v4515_v11 = vld [vmem:[%s8232_s13 + $0x1f8] sm:$0xff] }
 0xfdc   :  { %4193 = vmatpush1.msra.mxu1 %v3970_v44  ;;  %v4514_v44 = vld [vmem:[%s8232_s13 + $0x1f0] sm:$0xff] }
 0xfdd   :  { %4194 = vmatprep.subr.mxu1 %v3969_v56  ;;  %v4513_v56 = vld [vmem:[%s8232_s13 + $0x1e8] sm:$0xff] }
 0xfde   :  { %4195 = vmatpush1.msra.mxu1 %v3968_v27  ;;  %v4512_v27 = vld [vmem:[%s8232_s13 + $0x1e0] sm:$0xff] }
 0xfdf   :  { %4196 = vmatprep.subr.mxu1 %v3967_v37  ;;  %v4511_v37 = vld [vmem:[%s8232_s13 + $0x1d8] sm:$0xff] }
 0xfe0   :  { %4197 = vmatpush1.msra.mxu1 %v3966_v18  ;;  %v4510_v18 = vld [vmem:[%s8232_s13 + $0x1d0] sm:$0xff] }
 0xfe1   :  { %4198 = vmatprep.subr.mxu1 %v3965_v49  ;;  %v4509_v49 = vld [vmem:[%s8232_s13 + $0x1c8] sm:$0xff] }
 0xfe2   :  { %4199 = vmatpush1.msra.mxu1 %v3964_v39  ;;  %v4508_v39 = vld [vmem:[%s8232_s13 + $0x1c0] sm:$0xff] }
 0xfe3   :  { %4200 = vmatprep.subr.mxu1 %v3963_v47  ;;  %v4507_v47 = vld [vmem:[%s8232_s13 + $0x1b8] sm:$0xff] }
 0xfe4   :  { %4201 = vmatpush1.msra.mxu1 %v3962_v42  ;;  %v4506_v42 = vld [vmem:[%s8232_s13 + $0x1b0] sm:$0xff] }
 0xfe5   :  { %4202 = vmatprep.subr.mxu1 %v3961_v15  ;;  %v4505_v15 = vld [vmem:[%s8232_s13 + $0x1a8] sm:$0xff] }
 0xfe6   :  { %4203 = vmatpush1.msra.mxu1 %v3960_v9  ;;  %v4504_v9 = vld [vmem:[%s8232_s13 + $0x1a0] sm:$0xff] }
 0xfe7   :  { %4220 = vmatprep.subr.mxu1 %v4007_v38  ;;  %v4503_v38 = vld [vmem:[%s8232_s13 + $0x198] sm:$0xff] }
 0xfe8   :  { %4221 = vmatpush2.msra.mxu1 %v4006_v34  ;;  %v4502_v34 = vld [vmem:[%s8232_s13 + $0x190] sm:$0xff] }
 0xfe9   :  { %4222 = vmatprep.subr.mxu1 %v4005_v32  ;;  %v4501_v32 = vld [vmem:[%s8232_s13 + $0x188] sm:$0xff] }
 0xfea   :  { %4223 = vmatpush2.msra.mxu1 %v4004_v61  ;;  %v4500_v61 = vld [vmem:[%s8232_s13 + $0x180] sm:$0xff] }
 0xfeb   :  { %4224 = vmatprep.subr.mxu1 %v4003_v62  ;;  %v4547_v62 = vld [vmem:[%s8232_s13 + $0x2f8] sm:$0xff] }
 0xfec   :  { %4225 = vmatpush2.msra.mxu1 %v4002_v36  ;;  %v4546_v36 = vld [vmem:[%s8232_s13 + $0x2f0] sm:$0xff] }
 0xfed   :  { %4226 = vmatprep.subr.mxu1 %v4001_v29  ;;  %v4545_v29 = vld [vmem:[%s8232_s13 + $0x2e8] sm:$0xff] }
 0xfee   :  { %4227 = vmatpush2.msra.mxu1 %v4000_v28  ;;  %v4544_v28 = vld [vmem:[%s8232_s13 + $0x2e0] sm:$0xff] }
 0xfef   :  { %4228 = vmatprep.subr.mxu1 %v3999_v6  ;;  %v4543_v6 = vld [vmem:[%s8232_s13 + $0x2d8] sm:$0xff] }
 0xff0   :  { %4229 = vmatpush2.msra.mxu1 %v3998_v53  ;;  %v4542_v53 = vld [vmem:[%s8232_s13 + $0x2d0] sm:$0xff] }
 0xff1   :  { %4230 = vmatprep.subr.mxu1 %v3997_v3  ;;  %v4541_v3 = vld [vmem:[%s8232_s13 + $0x2c8] sm:$0xff] }
 0xff2   :  { %4231 = vmatpush2.msra.mxu1 %v3996_v20  ;;  %v4540_v20 = vld [vmem:[%s8232_s13 + $0x2c0] sm:$0xff] }
 0xff3   :  { %4232 = vmatprep.subr.mxu1 %v3995_v7  ;;  %v4539_v7 = vld [vmem:[%s8232_s13 + $0x2b8] sm:$0xff] }
 0xff4   :  { %4233 = vmatpush2.msra.mxu1 %v3994_v40  ;;  %v4538_v40 = vld [vmem:[%s8232_s13 + $0x2b0] sm:$0xff] }
 0xff5   :  { %4234 = vmatprep.subr.mxu1 %v3993_v2  ;;  %v4537_v2 = vld [vmem:[%s8232_s13 + $0x2a8] sm:$0xff] }
 0xff6   :  { %4235 = vmatpush2.msra.mxu1 %v3992_v22  ;;  %v4536_v22 = vld [vmem:[%s8232_s13 + $0x2a0] sm:$0xff] }
 0xff7   :  { %4237 = vmatmul.mubr.f32.vlgmr.msra.gmra.mxu1 %v7782_v63 }
0x1087   :  { %v3823_v63 = vpop.f32.mrf.mxu1 }
0x1088   :  { %v3824_v48 = vadd.f32 %v3823_v63, %v3737_v4  ;;  %v4287_v4 = vld [vmem:[%s8234_s15 + $0xe0] sm:$0xff]  ;;  %v4286_v63 = vld [vmem:[%s8234_s15 + $0xd8] sm:$0xff] }
0x1089   :  { %v3825_v17 = vpop.f32.mrf.mxu1 }
0x108a   :  { %v3826_v41 = vadd.f32 %v3825_v17, %v3741_v30  ;;  %v3828_v8 = vmax.f32 %v3824_v48, 0.0  ;;  %v4271_v30 = vld [vmem:[%s8234_s15 + $0x60] sm:$0xff]  ;;  %v4270_v48 = vld [vmem:[%s8234_s15 + $0x58] sm:$0xff]  ;;  %v4285_v17 = vld [vmem:[%s8234_s15 + $0xd0] sm:$0xff] }
0x108c   :  { %v3829_v13 = vmax.f32 %v3826_v41, 0.0  ;;  %v4269_v41 = vld [vmem:[%s8234_s15 + $0x50] sm:$0xff] }
0x108e   :  { %3933 = vmatprep.mubr.f32.mxu0 %v3829_v13  ;;  %v4284_v13 = vld [vmem:[%s8234_s15 + $0xc8] sm:$0xff] }
0x108f   :  { %3934 = vmatmul.mubr.f32.vlgmr.msra.gmra.mxu0 %v3828_v8  ;;  %v4268_v8 = vld [vmem:[%s8234_s15 + $0x48] sm:$0xff] }
0x1090   :  { %4090 = vmatpush1.msra.mxu0 %v4530_v54  ;;  %4548 = vmatprep.mubr.msk.f32.mxu0 %vm3754_vm0, %v4085_v45  ;;  %v4283_v54 = vld [vmem:[%s8234_s15 + $0xc0] sm:$0xff]  ;;  %v4282_v45 = vld [vmem:[%s8234_s15 + $0xb8] sm:$0xff] }
0x1091   :  { %4091 = vmatprep.subr.mxu0 %v4529_v16  ;;  %v4267_v16 = vld [vmem:[%s8234_s15 + $0x40] sm:$0xff] }
0x1092   :  { %4092 = vmatpush1.msra.mxu0 %v4528_v1  ;;  %v4266_v1 = vld [vmem:[%s8234_s15 + $0x38] sm:$0xff] }
0x1093   :  { %4093 = vmatprep.subr.mxu0 %v4527_v43  ;;  %v4281_v43 = vld [vmem:[%s8234_s15 + $0xb0] sm:$0xff] }
0x1094   :  { %4094 = vmatpush1.msra.mxu0 %v4526_v12  ;;  %v4265_v12 = vld [vmem:[%s8234_s15 + $0x30] sm:$0xff] }
0x1095   :  { %4095 = vmatprep.subr.mxu0 %v4525_v33  ;;  %v4280_v33 = vld [vmem:[%s8234_s15 + $0xa8] sm:$0xff] }
0x1096   :  { %4096 = vmatpush1.msra.mxu0 %v4524_v55  ;;  %v4264_v55 = vld [vmem:[%s8234_s15 + $0x28] sm:$0xff] }
0x1097   :  { %4097 = vmatprep.subr.mxu0 %v4523_v31  ;;  %v4279_v31 = vld [vmem:[%s8234_s15 + $0xa0] sm:$0xff] }
0x1098   :  { %4098 = vmatpush1.msra.mxu0 %v4522_v59  ;;  %v4263_v59 = vld [vmem:[%s8234_s15 + $0x20] sm:$0xff] }
0x1099   :  { %4099 = vmatprep.subr.mxu0 %v4521_v21  ;;  %v4278_v21 = vld [vmem:[%s8234_s15 + $0x98] sm:$0xff] }
0x109a   :  { %4100 = vmatpush1.msra.mxu0 %v4520_v0  ;;  %v4262_v0 = vld [vmem:[%s8234_s15 + $0x18] sm:$0xff] }
0x109b   :  { %4101 = vmatprep.subr.mxu0 %v4519_v35  ;;  %v4277_v35 = vld [vmem:[%s8234_s15 + $0x90] sm:$0xff] }
0x109c   :  { %4102 = vmatpush1.msra.mxu0 %v4518_v5  ;;  %v4261_v5 = vld [vmem:[%s8234_s15 + $0x10] sm:$0xff] }
0x109d   :  { %4103 = vmatprep.subr.mxu0 %v4517_v23  ;;  %v4276_v23 = vld [vmem:[%s8234_s15 + $0x88] sm:$0xff] }
0x109e   :  { %4104 = vmatpush1.msra.mxu0 %v4516_v46  ;;  %v4260_v46 = vld [vmem:[%s8234_s15 + $0x8] sm:$0xff] }
0x109f   :  { %4105 = vmatprep.subr.mxu0 %v4515_v11  ;;  %v4275_v11 = vld [vmem:[%s8234_s15 + $0x80] sm:$0xff] }
0x10a0   :  { %4106 = vmatpush1.msra.mxu0 %v4514_v44  ;;  %v4259_v44 = vld [vmem:[%s8234_s15] sm:$0xff] }
0x10a1   :  { %4107 = vmatprep.subr.mxu0 %v4513_v56 }
0x10a2   :  { %4108 = vmatpush1.msra.mxu0 %v4512_v27  ;;  %v4499_v27 = vld [vmem:[#allocation2] ss:$0 sm:$0xff] }
0x10a3   :  { %4109 = vmatprep.subr.mxu0 %v4511_v37 }
0x10a4   :  { %4110 = vmatpush1.msra.mxu0 %v4510_v18 }
0x10a5   :  { %4111 = vmatprep.subr.mxu0 %v4509_v49 }
0x10a6   :  { %4112 = vmatpush1.msra.mxu0 %v4508_v39 }
0x10a7   :  { %4113 = vmatprep.subr.mxu0 %v4507_v47  ;;  %v4243_v47 = vld [vmem:[%s8233_s14] sm:$0x3]  ;;  %s5425_s14 = smov [#allocation5]  }
0x10a8   :  { %4114 = vmatpush1.msra.mxu0 %v4506_v42  ;;  %s4402_s1 = sshll.u32 %s5425_s14, 4  ;;  %s4403_s1 = int_to_ptr.vmem [resolvable:$true] %s4402_s1 }
0x10a9   :  { %4115 = vmatprep.subr.mxu0 %v4505_v15  ;;  %s5361_s12 = scalar_lea.vmem %s4403_s1, 32  ;;  %p5366_p1 = scmp.lt.s32.totalorder %s4403_s1, %s4403_s1 }
0x10aa   :  { %4116 = vmatpush1.msra.mxu0 %v4504_v9  ;;  %v4248_v9 = vrot.slane %v4243_v47, %v8518_v25  ;;  %p5362_p0 = scmp.ne.s32.totalorder %s4403_s1, %s5361_s12  ;;  %p5367_p2 = scmp.lt.s32.totalorder %s5361_s12, %s5361_s12 }
0x10ab   :  { %4117 = vmatprep.subr.mxu0 %v4503_v38 }
0x10ac   :  { %4118 = vmatpush1.msra.mxu0 %v4502_v34  ;;  %v4252_v34 = vrot.slane %v4243_v47, %v8519_v14  ;;  %p5368_p3 = por %p5367_p2, %p5366_p1 }
0x10ad   :  { %4119 = vmatprep.subr.mxu0 %v4501_v32 }
0x10ae   :  { %4120 = vmatpush1.msra.mxu0 %v4500_v61  ;;  %p5369_p4 = pnand %p5368_p3, %p5362_p0 }
0x10af   :  { %4137 = vmatprep.subr.mxu0 %v4547_v62 }
0x10b0   :  { %4138 = vmatpush2.msra.mxu0 %v4546_v36 }
0x10b1   :  { %4139 = vmatprep.subr.mxu0 %v4545_v29 }
0x10b2   :  { %4140 = vmatpush2.msra.mxu0 %v4544_v28 }
0x10b3   :  { %4141 = vmatprep.subr.mxu0 %v4543_v6 }
0x10b4   :  { %4142 = vmatpush2.msra.mxu0 %v4542_v53 }
0x10b5   :  { %4143 = vmatprep.subr.mxu0 %v4541_v3  ;;  %v4550_v3 = vld [vmem:[%s8235_s16] ss:$0 sm:$0xff] }
0x10b6   :  { %4144 = vmatpush2.msra.mxu0 %v4540_v20 }
0x10b7   :  { %4145 = vmatprep.subr.mxu0 %v4539_v7  ;;  %v4238_v42 = vpop.f32.mrf.mxu1 }
0x10b8   :  { %4146 = vmatpush2.msra.mxu0 %v4538_v40 }
0x10b9   :  { %4147 = vmatprep.subr.mxu0 %v4537_v2  ;;  %v4240_v32 = vpop.f32.mrf.mxu1 }
0x10ba   :  { %4148 = vmatpush2.msra.mxu0 %v4536_v22 }
0x10bb   :  { %4149 = vmatprep.subr.mxu0 %v4535_v51 }
0x10bc   :  { %4150 = vmatpush2.msra.mxu0 %v4534_v52 }
0x10bd   :  { %4151 = vmatprep.subr.mxu0 %v4533_v50 }
0x10be   :  { %4152 = vmatpush2.msra.mxu0 %v4532_v57 }
0x10bf   :  { %4154 = vmatmul.mubr.f32.vlgmr.msra.gmra.mxu0 %v7784_v10  ;;  %4586 = vmatprep.subr.mxu0 %v4290_v26  ;;  %v4288_v10 = vld [vmem:[%s8234_s15 + $0xe8] sm:$0xff] }
0x10c0   :  { %4587 = vmatpush3.msra.mxu0 %v4274_v19 }
0x10c1   :  { %4588 = vmatprep.subr.mxu0 %v4289_v58 }
0x10c2   :  { %4589 = vmatpush3.msra.mxu0 %v4273_v60 }
0x10c3   :  { %4590 = vmatprep.subr.mxu0 %v4288_v10 }
0x10c4   :  { %4591 = vmatpush3.msra.mxu0 %v4272_v24 }
0x10c5   :  { %4592 = vmatprep.subr.mxu0 %v4287_v4 }
0x10c6   :  { %4593 = vmatpush3.msra.mxu0 %v4271_v30 }
0x10c7   :  { %4594 = vmatprep.subr.mxu0 %v4286_v63 }
0x10c8   :  { %4595 = vmatpush3.msra.mxu0 %v4270_v48 }
0x10c9   :  { %4596 = vmatprep.subr.mxu0 %v4285_v17 }
0x10ca   :  { %4597 = vmatpush3.msra.mxu0 %v4269_v41 }
0x10cb   :  { %4598 = vmatprep.subr.mxu0 %v4284_v13 }
0x10cc   :  { %4599 = vmatpush3.msra.mxu0 %v4268_v8 }
0x10cd   :  { %4600 = vmatprep.subr.mxu0 %v4283_v54 }
0x10ce   :  { %4601 = vmatpush3.msra.mxu0 %v4267_v16 }
0x10cf   :  { %4602 = vmatprep.subr.mxu0 %v4282_v45 }
0x10d0   :  { %4603 = vmatpush3.msra.mxu0 %v4266_v1 }
0x10d1   :  { %4604 = vmatprep.subr.mxu0 %v4281_v43 }
0x10d2   :  { %4605 = vmatpush3.msra.mxu0 %v4265_v12 }
0x10d3   :  { %4606 = vmatprep.subr.mxu0 %v4280_v33 }
0x10d4   :  { %4607 = vmatpush3.msra.mxu0 %v4264_v55 }
0x10d5   :  { %4608 = vmatprep.subr.mxu0 %v4279_v31 }
0x10d6   :  { %4609 = vmatpush3.msra.mxu0 %v4263_v59 }
0x10d7   :  { %4610 = vmatprep.subr.mxu0 %v4278_v21 }
0x10d8   :  { %4611 = vmatpush3.msra.mxu0 %v4262_v0 }
0x10d9   :  { %4612 = vmatprep.subr.mxu0 %v4277_v35 }
0x10da   :  { %4613 = vmatpush3.msra.mxu0 %v4261_v5 }
0x10db   :  { %4614 = vmatprep.subr.mxu0 %v4276_v23 }
0x10dc   :  { %4615 = vmatpush3.msra.mxu0 %v4260_v46 }
0x10dd   :  { %4616 = vmatprep.subr.mxu0 %v4275_v11 }
0x10de   :  { %4617 = vmatpush3.msra.mxu0 %v4259_v44 }
0x114f   :  { %v4583_v56 = vpop.f32.mrf.mxu0 }
0x1151   :  { %v4584_v37 = vpop.f32.mrf.mxu0 }
0x1152   :  { %v4585_v18 = vadd.f32 %v4584_v37, %v4583_v56 }
0x1154   :  { %v3936_v49 = vadd.f32 %v4585_v18, %v4499_v27 }
0x1156   :  { %5359 = vtanh.f32 %v3936_v49 }
0x1163   :  { %v5360_v39 = vpop.eup %5359 }
0x1164   :  { %4382 = vst.msk [vmem:[%s8237_s18] sm:$0x3] %vm4381_vm5, %v5360_v39  ;;  %4376 = vperm.xlu1 %4684, %v5360_v39  }
0x117f   :  { %v4155_v15 = vpop.f32.mrf.mxu0 }
0x1180   :  { %v4239_v38 = vadd.f32 %v4238_v42, %v4155_v15 }
0x1181   :  { %v4157_v61 = vpop.f32.mrf.mxu0 }
0x1182   :  { %v4241_v62 = vadd.f32 %v4240_v32, %v4157_v61  ;;  %v4255_v36 = vadd.f32 %v4248_v9, %v4239_v38 }
0x1184   :  { %v4256_v29 = vadd.f32 %v4252_v34, %v4241_v62  ;;  %v4257_v6 = vmax.f32 %v4255_v36, 0.0 }
0x1186   :  { %v4258_v28 = vmax.f32 %v4256_v29, 0.0 }
0x1188   :  { %4362 = vmatprep.mubr.f32.mxu0 %v4258_v28 }
0x1189   :  { %4363 = vmatmul.mubr.f32.vlgmr.msra.gmra.mxu0 %v4257_v6 }
0x1249   :  { %v4618_v53 = vpop.f32.mrf.mxu0 }
0x124b   :  { %v4619_v20 = vpop.f32.mrf.mxu0 }
0x124c   :  { %v4620_v7 = vadd.f32 %v4619_v20, %v4618_v53 }
0x124e   :  { %v4365_v25 = vadd.f32 %v4620_v7, %v4550_v3 }
0x1250   :  { %4383 = vst [vmem:[#allocation5] sm:$0x3] %v4365_v25  ;;  %v4369_v14 = vsel %vm4368_vm6, %v4365_v25, 0.0 }
0x1251   :  { %4370 = vadd.xlane.f32.xlu0 %v4369_v14 }
0x1252   :  { %5372 = shalt.err (!%p5369_p4)
}
0x1253   :  { %4405 = dma.vmem_to_hbm [thread:$0]  %s4403_s1, 32, %s8238_s19, [#allocation6]   ;;  %v4377_v51 = vpop.permute.xlu1 %4376 }
0x1254   :  { %s5426_s16 = smov [#allocation3]  }
0x1255   :  { %s4390_s28 = sshll.u32 %s5426_s16, 4  ;;  %s4391_s28 = int_to_ptr.vmem [resolvable:$true] %s4390_s28 }
0x1256   :  { %s5381_s29 = scalar_lea.vmem %s4391_s28, 32  ;;  %p5386_p6 = scmp.lt.s32.totalorder %s4391_s28, %s4391_s28 }
0x1257   :  { %p5382_p5 = scmp.ne.s32.totalorder %s4391_s28, %s5381_s29  ;;  %p5387_p7 = scmp.lt.s32.totalorder %s5381_s29, %s5381_s29 }
0x1259   :  { %p5388_p8 = por %p5387_p7, %p5386_p6 }
0x125b   :  { %p5389_p9 = pnand %p5388_p8, %p5382_p5 }
0x12da   :  { %v4371_v40 = vpop.xlane.xlu0 %4370 }
0x12db   :  { %v4372_v2 = vmul.f32 0.0121951215, %v4371_v40 }
0x12dd   :  { %v4373_v22 = vsub.f32 %v4365_v25, %v4372_v2 }
0x12df   :  { %v4379_v52 = vadd.f32 %v4377_v51, %v4373_v22 }
0x12e1   :  { %4380 = vst [vmem:[#allocation3] sm:$0x3] %v4379_v52 }
0x12e2   :  { %5392 = shalt.err (!%p5389_p9)
}
0x12e3   :  { %4393 = dma.vmem_to_hbm [thread:$0]  %s4391_s28, 32, %s8236_s17, [#allocation4]  }
0x12e4   :  { %5401 = dma.done.wait [#allocation4], 32  }
0x12e5   :  { %5402 = vsyncadd [#allocation4], 4294967264 }
0x12e6   :  { %5403 = dma.done.wait [#allocation6], 32  }
0x12e7   :  { %5404 = vsyncadd [#allocation6], 4294967264 }
0x12e8   :  { %4414 = vsyncpa [#allocation4], 1 }
0x12e9   :  { %4415 = vsyncpa [#allocation6], 1 }

</bundles_post_ra>
